<compile_context>
chip_gen: v5e
topology: v5e:2x2
jax: 0.10.0
libtpu: 0.0.40
codegen_flags: <defaults>
</compile_context>

<pallas_src>
import math

import jax
import jax.numpy as jnp
from jax import lax
from jax.experimental import pallas as pl
from jax.experimental.pallas import tpu as pltpu

_HP = lax.Precision.HIGHEST


def splatflow_kernel(x_ref, wq_ref, wk_ref, wv_ref, pew_ref, peb_ref, posb_ref,
                     splat_t_ref, splat_sq_ref, logsc_ref, gates_ref,
                     resw_ref, gamma_ref, beta_ref, out_ref):
    R, D = x_ref.shape
    S, E = posb_ref.shape
    N = gates_ref.shape[1]
    Bb = R // S
    f32 = jnp.float32

    xf = x_ref[...]                                                         # (R, D)

    # --- separate q/k/v/pos projections (avoids non-128-aligned slices of a fused output)
    q = jnp.dot(xf, wq_ref[...], precision=_HP, preferred_element_type=f32)  # (R, D)
    k = jnp.dot(xf, wk_ref[...], precision=_HP, preferred_element_type=f32)
    v = jnp.dot(xf, wv_ref[...], precision=_HP, preferred_element_type=f32)

    # --- token positions: tanh(x @ We^T + be) + positional_bias[:S] ---
    pos = jnp.tanh(jnp.dot(xf, pew_ref[...], precision=_HP,
                           preferred_element_type=f32) + peb_ref[...])       # (R, E)
    pos = (pos.reshape(Bb, S, E) + posb_ref[...][None]).reshape(R, E)

    # --- spatial influence, query-major (lane axis = splat axis) via MXU:
    #     d2 = |pos|^2 + |splat|^2 - 2 pos@splat^T  (clamped at 0)
    pos_sq = jnp.sum(pos * pos, axis=-1, keepdims=True)                      # (R, 1)
    cross = jnp.dot(pos, splat_t_ref[...], precision=_HP,
                    preferred_element_type=f32)                              # (R, N)
    d2 = jnp.maximum(pos_sq + splat_sq_ref[...] - 2.0 * cross, 0.0)          # (R, N)
    scales = jnp.clip(jnp.exp(logsc_ref[...]), 0.3, 2.0)                     # (1, N)
    infl = jnp.maximum(jnp.exp(d2 * (-0.5 / (scales * scales))), 0.01)       # (R, N)
    infl3 = infl.reshape(Bb, S, N)                                           # (Bb, S, N)

    # --- shared Q.K^T with the causal mask hoisted once ---
    q3, k3, v3 = (t.reshape(Bb, S, D) for t in (q, k, v))
    base = jnp.einsum('bqd,bkd->bqk', q3, k3, precision=_HP,
                      preferred_element_type=f32) * (1.0 / math.sqrt(D))     # (Bb, S, S)
    rows = lax.broadcasted_iota(jnp.int32, (S, S), 0)
    cols = lax.broadcasted_iota(jnp.int32, (S, S), 1)
    base = jnp.where((cols <= rows)[None], base, -1e9)

    # one shared softmax shift for all splats (swprod in (0,1] -> max(row_max, 0) bounds all)
    m_up = jnp.maximum(jnp.max(base, axis=-1, keepdims=True), 0.0)           # (Bb, S, 1)

    # --- all N per-splat softmaxes at once:
    #     scores4[b,q,k,n] = base[b,q,k] * infl[b,q,n] * infl[b,k,n]
    scores4 = base[:, :, :, None] * (infl3[:, :, None, :] * infl3[:, None, :, :])
    e4 = jnp.exp(scores4 - m_up[:, :, :, None])                              # (Bb,S,S,N)
    denom4 = jnp.sum(e4, axis=2, keepdims=True)                              # (Bb,S,1,N)
    # gate and 1/N folded into the softmax reciprocal
    gate_over_n = (jax.nn.sigmoid(gates_ref[...]) * (1.0 / N)).reshape(1, 1, 1, N)
    attn_acc = jnp.sum(e4 * (gate_over_n / denom4), axis=-1)                 # (Bb, S, S)

    combined = jnp.einsum('bqk,bkd->bqd', attn_acc, v3, precision=_HP,
                          preferred_element_type=f32).reshape(R, D)

    # --- residual mix + LayerNorm (eps=1e-5) ---
    rw = jax.nn.sigmoid(resw_ref[...])                                       # (1, 1)
    o = rw * xf + (1.0 - rw) * combined
    mean = jnp.mean(o, axis=-1, keepdims=True)
    var = jnp.mean((o - mean) ** 2, axis=-1, keepdims=True)
    o = (o - mean) * lax.rsqrt(var + 1e-5)
    o = o * gamma_ref[...] + beta_ref[...]
    out_ref[...] = o.astype(out_ref.dtype)


def _pick_batch_block(B, S, D, E, N, vmem_budget_bytes):
    """Largest divisor of B whose per-step intermediates fit the VMEM budget, while
    keeping >= 2 grid steps (when B >= 2) so the 'parallel' batch axis can actually be
    split across v7x's two TensorCores."""
    best = 1
    for d in range(1, B + 1):
        if B % d:
            continue
        if B >= 2 and (B // d) < 2:
            continue
        rows = d * S
        live_f32 = (3 * d * S * S * N      # scores4 / e4 / gated contributions
                    + 3 * d * S * S        # base / attn_acc
                    + 8 * rows * D         # x, q, k, v, combined, o, ...
                    + 4 * rows * E + 2 * rows * N)
        if 4 * live_f32 > vmem_budget_bytes:
            continue
        best = d
    return best


def splatflow_forward(x, params, *, vmem_limit_bytes=32 * 1024 * 1024):
    """Pallas wrapper: batch-row blocks over (B*S, D)-flattened tokens, batch axis parallel."""
    B, S, D = x.shape
    E = params["pe_w"].shape[0]            # torch nn.Linear weight layout: (E, D)
    N = params["splat_positions"].shape[0]

    B_blk = _pick_batch_block(B, S, D, E, N, vmem_limit_bytes // 2)
    R = B_blk * S

    xf = x.reshape(B * S, D)               # free in HBM; kernel sees clean (R, D) blocks

    # Parameter plumbing (plain-JAX glue, done once outside the kernel).
    wq_t = params["wq"].T
    wk_t = params["wk"].T
    wv_t = params["wv"].T
    pew_t = params["pe_w"].T                                   # (D, E)
    peb = params["pe_b"].reshape(1, E)
    posb = params["positional_bias"][:S]                       # (S, E) -- NOT tiled by batch
    splat = params["splat_positions"]                          # (N, E)
    splat_t = splat.T                                          # (E, N)
    splat_sq = jnp.sum(splat * splat, axis=-1).reshape(1, N)   # (1, N)
    logsc = params["splat_log_scales"].reshape(1, N)
    gates = params["splat_gates"].reshape(1, N)
    resw = params["residual_weight"].reshape(1, 1)
    gamma = params["ln_gamma"].reshape(1, D)
    beta = params["ln_beta"].reshape(1, D)

    def const(shape):
        return pl.BlockSpec(shape, lambda b: (0, 0))

    out = pl.pallas_call(
        splatflow_kernel,
        out_shape=jax.ShapeDtypeStruct((B * S, D), x.dtype),
        grid=(B // B_blk,),
        in_specs=[
            pl.BlockSpec((R, D), lambda b: (b, 0)),            # token rows
            const((D, D)), const((D, D)), const((D, D)),       # Wq^T, Wk^T, Wv^T
            const((D, E)), const((1, E)),                      # pos-encoder W^T, bias
            const((S, E)),                                     # positional bias (resident)
            const((E, N)), const((1, N)),                      # splat positions^T, |splat|^2
            const((1, N)), const((1, N)),                      # log scales, gates
            const((1, 1)),                                     # residual weight
            const((1, D)), const((1, D)),                      # LN gamma, beta
        ],
        out_specs=pl.BlockSpec((R, D), lambda b: (b, 0)),
        compiler_params=pltpu.CompilerParams(
            dimension_semantics=("parallel",),
            vmem_limit_bytes=vmem_limit_bytes),
    )(xf, wq_t, wk_t, wv_t, pew_t, peb, posb, splat_t, splat_sq,
      logsc, gates, resw, gamma, beta)
    return out.reshape(B, S, D)


def splatflow_ref(x, p):
    """Pure-JAX reference mirroring the PyTorch forward exactly (full f32 matmuls)."""
    B, S, D = x.shape
    N, E = p["splat_positions"].shape
    pos = jnp.tanh(jnp.dot(x, p["pe_w"].T, precision=_HP) + p["pe_b"])
    pos = pos + p["positional_bias"][:S][None]
    diff = pos[:, :, None, :] - p["splat_positions"][None, None]
    d2 = jnp.sum(diff ** 2, -1)                                              # (B,S,N)
    scales = jnp.clip(jnp.exp(p["splat_log_scales"]), 0.3, 2.0)
    infl = jnp.maximum(jnp.exp(-0.5 * d2 / (scales ** 2)), 0.01)
    q = jnp.dot(x, p["wq"].T, precision=_HP)
    k = jnp.dot(x, p["wk"].T, precision=_HP)
    v = jnp.dot(x, p["wv"].T, precision=_HP)
    causal = jnp.tril(jnp.ones((S, S), bool))
    outs = []
    for s in range(N):
        sw = infl[:, :, s][..., None]
        scores = jnp.einsum('bqd,bkd->bqk', q * sw, k * sw,
                            precision=_HP) / math.sqrt(D)
        scores = jnp.where(causal[None], scores, -1e9)
        attn = jax.nn.softmax(scores, -1)
        outs.append(jnp.einsum('bqk,bkd->bqd', attn, v, precision=_HP)
                    * jax.nn.sigmoid(p["splat_gates"][s]))
    combined = jnp.mean(jnp.stack(outs, 0), 0)
    rw = jax.nn.sigmoid(p["residual_weight"])
    o = rw * x + (1.0 - rw) * combined
    mean = jnp.mean(o, -1, keepdims=True)
    var = jnp.mean((o - mean) ** 2, -1, keepdims=True)
    o = (o - mean) / jnp.sqrt(var + 1e-5)
    return o * p["ln_gamma"] + p["ln_beta"]


if __name__ == "__main__":
    B, S, D, E, N = 2, 16, 32, 64, 16    # batch, seq, model_dim, embedding_dim, splats

    key = jax.random.PRNGKey(0)
    ks = jax.random.split(key, 8)
    params = dict(
        pe_w=jax.random.normal(ks[0], (E, D), jnp.float32) * 0.05,
        pe_b=jax.random.normal(ks[1], (E,), jnp.float32) * 0.05,
        positional_bias=jax.random.normal(ks[2], (1024, E), jnp.float32) * 0.01,
        splat_positions=jax.random.normal(ks[3], (N, E), jnp.float32) * 0.2,
        splat_log_scales=jnp.zeros((N,), jnp.float32),
        wq=jax.random.normal(ks[4], (D, D), jnp.float32) * 0.05,
        wk=jax.random.normal(ks[5], (D, D), jnp.float32) * 0.05,
        wv=jax.random.normal(ks[6], (D, D), jnp.float32) * 0.05,
        splat_gates=jnp.full((N,), 0.5, jnp.float32),
        ln_gamma=jnp.ones((D,), jnp.float32),
        ln_beta=jnp.zeros((D,), jnp.float32),
        residual_weight=jnp.array(0.8, jnp.float32),
    )
    x = jax.random.normal(ks[7], (B, S, D), jnp.float32)

    out = jax.block_until_ready(splatflow_forward(x, params))
    ref = jax.block_until_ready(splatflow_ref(x, params))

    assert out.shape == (B, S, D) and out.dtype == jnp.float32
    assert jnp.allclose(out, ref, rtol=1e-4, atol=1e-4), (
        f"max abs diff {float(jnp.max(jnp.abs(out - ref)))}")
    print("KERNEL_OK")
</pallas_src>

<mosaic_0001>
module attributes {stable_mosaic.version = 11 : i64} {
  func.func @splatflow_kernel(%arg0: i32, %arg1: memref<16x32xf32, #tpu.memory_space<vmem>>, %arg2: memref<32x32xf32, #tpu.memory_space<vmem>>, %arg3: memref<32x32xf32, #tpu.memory_space<vmem>>, %arg4: memref<32x32xf32, #tpu.memory_space<vmem>>, %arg5: memref<32x64xf32, #tpu.memory_space<vmem>>, %arg6: memref<1x64xf32, #tpu.memory_space<vmem>>, %arg7: memref<16x64xf32, #tpu.memory_space<vmem>>, %arg8: memref<64x16xf32, #tpu.memory_space<vmem>>, %arg9: memref<1x16xf32, #tpu.memory_space<vmem>>, %arg10: memref<1x16xf32, #tpu.memory_space<vmem>>, %arg11: memref<1x16xf32, #tpu.memory_space<vmem>>, %arg12: memref<1x1xf32, #tpu.memory_space<vmem>>, %arg13: memref<1x32xf32, #tpu.memory_space<vmem>>, %arg14: memref<1x32xf32, #tpu.memory_space<vmem>>, %arg15: memref<16x32xf32, #tpu.memory_space<vmem>>) attributes {dimension_semantics = [#tpu.dimension_semantics<parallel>], iteration_bounds = array<i64: 2>, scalar_prefetch = 0 : i64, scratch_operands = 0 : i64, tpu.core_type = #tpu.core_type<tc>, window_params = [{transform_indices = @transform_0, window_bounds = array<i64: 16, 32>}, {pipeline_mode = #tpu.pipeline_mode<synchronous>, transform_indices = @transform_1, window_bounds = array<i64: 32, 32>}, {pipeline_mode = #tpu.pipeline_mode<synchronous>, transform_indices = @transform_2, window_bounds = array<i64: 32, 32>}, {pipeline_mode = #tpu.pipeline_mode<synchronous>, transform_indices = @transform_3, window_bounds = array<i64: 32, 32>}, {pipeline_mode = #tpu.pipeline_mode<synchronous>, transform_indices = @transform_4, window_bounds = array<i64: 32, 64>}, {pipeline_mode = #tpu.pipeline_mode<synchronous>, transform_indices = @transform_5, window_bounds = array<i64: 1, 64>}, {pipeline_mode = #tpu.pipeline_mode<synchronous>, transform_indices = @transform_6, window_bounds = array<i64: 16, 64>}, {pipeline_mode = #tpu.pipeline_mode<synchronous>, transform_indices = @transform_7, window_bounds = array<i64: 64, 16>}, {pipeline_mode = #tpu.pipeline_mode<synchronous>, transform_indices = @transform_8, window_bounds = array<i64: 1, 16>}, {pipeline_mode = #tpu.pipeline_mode<synchronous>, transform_indices = @transform_9, window_bounds = array<i64: 1, 16>}, {pipeline_mode = #tpu.pipeline_mode<synchronous>, transform_indices = @transform_10, window_bounds = array<i64: 1, 16>}, {pipeline_mode = #tpu.pipeline_mode<synchronous>, transform_indices = @transform_11, window_bounds = array<i64: 1, 1>}, {pipeline_mode = #tpu.pipeline_mode<synchronous>, transform_indices = @transform_12, window_bounds = array<i64: 1, 32>}, {pipeline_mode = #tpu.pipeline_mode<synchronous>, transform_indices = @transform_13, window_bounds = array<i64: 1, 32>}, {transform_indices = @transform_14, window_bounds = array<i64: 16, 32>}]} {
    %c0 = arith.constant 0 : index
    %c0_0 = arith.constant 0 : index
    %0 = vector.load %arg1[%c0, %c0_0] : memref<16x32xf32, #tpu.memory_space<vmem>>, vector<16x32xf32>
    %c0_1 = arith.constant 0 : index
    %c0_2 = arith.constant 0 : index
    %1 = vector.load %arg2[%c0_1, %c0_2] : memref<32x32xf32, #tpu.memory_space<vmem>>, vector<32x32xf32>
    %cst = arith.constant dense<0.000000e+00> : vector<16x32xf32>
    %2 = tpu.matmul %0, %1, %cst {dimension_numbers = #tpu.dot_dimension_numbers<[1], [0], [0], [1], [0, 0, 1, 1], [], []>, precision = #tpu.contract_precision<fp32>} : vector<16x32xf32>, vector<32x32xf32>, vector<16x32xf32> -> vector<16x32xf32>
    %c0_3 = arith.constant 0 : index
    %c0_4 = arith.constant 0 : index
    %3 = vector.load %arg3[%c0_3, %c0_4] : memref<32x32xf32, #tpu.memory_space<vmem>>, vector<32x32xf32>
    %cst_5 = arith.constant dense<0.000000e+00> : vector<16x32xf32>
    %4 = tpu.matmul %0, %3, %cst_5 {dimension_numbers = #tpu.dot_dimension_numbers<[1], [0], [0], [1], [0, 0, 1, 1], [], []>, precision = #tpu.contract_precision<fp32>} : vector<16x32xf32>, vector<32x32xf32>, vector<16x32xf32> -> vector<16x32xf32>
    %c0_6 = arith.constant 0 : index
    %c0_7 = arith.constant 0 : index
    %5 = vector.load %arg4[%c0_6, %c0_7] : memref<32x32xf32, #tpu.memory_space<vmem>>, vector<32x32xf32>
    %cst_8 = arith.constant dense<0.000000e+00> : vector<16x32xf32>
    %6 = tpu.matmul %0, %5, %cst_8 {dimension_numbers = #tpu.dot_dimension_numbers<[1], [0], [0], [1], [0, 0, 1, 1], [], []>, precision = #tpu.contract_precision<fp32>} : vector<16x32xf32>, vector<32x32xf32>, vector<16x32xf32> -> vector<16x32xf32>
    %c0_9 = arith.constant 0 : index
    %c0_10 = arith.constant 0 : index
    %7 = vector.load %arg5[%c0_9, %c0_10] : memref<32x64xf32, #tpu.memory_space<vmem>>, vector<32x64xf32>
    %cst_11 = arith.constant dense<0.000000e+00> : vector<16x64xf32>
    %8 = tpu.matmul %0, %7, %cst_11 {dimension_numbers = #tpu.dot_dimension_numbers<[1], [0], [0], [1], [0, 0, 1, 1], [], []>, precision = #tpu.contract_precision<fp32>} : vector<16x32xf32>, vector<32x64xf32>, vector<16x64xf32> -> vector<16x64xf32>
    %c0_12 = arith.constant 0 : index
    %c0_13 = arith.constant 0 : index
    %9 = vector.load %arg6[%c0_12, %c0_13] : memref<1x64xf32, #tpu.memory_space<vmem>>, vector<1x64xf32>
    %10 = vector.broadcast %9 : vector<1x64xf32> to vector<16x64xf32>
    %11 = arith.addf %8, %10 : vector<16x64xf32>
    %12 = math.tanh %11 : vector<16x64xf32>
    %13 = vector.shape_cast %12 : vector<16x64xf32> to vector<1x16x64xf32>
    %c0_14 = arith.constant 0 : index
    %c0_15 = arith.constant 0 : index
    %14 = vector.load %arg7[%c0_14, %c0_15] : memref<16x64xf32, #tpu.memory_space<vmem>>, vector<16x64xf32>
    %15 = vector.shape_cast %14 : vector<16x64xf32> to vector<1x16x64xf32>
    %16 = arith.addf %13, %15 : vector<1x16x64xf32>
    %17 = vector.shape_cast %16 : vector<1x16x64xf32> to vector<16x64xf32>
    %18 = arith.mulf %17, %17 : vector<16x64xf32>
    %cst_16 = arith.constant dense<0.000000e+00> : vector<16xf32>
    %19 = vector.multi_reduction <add>, %18, %cst_16 [1] : vector<16x64xf32> to vector<16xf32>
    %20 = vector.shape_cast %19 : vector<16xf32> to vector<16x1xf32>
    %c0_17 = arith.constant 0 : index
    %c0_18 = arith.constant 0 : index
    %21 = vector.load %arg8[%c0_17, %c0_18] : memref<64x16xf32, #tpu.memory_space<vmem>>, vector<64x16xf32>
    %cst_19 = arith.constant dense<0.000000e+00> : vector<16x16xf32>
    %22 = tpu.matmul %17, %21, %cst_19 {dimension_numbers = #tpu.dot_dimension_numbers<[1], [0], [0], [1], [0, 0, 1, 1], [], []>, precision = #tpu.contract_precision<fp32>} : vector<16x64xf32>, vector<64x16xf32>, vector<16x16xf32> -> vector<16x16xf32>
    %c0_20 = arith.constant 0 : index
    %c0_21 = arith.constant 0 : index
    %23 = vector.load %arg9[%c0_20, %c0_21] : memref<1x16xf32, #tpu.memory_space<vmem>>, vector<1x16xf32>
    %24 = vector.broadcast %20 : vector<16x1xf32> to vector<16x16xf32>
    %25 = vector.broadcast %23 : vector<1x16xf32> to vector<16x16xf32>
    %26 = arith.addf %24, %25 : vector<16x16xf32>
    %cst_22 = arith.constant 2.000000e+00 : f32
    %27 = vector.broadcast %cst_22 : f32 to vector<16x16xf32>
    %28 = arith.mulf %27, %22 : vector<16x16xf32>
    %29 = arith.subf %26, %28 : vector<16x16xf32>
    %cst_23 = arith.constant 0.000000e+00 : f32
    %30 = vector.broadcast %cst_23 : f32 to vector<16x16xf32>
    %31 = arith.maximumf %29, %30 : vector<16x16xf32>
    %c0_24 = arith.constant 0 : index
    %c0_25 = arith.constant 0 : index
    %32 = vector.load %arg10[%c0_24, %c0_25] : memref<1x16xf32, #tpu.memory_space<vmem>>, vector<1x16xf32>
    %33 = math.exp %32 : vector<1x16xf32>
    %cst_26 = arith.constant 3.000000e-01 : f32
    %cst_27 = arith.constant 2.000000e+00 : f32
    %34 = vector.broadcast %cst_26 : f32 to vector<1x16xf32>
    %35 = arith.maximumf %34, %33 : vector<1x16xf32>
    %36 = vector.broadcast %cst_27 : f32 to vector<1x16xf32>
    %37 = arith.minimumf %36, %35 : vector<1x16xf32>
    %38 = arith.mulf %37, %37 : vector<1x16xf32>
    %cst_28 = arith.constant -5.000000e-01 : f32
    %39 = vector.broadcast %cst_28 : f32 to vector<1x16xf32>
    %40 = arith.divf %39, %38 : vector<1x16xf32>
    %41 = vector.broadcast %40 : vector<1x16xf32> to vector<16x16xf32>
    %42 = arith.mulf %31, %41 : vector<16x16xf32>
    %43 = math.exp %42 : vector<16x16xf32>
    %cst_29 = arith.constant 0.00999999977 : f32
    %44 = vector.broadcast %cst_29 : f32 to vector<16x16xf32>
    %45 = arith.maximumf %43, %44 : vector<16x16xf32>
    %46 = vector.shape_cast %45 : vector<16x16xf32> to vector<1x16x16xf32>
    %47 = vector.shape_cast %2 : vector<16x32xf32> to vector<1x16x32xf32>
    %48 = vector.shape_cast %4 : vector<16x32xf32> to vector<1x16x32xf32>
    %49 = vector.shape_cast %6 : vector<16x32xf32> to vector<1x16x32xf32>
    "tpu.trace_start"() <{level = 10 : i32, message = "bqd,bkd->bqk"}> : () -> ()
    %cst_30 = arith.constant dense<0.000000e+00> : vector<1x16x16xf32>
    %50 = tpu.matmul %47, %48, %cst_30 {dimension_numbers = #tpu.dot_dimension_numbers<[2], [2], [1], [1], [0, 0, 0, 1, 1, 1], [0], [0]>, precision = #tpu.contract_precision<fp32>} : vector<1x16x32xf32>, vector<1x16x32xf32>, vector<1x16x16xf32> -> vector<1x16x16xf32>
    "tpu.trace_stop"() : () -> ()
    %cst_31 = arith.constant 0.176776692 : f32
    %51 = vector.broadcast %cst_31 : f32 to vector<1x16x16xf32>
    %52 = arith.mulf %50, %51 : vector<1x16x16xf32>
    %53 = tpu.iota {dimensions = array<i32: 0>} : vector<16x16xi32>
    %54 = tpu.iota {dimensions = array<i32: 1>} : vector<16x16xi32>
    %55 = arith.cmpi sle, %54, %53 : vector<16x16xi32>
    %56 = vector.shape_cast %55 : vector<16x16xi1> to vector<1x16x16xi1>
    %cst_32 = arith.constant -1.000000e+09 : f32
    %57 = vector.broadcast %cst_32 : f32 to vector<1x16x16xf32>
    %58 = arith.select %56, %52, %57 : vector<1x16x16xi1>, vector<1x16x16xf32>
    %cst_33 = arith.constant dense<0xFF800000> : vector<1x16xf32>
    %59 = vector.multi_reduction <maximumf>, %58, %cst_33 [2] : vector<1x16x16xf32> to vector<1x16xf32>
    %60 = vector.shape_cast %59 : vector<1x16xf32> to vector<1x16x1xf32>
    %cst_34 = arith.constant 0.000000e+00 : f32
    %61 = vector.broadcast %cst_34 : f32 to vector<1x16x1xf32>
    %62 = arith.maximumf %60, %61 : vector<1x16x1xf32>
    %63 = vector.shape_cast %58 : vector<1x16x16xf32> to vector<1x16x16x1xf32>
    %64 = vector.shape_cast %46 : vector<1x16x16xf32> to vector<1x16x1x16xf32>
    %65 = vector.shape_cast %46 : vector<1x16x16xf32> to vector<1x1x16x16xf32>
    %66 = vector.broadcast %64 : vector<1x16x1x16xf32> to vector<1x16x16x16xf32>
    %67 = vector.broadcast %65 : vector<1x1x16x16xf32> to vector<1x16x16x16xf32>
    %68 = arith.mulf %66, %67 : vector<1x16x16x16xf32>
    %69 = vector.broadcast %63 : vector<1x16x16x1xf32> to vector<1x16x16x16xf32>
    %70 = arith.mulf %69, %68 : vector<1x16x16x16xf32>
    %71 = vector.shape_cast %62 : vector<1x16x1xf32> to vector<1x16x1x1xf32>
    %72 = vector.broadcast %71 : vector<1x16x1x1xf32> to vector<1x16x16x16xf32>
    %73 = arith.subf %70, %72 : vector<1x16x16x16xf32>
    %74 = math.exp %73 : vector<1x16x16x16xf32>
    %cst_35 = arith.constant dense<0.000000e+00> : vector<1x16x16xf32>
    %75 = vector.multi_reduction <add>, %74, %cst_35 [2] : vector<1x16x16x16xf32> to vector<1x16x16xf32>
    %76 = vector.shape_cast %75 : vector<1x16x16xf32> to vector<1x16x1x16xf32>
    %c0_36 = arith.constant 0 : index
    %c0_37 = arith.constant 0 : index
    %77 = vector.load %arg11[%c0_36, %c0_37] : memref<1x16xf32, #tpu.memory_space<vmem>>, vector<1x16xf32>
    %78 = arith.negf %77 : vector<1x16xf32>
    %79 = math.exp %78 : vector<1x16xf32>
    %cst_38 = arith.constant 1.000000e+00 : f32
    %80 = vector.broadcast %cst_38 : f32 to vector<1x16xf32>
    %81 = arith.addf %80, %79 : vector<1x16xf32>
    %82 = arith.divf %80, %81 : vector<1x16xf32>
    %cst_39 = arith.constant 6.250000e-02 : f32
    %83 = vector.broadcast %cst_39 : f32 to vector<1x16xf32>
    %84 = arith.mulf %82, %83 : vector<1x16xf32>
    %85 = vector.shape_cast %84 : vector<1x16xf32> to vector<1x1x1x16xf32>
    %86 = vector.broadcast %85 : vector<1x1x1x16xf32> to vector<1x16x1x16xf32>
    %87 = arith.divf %86, %76 : vector<1x16x1x16xf32>
    %88 = vector.broadcast %87 : vector<1x16x1x16xf32> to vector<1x16x16x16xf32>
    %89 = arith.mulf %74, %88 : vector<1x16x16x16xf32>
    %cst_40 = arith.constant dense<0.000000e+00> : vector<1x16x16xf32>
    %90 = vector.multi_reduction <add>, %89, %cst_40 [3] : vector<1x16x16x16xf32> to vector<1x16x16xf32>
    "tpu.trace_start"() <{level = 10 : i32, message = "bqk,bkd->bqd"}> : () -> ()
    %cst_41 = arith.constant dense<0.000000e+00> : vector<1x16x32xf32>
    %91 = tpu.matmul %90, %49, %cst_41 {dimension_numbers = #tpu.dot_dimension_numbers<[2], [1], [1], [2], [0, 0, 0, 1, 1, 2], [0], [0]>, precision = #tpu.contract_precision<fp32>} : vector<1x16x16xf32>, vector<1x16x32xf32>, vector<1x16x32xf32> -> vector<1x16x32xf32>
    "tpu.trace_stop"() : () -> ()
    %92 = vector.shape_cast %91 : vector<1x16x32xf32> to vector<16x32xf32>
    %c0_42 = arith.constant 0 : index
    %c0_43 = arith.constant 0 : index
    %93 = vector.load %arg12[%c0_42, %c0_43] : memref<1x1xf32, #tpu.memory_space<vmem>>, vector<1x1xf32>
    %94 = arith.negf %93 : vector<1x1xf32>
    %95 = math.exp %94 : vector<1x1xf32>
    %cst_44 = arith.constant 1.000000e+00 : f32
    %96 = vector.broadcast %cst_44 : f32 to vector<1x1xf32>
    %97 = arith.addf %96, %95 : vector<1x1xf32>
    %98 = arith.divf %96, %97 : vector<1x1xf32>
    %99 = vector.broadcast %98 : vector<1x1xf32> to vector<16x32xf32>
    %100 = arith.mulf %99, %0 : vector<16x32xf32>
    %cst_45 = arith.constant 1.000000e+00 : f32
    %101 = vector.broadcast %cst_45 : f32 to vector<1x1xf32>
    %102 = arith.subf %101, %98 : vector<1x1xf32>
    %103 = vector.broadcast %102 : vector<1x1xf32> to vector<16x32xf32>
    %104 = arith.mulf %103, %92 : vector<16x32xf32>
    %105 = arith.addf %100, %104 : vector<16x32xf32>
    %cst_46 = arith.constant dense<0.000000e+00> : vector<16xf32>
    %106 = vector.multi_reduction <add>, %105, %cst_46 [1] : vector<16x32xf32> to vector<16xf32>
    %107 = vector.shape_cast %106 : vector<16xf32> to vector<16x1xf32>
    %cst_47 = arith.constant 3.200000e+01 : f32
    %108 = vector.broadcast %cst_47 : f32 to vector<16x1xf32>
    %109 = arith.divf %107, %108 : vector<16x1xf32>
    %110 = vector.broadcast %109 : vector<16x1xf32> to vector<16x32xf32>
    %111 = arith.subf %105, %110 : vector<16x32xf32>
    %112 = arith.mulf %111, %111 : vector<16x32xf32>
    %cst_48 = arith.constant dense<0.000000e+00> : vector<16xf32>
    %113 = vector.multi_reduction <add>, %112, %cst_48 [1] : vector<16x32xf32> to vector<16xf32>
    %114 = vector.shape_cast %113 : vector<16xf32> to vector<16x1xf32>
    %cst_49 = arith.constant 3.200000e+01 : f32
    %115 = vector.broadcast %cst_49 : f32 to vector<16x1xf32>
    %116 = arith.divf %114, %115 : vector<16x1xf32>
    %117 = vector.broadcast %109 : vector<16x1xf32> to vector<16x32xf32>
    %118 = arith.subf %105, %117 : vector<16x32xf32>
    %cst_50 = arith.constant 9.99999974E-6 : f32
    %119 = vector.broadcast %cst_50 : f32 to vector<16x1xf32>
    %120 = arith.addf %116, %119 : vector<16x1xf32>
    %121 = math.rsqrt %120 : vector<16x1xf32>
    %122 = vector.broadcast %121 : vector<16x1xf32> to vector<16x32xf32>
    %123 = arith.mulf %118, %122 : vector<16x32xf32>
    %c0_51 = arith.constant 0 : index
    %c0_52 = arith.constant 0 : index
    %124 = vector.load %arg13[%c0_51, %c0_52] : memref<1x32xf32, #tpu.memory_space<vmem>>, vector<1x32xf32>
    %125 = vector.broadcast %124 : vector<1x32xf32> to vector<16x32xf32>
    %126 = arith.mulf %123, %125 : vector<16x32xf32>
    %c0_53 = arith.constant 0 : index
    %c0_54 = arith.constant 0 : index
    %127 = vector.load %arg14[%c0_53, %c0_54] : memref<1x32xf32, #tpu.memory_space<vmem>>, vector<1x32xf32>
    %128 = vector.broadcast %127 : vector<1x32xf32> to vector<16x32xf32>
    %129 = arith.addf %126, %128 : vector<16x32xf32>
    %c0_55 = arith.constant 0 : index
    %c0_56 = arith.constant 0 : index
    %130 = vector.load %arg15[%c0_55, %c0_56] : memref<16x32xf32, #tpu.memory_space<vmem>>, vector<16x32xf32>
    tpu.vector_store %arg15[%c0_55, %c0_56], %129 {strides = array<i32>} : memref<16x32xf32, #tpu.memory_space<vmem>>, vector<16x32xf32>,
    return
  }
  func.func @transform_0(%arg0: i32) -> (i32, i32) {
    %c0_i32 = arith.constant 0 : i32
    %c0_i32_0 = arith.constant 0 : i32
    return %arg0, %c0_i32 : i32, i32
  }
  func.func @transform_1(%arg0: i32) -> (i32, i32) {
    %c0_i32 = arith.constant 0 : i32
    %c0_i32_0 = arith.constant 0 : i32
    %c0_i32_1 = arith.constant 0 : i32
    return %c0_i32, %c0_i32_0 : i32, i32
  }
  func.func @transform_2(%arg0: i32) -> (i32, i32) {
    %c0_i32 = arith.constant 0 : i32
    %c0_i32_0 = arith.constant 0 : i32
    %c0_i32_1 = arith.constant 0 : i32
    return %c0_i32, %c0_i32_0 : i32, i32
  }
  func.func @transform_3(%arg0: i32) -> (i32, i32) {
    %c0_i32 = arith.constant 0 : i32
    %c0_i32_0 = arith.constant 0 : i32
    %c0_i32_1 = arith.constant 0 : i32
    return %c0_i32, %c0_i32_0 : i32, i32
  }
  func.func @transform_4(%arg0: i32) -> (i32, i32) {
    %c0_i32 = arith.constant 0 : i32
    %c0_i32_0 = arith.constant 0 : i32
    %c0_i32_1 = arith.constant 0 : i32
    return %c0_i32, %c0_i32_0 : i32, i32
  }
  func.func @transform_5(%arg0: i32) -> (i32, i32) {
    %c0_i32 = arith.constant 0 : i32
    %c0_i32_0 = arith.constant 0 : i32
    %c0_i32_1 = arith.constant 0 : i32
    return %c0_i32, %c0_i32_0 : i32, i32
  }
  func.func @transform_6(%arg0: i32) -> (i32, i32) {
    %c0_i32 = arith.constant 0 : i32
    %c0_i32_0 = arith.constant 0 : i32
    %c0_i32_1 = arith.constant 0 : i32
    return %c0_i32, %c0_i32_0 : i32, i32
  }
  func.func @transform_7(%arg0: i32) -> (i32, i32) {
    %c0_i32 = arith.constant 0 : i32
    %c0_i32_0 = arith.constant 0 : i32
    %c0_i32_1 = arith.constant 0 : i32
    return %c0_i32, %c0_i32_0 : i32, i32
  }
  func.func @transform_8(%arg0: i32) -> (i32, i32) {
    %c0_i32 = arith.constant 0 : i32
    %c0_i32_0 = arith.constant 0 : i32
    %c0_i32_1 = arith.constant 0 : i32
    return %c0_i32, %c0_i32_0 : i32, i32
  }
  func.func @transform_9(%arg0: i32) -> (i32, i32) {
    %c0_i32 = arith.constant 0 : i32
    %c0_i32_0 = arith.constant 0 : i32
    %c0_i32_1 = arith.constant 0 : i32
    return %c0_i32, %c0_i32_0 : i32, i32
  }
  func.func @transform_10(%arg0: i32) -> (i32, i32) {
    %c0_i32 = arith.constant 0 : i32
    %c0_i32_0 = arith.constant 0 : i32
    %c0_i32_1 = arith.constant 0 : i32
    return %c0_i32, %c0_i32_0 : i32, i32
  }
  func.func @transform_11(%arg0: i32) -> (i32, i32) {
    %c0_i32 = arith.constant 0 : i32
    %c0_i32_0 = arith.constant 0 : i32
    %c0_i32_1 = arith.constant 0 : i32
    return %c0_i32, %c0_i32_0 : i32, i32
  }
  func.func @transform_12(%arg0: i32) -> (i32, i32) {
    %c0_i32 = arith.constant 0 : i32
    %c0_i32_0 = arith.constant 0 : i32
    %c0_i32_1 = arith.constant 0 : i32
    return %c0_i32, %c0_i32_0 : i32, i32
  }
  func.func @transform_13(%arg0: i32) -> (i32, i32) {
    %c0_i32 = arith.constant 0 : i32
    %c0_i32_0 = arith.constant 0 : i32
    %c0_i32_1 = arith.constant 0 : i32
    return %c0_i32, %c0_i32_0 : i32, i32
  }
  func.func @transform_14(%arg0: i32) -> (i32, i32) {
    %c0_i32 = arith.constant 0 : i32
    %c0_i32_0 = arith.constant 0 : i32
    return %arg0, %c0_i32 : i32, i32
  }
}

</mosaic_0001>

<bundles_post_ra>
// kernel: tpu_custom_call.1
= control target key start
LH: loop header
LB: loop body
LE: loop exit
PB: predicated region body
PF: predicated region fallthrough
CT: control target
= control target key end

     0   :  { %s5549_s0 = inlined_call_operand.vmem [shape: f32[32,32], index: 0, kind: input, shape index: {}]   ;;  %s5550_s1 = inlined_call_operand.vmem [shape: f32[32,32], index: 1, kind: input, shape index: {}]   ;;  %s5551_s2 = inlined_call_operand.hbm [shape: f32[32,32], index: 2, kind: input, shape index: {}]   ;;  %s5552_s3 = inlined_call_operand.hbm [shape: f32[32,32], index: 3, kind: input, shape index: {}]   ;;  %s5553_s4 = inlined_call_operand.hbm [shape: f32[32,64], index: 4, kind: input, shape index: {}]   ;;  %s5554_s5 = inlined_call_operand.vmem [shape: f32[1,64], index: 5, kind: input, shape index: {}]   ;;  %s5555_s6 = inlined_call_operand.vmem [shape: f32[16,64], index: 6, kind: input, shape index: {}]   ;;  %s5556_s7 = inlined_call_operand.vmem [shape: f32[64,16], index: 7, kind: input, shape index: {}]   ;;  %s5557_s8 = inlined_call_operand.vmem [shape: f32[1,16], index: 8, kind: input, shape index: {}]   ;;  %s5558_s9 = inlined_call_operand.vmem [shape: f32[1,16], index: 9, kind: input, shape index: {}]   ;;  %s5559_s10 = inlined_call_operand.vmem [shape: f32[1,16], index: 10, kind: input, shape index: {}]   ;;  %s5560_s11 = inlined_call_operand.<no memory space> [shape: f32[1,1], index: 11, kind: input, shape index: {}]   ;;  %s5561_s12 = inlined_call_operand.vmem [shape: f32[1,32], index: 12, kind: input, shape index: {}]   ;;  %s5562_s13 = inlined_call_operand.vmem [shape: f32[1,32], index: 13, kind: input, shape index: {}]   ;;  %s5563_s14 = inlined_call_operand.hbm [shape: f32[32,32], index: 14, kind: output, shape index: {}]  }
   0x1   :  { %5569 = sst [smem:[#allocation18_spill]] %s5551_s2  ;;  %v19_v0 = vstv %s5560_s11 }
   0x2   :  { %5570 = sst [smem:[#allocation19_spill]] %s5552_s3  ;;  %20 = vst [vmem:[#allocation2] sm:$0x1] %v19_v0 }
   0x3   :  { %21 = vsyncpa [#allocation4], 0 }
   0x4   :  { %22 = vsyncpa [#allocation7], 0 }
   0x5   :  { %23 = vsyncpa [#allocation5], 0 }
   0x6   :  { %25 = vsyncpa [#allocation5 + $0x1], 0  ;;  %s4012_s15 = smov 0   ;;  %s4014_s16 = smov 0  }
   0x7   :  { %s4016_s17 = smov 0   ;;  %s4018_s18 = smov 0  }
   0x8 LB: > { %5571 = sst [smem:[#allocation13_spill]] %s3911_s15  ;;  %s4033_s11 = sadd.s32 4294967295, %s3923_s18   ;;  %s3923_s18 = sphi %s4018_s18, %s5614_s18   ;;  %s3919_s17 = sphi %s4016_s17, %s5616_s17   ;;  %s3915_s16 = sphi %s4014_s16, %s5618_s16   ;;  %s3911_s15 = sphi %s4012_s15, %s5617_s15  }
   0x9   : > { %5572 = sst [smem:[#allocation14_spill]] %s3919_s17  ;;  %s3518_s19 = sadd.s32 4294967294, %s3923_s18  }
   0xa   : > { %s4037_s20 = sadd.s32 1, %s3923_s18   ;;  %s337_s21 = sadd.s32 1, %s3919_s17 }
   0xb   : > { %5573 = sst [smem:[#allocation15_spill]] %s4037_s20  ;;  %s334_s22 = ssub.s32 %s3923_s18, %s4037_s20 }
   0xc   : > { %p347_p0 = scmp.ne.s32.totalorder %s3919_s17, %s3915_s16  ;;  %p335_p1 = scmp.eq.s32.totalorder %s334_s22, 0 }
   0xd   : > { %p348_p2 = scmp.eq.s32.totalorder %s4033_s11, 1  ;;  %p353_p3 = scmp.ne.s32.totalorder %s3915_s16, %s3911_s15 }
   0xe   : > { %p354_p4 = scmp.eq.s32.totalorder %s3518_s19, 1  ;;  %p3519_p7 = scmp.ge.s32.totalorder %s3923_s18, 1 }
   0xf   : > { %s4048_s23 = scalar_select %p335_p1, %s3919_s17, %s337_s21  }
  0x10   : > { %p4050_p5 = por %p348_p2, %p347_p0  ;;  %p4054_p6 = por %p354_p4, %p353_p3 }
  0x11   : > { %5574 = sst [smem:[#allocation16_spill]] %s4048_s23  ;;  %p361_p8 = scmp.lt.s32.totalorder %s3923_s18, 3 }
  0x12   : > { %s5576_s25 = scalar_select %p4054_p6, 1, 0 }
  0x13   : > { %p3575_p9 = scmp.eq.s32.totalorder %s4033_s11, 0  ;;  %p4061_p10 = pnand %p3519_p7, %p361_p8 }
  0x14   : > { %5577 = sst [smem:[#allocation17_spill]] %s5576_s25  ;;  %s3925_s23 = smov [#allocation6]  }
  0x15   : > { %s5579_s3 = sld [smem:[#allocation19_spill]]  ;;  %p3561_p11 = pneg %p4061_p10 }
  0x16   : > { %s5580_s2 = sld [smem:[#allocation18_spill]]  ;;  %s391_s17 = sshll.u32 %s3925_s23, 4  ;;  %s392_s17 = int_to_ptr.vmem [resolvable:$true] %s391_s17 }
  0x17   : > { %p4075_p12 = pnand %p3575_p9, %p3561_p11  ;;  %s3926_s27 = smov 128  }
  0x18   : > { %s3927_s28 = smov 8   ;;  %s3929_s25 = smov [#allocation8]  }
  0x19   : > { %s405_s15 = sshll.u32 %s3929_s25, 4  ;;  %s406_s15 = int_to_ptr.vmem [resolvable:$true] %s405_s15 }
  0x1b   : > { %s389_s29 = sshll.u32 %s5579_s3, 4  ;;  %s3928_s3 = smov [#allocation3]   ;;  %s390_s29 = int_to_ptr.hbm [resolvable:$true] %s389_s29 }
  0x1c   : > { %s375_s21 = sshll.u32 %s5580_s2, 4  ;;  %s377_s20 = sshll.u32 %s3928_s3, 4  ;;  %s376_s21 = int_to_ptr.hbm [resolvable:$true] %s375_s21  ;;  %s378_s20 = int_to_ptr.vmem [resolvable:$true] %s377_s20 }
  0x1d   : > { %3567 = dma.hbm_to_vmem [thread:$0]  (!%p4075_p12), %s390_s29, 512, %s392_s17, [#allocation7], %s3926_s27, %s3926_s27, %s3927_s28  }
  0x1e   : > { %s403_s2 = sshll.u32 %s5553_s4, 4  ;;  %457 = sbr.rel (%p4061_p10) target bundleno = 1330 (0x532), region = 76  ;;  %s404_s2 = int_to_ptr.hbm [resolvable:$true] %s403_s2 }
  0x1f   : > { %3564 = dma.hbm_to_vmem [thread:$0]  (!%p4075_p12), %s376_s21, 512, %s378_s20, [#allocation4], %s3926_s27, %s3926_s27, %s3927_s28  }
  0x20   : > { %3570 = dma.hbm_to_vmem [thread:$0]  (!%p4075_p12), %s404_s2, 512, %s406_s15, [#allocation7], %s3926_s27, %s3926_s27, %s3927_s28  }
  0x23   : > { %3898 = dma.done.wait (%p3575_p9), [#allocation4], 512  }
  0x24   : > { %3900 = vsyncadd (%p3575_p9), [#allocation4], 4294966784 }
  0x25   : > { %3902 = dma.done.wait (%p3575_p9), [#allocation7], 1024  }
  0x26   : > { %3904 = vsyncadd (%p3575_p9), [#allocation7], 4294966272  ;;  %s3529_s3 = sshll.u32 %s4033_s11, 1  ;;  %vm527_vm0 = vcmask 261120   ;;  %v526_v1 = vld [vmem:[%s5550_s1 + $0x18] sm:$0xff]  ;;  %v525_v2 = vld [vmem:[%s5550_s1 + $0x10] sm:$0xff] }
  0x27   : > { %p515_p13 = scmp.lt.s32.totalorder %s3529_s3, 3  ;;  %v524_v3 = vld [vmem:[%s5550_s1 + $0x8] sm:$0xff]  ;;  %v4113_v4 = vand.u32 4294901760, %v526_v1  ;;  %v4115_v5 = vand.u32 4294901760, %v525_v2  ;;  %v523_v7 = vld [vmem:[%s5550_s1] sm:$0xff]  ;;  %v752_v24 = vld [vmem:[#allocation3 + $0x10] sm:$0xff] }
  0x28   : > { %v4117_v6 = vand.u32 4294901760, %v524_v3  ;;  %v4124_v10 = vand.u32 4294901760, %v523_v7  ;;  %v753_v17 = vld [vmem:[#allocation3 + $0x18] sm:$0xff]  ;;  %v4165_v33 = vand.u32 4294901760, %v752_v24  ;;  %v751_v34 = vld [vmem:[#allocation3 + $0x8] sm:$0xff]  ;;  %v750_v40 = vld [vmem:[#allocation3] sm:$0xff] }
  0x29   : > { %s5620_s3 = smov (!%p515_p13, %s3529_s3), 3  ;;  %3539 = vmatpush.msra.mxu2 %v4113_v4  ;;  %v584_v13 = vsub.f32 %v526_v1, %v4113_v4  ;;  %v590_v15 = vsub.f32 %v525_v2, %v4115_v5  ;;  %547 = vmatpush.msra.mxu0 %v4113_v4  ;;  %v4152_v27 = vand.u32 4294901760, %v753_v17  ;;  %v4181_v44 = vand.u32 4294901760, %v751_v34  ;;  %v973_v55 = vld [vmem:[#allocation6 + $0x18] sm:$0xff]  ;;  %v972_v61 = vld [vmem:[#allocation6 + $0x10] sm:$0xff]  ;;  %v971_v0 = vld [vmem:[#allocation6 + $0x8] sm:$0xff] }
  0x2a   : > { %s3530_s2 = sshll.u32 %s5620_s3, 3  ;;  %v4134_v16 = vsub.f32 %v524_v3, %v4117_v6  ;;  %v4138_v18 = vsub.f32 %v523_v7, %v4124_v10  ;;  %v810_v47 = vsub.f32 %v752_v24, %v4165_v33  ;;  %v4187_v48 = vand.u32 4294901760, %v750_v40  ;;  %s3538_s17 = sshll.u32 %s4033_s11, 4 }
  0x2b   : > { %s4102_s20 = scalar_lea.vmem %s5549_s0, %s3530_s2  ;;  %3540 = vmatpush.msra.mxu2 %v4115_v5  ;;  %v585_v20 = vand.u32 4294901760, %v584_v13  ;;  %v591_v22 = vand.u32 4294901760, %v590_v15  ;;  %549 = vmatpush.msra.mxu0 %v4115_v5  ;;  %v4179_v43 = vsub.f32 %v753_v17, %v4152_v27  ;;  %v4193_v50 = vsub.f32 %v751_v34, %v4181_v44  ;;  %s3421_s29 = scalar_lea.hbm %s5563_s14, %s3538_s17 }
  0x2c   : > { %v522_v8 = vld [vmem:[%s4102_s20 + $0x8] sm:$0xff]  ;;  %v521_v9 = vld [vmem:[%s4102_s20] sm:$0xff]  ;;  %v597_v23 = vand.u32 4294901760, %v4134_v16  ;;  %v603_v25 = vand.u32 4294901760, %v4138_v18  ;;  %v811_v51 = vand.u32 4294901760, %v810_v47  ;;  %v4198_v52 = vsub.f32 %v750_v40, %v4187_v48  ;;  %s3424_s22 = sshll.u32 %s3421_s29, 4  ;;  %s3425_s22 = int_to_ptr.hbm [resolvable:$true] %s3424_s22 }
  0x2d   : > { %v532_v11 = vsel %vm527_vm0, %v522_v8, 0  ;;  %v529_v12 = vsel %vm527_vm0, %v521_v9, 0  ;;  %3541 = vmatpush.msra.mxu2 %v4117_v6  ;;  %v586_v28 = vsub.f32 %v584_v13, %v585_v20  ;;  %v592_v30 = vsub.f32 %v590_v15, %v591_v22  ;;  %551 = vmatpush.msra.mxu0 %v4117_v6  ;;  %s3867_s27 = sshra.s32 %s3425_s22, 4  ;;  %s3873_s3 = scalar_lea.hbm %s5563_s14, 32  ;;  %s3868_s27 = int_to_ptr.hbm [resolvable:$true] %s3867_s27 }
  0x2e   : > { %v4130_v14 = vand.u32 4294901760, %v532_v11  ;;  %v4140_v19 = vand.u32 4294901760, %v529_v12  ;;  %v598_v31 = vsub.f32 %v4134_v16, %v597_v23  ;;  %v604_v38 = vsub.f32 %v4138_v18, %v603_v25  ;;  %s3869_s28 = scalar_lea.hbm %s3868_s27, 16  ;;  %p3874_p3 = scmp.lt.s32.totalorder %s3868_s27, %s5563_s14 }
  0x2f   : > { %3542 = vmatpush.msra.mxu2 %v4124_v10  ;;  %v587_v35 = vand.u32 4294901760, %v586_v28  ;;  %v593_v37 = vand.u32 4294901760, %v592_v30  ;;  %553 = vmatpush.msra.mxu0 %v4124_v10  ;;  %v805_v49 = vand.u32 4294901760, %v4179_v43  ;;  %v817_v54 = vand.u32 4294901760, %v4193_v50  ;;  %v1192_v28 = vld [vmem:[#allocation8 + $0x10] sm:$0xff]  ;;  %p3870_p0 = scmp.ne.s32.totalorder %s3868_s27, %s3869_s28  ;;  %p3875_p4 = scmp.lt.s32.totalorder %s3873_s3, %s3869_s28 }
  0x30   : > { %v4144_v21 = vsub.f32 %v532_v11, %v4130_v14  ;;  %v4150_v26 = vsub.f32 %v529_v12, %v4140_v19  ;;  %v599_v42 = vand.u32 4294901760, %v598_v31  ;;  %v605_v46 = vand.u32 4294901760, %v604_v38  ;;  %v1190_v38 = vld [vmem:[#allocation8] sm:$0xff] }
  0x31   : > { %630 = vmatpush.msrb.mxu2 %v584_v13  ;;  %699 = vmatpush.msrb.mxu0 %v585_v20  ;;  %v806_v53 = vsub.f32 %v4179_v43, %v805_v49  ;;  %v812_v56 = vsub.f32 %v810_v47, %v811_v51  ;;  %v823_v57 = vand.u32 4294901760, %v4198_v52  ;;  %v4213_v58 = vand.u32 4294901760, %v973_v55  ;;  %p3871_p1 = pnand %p3870_p0, %p4050_p5  ;;  %p3876_p7 = por %p3875_p4, %p3874_p3 }
  0x32   : > { %v4156_v29 = vand.u32 4294901760, %v4144_v21  ;;  %v4163_v32 = vand.u32 4294901760, %v4150_v26  ;;  %3543 = vmatpush.msra.mxu3 %v587_v35  ;;  %588 = vmatpush.msra.mxu1 %v587_v35  ;;  %v818_v60 = vsub.f32 %v4193_v50, %v817_v54  ;;  %v4229_v2 = vand.u32 4294901760, %v972_v61 }
  0x33   : > { %633 = vmatpush.msrb.mxu2 %v590_v15  ;;  %703 = vmatpush.msrb.mxu0 %v591_v22  ;;  %v807_v59 = vand.u32 4294901760, %v806_v53  ;;  %v813_v62 = vand.u32 4294901760, %v812_v56  ;;  %v824_v63 = vsub.f32 %v4198_v52, %v823_v57  ;;  %v4227_v1 = vsub.f32 %v973_v55, %v4213_v58  ;;  %p3872_p2 = pneg %p3871_p1 }
  0x34   : > { %v565_v36 = vsub.f32 %v4144_v21, %v4156_v29  ;;  %v557_v39 = vsub.f32 %v4150_v26, %v4163_v32  ;;  %3544 = vmatpush.msra.mxu3 %v593_v37  ;;  %594 = vmatpush.msra.mxu1 %v593_v37  ;;  %v819_v3 = vand.u32 4294901760, %v818_v60  ;;  %v4240_v8 = vsub.f32 %v972_v61, %v4229_v2 }
  0x35   : > { %636 = vmatpush.msrb.mxu2 %v4134_v16  ;;  %707 = vmatpush.msrb.mxu0 %v597_v23  ;;  %v1025_v7 = vand.u32 4294901760, %v4227_v1  ;;  %v1193_v16 = vld [vmem:[#allocation8 + $0x18] sm:$0xff]  ;;  %v4291_v31 = vand.u32 4294901760, %v1192_v28  ;;  %v4304_v40 = vand.u32 4294901760, %v1190_v38  ;;  %vm1422_vm1 = vcmask 523264   ;;  %p3877_p8 = pnand %p3876_p7, %p3872_p2 }
  0x36   : > { %v4176_v41 = vand.u32 4294901760, %v565_v36  ;;  %v4183_v45 = vand.u32 4294901760, %v557_v39  ;;  %3545 = vmatpush.msra.mxu3 %v599_v42  ;;  %600 = vmatpush.msra.mxu1 %v599_v42  ;;  %v1031_v12 = vand.u32 4294901760, %v4240_v8  ;;  %v4271_v22 = vand.u32 4294901760, %v1193_v16 }
  0x37   : > { %639 = vmatpush.msrb.mxu2 %v4138_v18  ;;  %711 = vmatpush.msrb.mxu0 %v603_v25  ;;  %v1026_v11 = vsub.f32 %v4227_v1, %v1025_v7  ;;  %v1254_v35 = vsub.f32 %v1192_v28, %v4291_v31  ;;  %v1429_v28 = vld [vmem:[%s5556_s7] sm:$0xff]  ;;  %vm1968_vm7 = vcmask 130048  }
  0x38   : > { %567 = vmatmul.f32.vlgmr.msra.gmra.mxu2 %v4176_v41  ;;  %559 = vmatmul.f32.vlgmr.msra.gmra.mxu0 %v4183_v45  ;;  %v1032_v18 = vsub.f32 %v4240_v8, %v1031_v12 }
  0x39   : > { %3546 = vmatpush.msra.mxu3 %v605_v46  ;;  %767 = vmatpush.msra.mxu2 %v4152_v27  ;;  %v1027_v17 = vand.u32 4294901760, %v1026_v11  ;;  %v1255_v42 = vand.u32 4294901760, %v1254_v35 }
  0x3a   : > { %612 = vmatmul.f32.vlgmr.msra.gmra.mxu3 %v4130_v14  ;;  %606 = vmatpush.msra.mxu1 %v605_v46  ;;  %v1033_v24 = vand.u32 4294901760, %v1032_v18 }
  0x3b   : > { %664 = vmatpush.msrb.mxu3 %v4113_v4  ;;  %608 = vmatmul.f32.vlgmr.msra.gmra.mxu1 %v4140_v19 }
  0x3c   : > { %769 = vmatpush.msra.mxu2 %v4165_v33  ;;  %734 = vmatpush.msrb.mxu1 %v4113_v4  ;;  %v970_v4 = vld [vmem:[#allocation6] sm:$0xff] }
  0x3d   : > { %666 = vmatpush.msrb.mxu3 %v4115_v5  ;;  %850 = vmatpush.msra.mxu0 %v4179_v43  ;;  %v4242_v9 = vand.u32 4294901760, %v970_v4  ;;  %v1266_v43 = vsub.f32 %v1190_v38, %v4304_v40 }
  0x3e   : > { %736 = vmatpush.msrb.mxu1 %v4115_v5  ;;  %771 = vmatpush.msra.mxu2 %v4181_v44  ;;  %v4233_v5 = vand.u32 4294901760, %v971_v0 }
  0x3f   : > { %668 = vmatpush.msrb.mxu3 %v4117_v6  ;;  %853 = vmatpush.msra.mxu0 %v810_v47  ;;  %v4256_v13 = vsub.f32 %v970_v4, %v4242_v9  ;;  %v1256_v47 = vsub.f32 %v1254_v35, %v1255_v42  ;;  %v1433_v4 = vld [vmem:[%s5556_s7 + $0x20] sm:$0xff] }
  0x40   : > { %642 = vmatmul.f32.vlgmr.msrb.gmra.mxu2 %v4150_v26  ;;  %738 = vmatpush.msrb.mxu1 %v4117_v6  ;;  %v825_v6 = vand.u32 4294901760, %v824_v63 }
  0x41   : > { %670 = vmatpush.msrb.mxu3 %v4124_v10  ;;  %713 = vmatmul.f32.vlgmr.msrb.gmra.mxu0 %v4140_v19  ;;  %v1043_v20 = vand.u32 4294901760, %v4256_v13 }
  0x42   : > { %674 = vmatmul.f32.vlgmr.msrb.gmra.mxu3 %v4163_v32  ;;  %740 = vmatpush.msrb.mxu1 %v4124_v10  ;;  %v4246_v10 = vsub.f32 %v971_v0, %v4233_v5 }
  0x43   : > { %808 = vmatpush.msra.mxu3 %v807_v59  ;;  %773 = vmatpush.msra.mxu2 %v4187_v48  ;;  %v1044_v25 = vsub.f32 %v4256_v13, %v1043_v20 }
  0x44   : > { %742 = vmatmul.f32.vlgmr.msrb.gmra.mxu1 %v4140_v19  ;;  %856 = vmatpush.msra.mxu0 %v4193_v50  ;;  %v1037_v15 = vand.u32 4294901760, %v4246_v10 }
  0x45   : > { %919 = vmatpush.msrb.mxu2 %v805_v49  ;;  %814 = vmatpush.msra.mxu3 %v813_v62  ;;  %v1045_v34 = vand.u32 4294901760, %v1044_v25  ;;  %v1434_v62 = vld [vmem:[%s5556_s7 + $0x28] sm:$0xff] }
  0x46   : > { %884 = vmatpush.msra.mxu1 %v4152_v27  ;;  %859 = vmatpush.msra.mxu0 %v4198_v52  ;;  %v1038_v23 = vsub.f32 %v4246_v10, %v1037_v15 }
  0x47   : > { %820 = vmatpush.msra.mxu3 %v819_v3  ;;  %923 = vmatpush.msrb.mxu2 %v811_v51  ;;  %v1257_v51 = vand.u32 4294901760, %v1256_v47 }
  0x48   : > { %647 = vmatmul.f32.gmra.mxu2 %v4144_v21  ;;  %886 = vmatpush.msra.mxu1 %v4165_v33  ;;  %v1039_v30 = vand.u32 4294901760, %v1038_v23 }
  0x49   : > { %826 = vmatpush.msra.mxu3 %v825_v6  ;;  %717 = vmatmul.f32.gmra.mxu0 %v4130_v14  ;;  %v4399_v6 = vand.u32 4294901760, %v1433_v4 }
  0x4a   : > { %680 = vmatmul.f32.gmra.mxu3 %v4156_v29  ;;  %927 = vmatpush.msrb.mxu2 %v817_v54 }
  0x4b   : > { %954 = vmatpush.msrb.mxu3 %v4152_v27  ;;  %888 = vmatpush.msra.mxu1 %v4181_v44  ;;  %v4287_v27 = vsub.f32 %v1193_v16, %v4271_v22  ;;  %v1431_v16 = vld [vmem:[%s5556_s7 + $0x10] sm:$0xff] }
  0x4c   : > { %746 = vmatmul.f32.gmra.mxu1 %v4130_v14  ;;  %931 = vmatpush.msrb.mxu2 %v823_v57  ;;  %v4423_v18 = vand.u32 4294901760, %v1431_v16 }
  0x4d   : > { %956 = vmatpush.msrb.mxu3 %v4165_v33  ;;  %890 = vmatpush.msra.mxu1 %v4187_v48  ;;  %v1191_v33 = vld [vmem:[#allocation8 + $0x8] sm:$0xff]  ;;  %v1249_v37 = vand.u32 4294901760, %v4287_v27 }
  0x4e   : > { %987 = vmatpush.msrb.mxu0 %v4213_v58  ;;  %v4297_v36 = vand.u32 4294901760, %v1191_v33  ;;  %v4432_v23 = vsub.f32 %v1431_v16, %v4423_v18 }
  0x4f   : > { %958 = vmatpush.msrb.mxu3 %v4181_v44  ;;  %1028 = vmatpush.msrb.mxu1 %v1027_v17  ;;  %v1250_v44 = vsub.f32 %v4287_v27, %v1249_v37 }
  0x50   : > { %779 = vmatmul.f32.vlgmr.msra.gmra.mxu2 %v4183_v45  ;;  %989 = vmatpush.msrb.mxu0 %v4229_v2  ;;  %v1260_v39 = vsub.f32 %v1191_v33, %v4297_v36 }
  0x51   : > { %1070 = vmatpush.msra.mxu2 %v4227_v1  ;;  %862 = vmatmul.f32.vlgmr.msra.gmra.mxu0 %v4150_v26  ;;  %v1251_v49 = vand.u32 4294901760, %v1250_v44  ;;  %v4388_v1 = vand.u32 4294901760, %v1434_v62 }
  0x52   : > { %960 = vmatpush.msrb.mxu3 %v4187_v48  ;;  %991 = vmatpush.msrb.mxu0 %v4233_v5  ;;  %v1261_v46 = vand.u32 4294901760, %v1260_v39  ;;  %v1267_v48 = vand.u32 4294901760, %v1266_v43 }
  0x53   : > { %828 = vmatmul.f32.vlgmr.msra.gmra.mxu3 %v4140_v19  ;;  %1073 = vmatpush.msra.mxu2 %v4240_v8 }
  0x54   : > { %1104 = vmatpush.msra.mxu3 %v4213_v58  ;;  %894 = vmatmul.f32.vlgmr.msra.gmra.mxu1 %v4163_v32  ;;  %v1262_v50 = vsub.f32 %v1260_v39, %v1261_v46  ;;  %v1268_v52 = vsub.f32 %v1266_v43, %v1267_v48 }
  0x55   : > { %1034 = vmatpush.msrb.mxu1 %v1033_v24  ;;  %1076 = vmatpush.msra.mxu2 %v4246_v10 }
  0x56   : > { %1106 = vmatpush.msra.mxu3 %v4229_v2  ;;  %993 = vmatpush.msrb.mxu0 %v4242_v9  ;;  %v1263_v53 = vand.u32 4294901760, %v1262_v50  ;;  %v1269_v54 = vand.u32 4294901760, %v1268_v52 }
  0x57   : > { %1040 = vmatpush.msrb.mxu1 %v1039_v30  ;;  %1079 = vmatpush.msra.mxu2 %v4256_v13 }
  0x58   : > { %787 = vmatmul.f32.gmra.mxu2 %v4176_v41  ;;  %1108 = vmatpush.msra.mxu3 %v4233_v5 }
  0x59   : > { %867 = vmatmul.f32.gmra.mxu0 %v4144_v21  ;;  %1046 = vmatpush.msrb.mxu1 %v1045_v34 }
  0x5a   : > { %1110 = vmatpush.msra.mxu3 %v4242_v9  ;;  %1139 = vmatpush.msra.mxu0 %v1025_v7 }
  0x5b   : > { %832 = vmatmul.f32.gmra.mxu3 %v4130_v14  ;;  %1174 = vmatpush.msra.mxu1 %v4213_v58 }
  0x5c   : > { %900 = vmatmul.f32.gmra.mxu1 %v4156_v29  ;;  %1143 = vmatpush.msra.mxu0 %v1031_v12  ;;  %v4408_v12 = vsub.f32 %v1433_v4, %v4399_v6  ;;  %v1524_v4 = vand.u32 4294901760, %v4432_v23 }
  0x5d   : > { %1176 = vmatpush.msra.mxu1 %v4229_v2 }
  0x5e   : > { %1147 = vmatpush.msra.mxu0 %v1037_v15 }
  0x5f   : > { %1178 = vmatpush.msra.mxu1 %v4233_v5  ;;  %v4397_v5 = vsub.f32 %v1434_v62, %v4388_v1 }
  0x60   : > { %933 = vmatmul.f32.vlgmr.msrb.gmra.mxu2 %v4140_v19  ;;  %1151 = vmatpush.msra.mxu0 %v1043_v20  ;;  %v1430_v20 = vld [vmem:[%s5556_s7 + $0x8] sm:$0xff] }
  0x61   : > { %1211 = vmatpush.msrb.mxu2 %v4271_v22  ;;  %999 = vmatmul.f32.vlgmr.msrb.gmra.mxu0 %v4183_v45  ;;  %v4434_v24 = vand.u32 4294901760, %v1430_v20 }
  0x62   : > { %1180 = vmatpush.msra.mxu1 %v4242_v9  ;;  %1294 = vmatpush.msrb.mxu0 %v4287_v27  ;;  %v1432_v9 = vld [vmem:[%s5556_s7 + $0x18] sm:$0xff] }
  0x63   : > { %1213 = vmatpush.msrb.mxu2 %v4291_v31  ;;  %962 = vmatmul.f32.vlgmr.msrb.gmra.mxu3 %v4140_v19  ;;  %v4410_v13 = vand.u32 4294901760, %v1432_v9  ;;  %v4443_v30 = vsub.f32 %v1430_v20, %v4434_v24 }
  0x64   : > { %1252 = vmatpush.msrb.mxu3 %v1251_v49  ;;  %1048 = vmatmul.f32.vlgmr.msrb.gmra.mxu1 %v4140_v19 }
  0x65   : > { %1215 = vmatpush.msrb.mxu2 %v4297_v36  ;;  %1328 = vmatpush.msrb.mxu1 %v4271_v22  ;;  %v4421_v17 = vsub.f32 %v1432_v9, %v4410_v13 }
  0x66   : > { %1258 = vmatpush.msrb.mxu3 %v1257_v51  ;;  %1297 = vmatpush.msrb.mxu0 %v1254_v35 }
  0x67   : > { %1217 = vmatpush.msrb.mxu2 %v4304_v40  ;;  %1330 = vmatpush.msrb.mxu1 %v4291_v31 }
  0x68   : > { %937 = vmatmul.f32.gmra.mxu2 %v4130_v14  ;;  %1264 = vmatpush.msrb.mxu3 %v1263_v53 }
  0x69   : > { %1007 = vmatmul.f32.gmra.mxu0 %v4176_v41  ;;  %1332 = vmatpush.msrb.mxu1 %v4297_v36 }
  0x6a   : > { %1270 = vmatpush.msrb.mxu3 %v1269_v54  ;;  %1300 = vmatpush.msrb.mxu0 %v1260_v39 }
  0x6b   : > { %966 = vmatmul.f32.gmra.mxu3 %v4130_v14  ;;  %1334 = vmatpush.msrb.mxu1 %v4304_v40 }
  0x6c   : > { %1052 = vmatmul.f32.gmra.mxu1 %v4130_v14  ;;  %1303 = vmatpush.msrb.mxu0 %v1266_v43 }
  0x70   : > { %1082 = vmatmul.f32.vlgmr.msra.gmra.mxu2 %v4150_v26 }
  0x71   : > { %1363 = vmatpush.msra.mxu2 %v1249_v37  ;;  %1153 = vmatmul.f32.vlgmr.msra.gmra.mxu0 %v4140_v19 }
  0x73   : > { %1367 = vmatpush.msra.mxu2 %v1255_v42  ;;  %1114 = vmatmul.f32.vlgmr.msra.gmra.mxu3 %v4163_v32 }
  0x74   : > { %1398 = vmatpush.msra.mxu3 %v4271_v22  ;;  %1182 = vmatmul.f32.vlgmr.msra.gmra.mxu1 %v4140_v19 }
  0x75   : > { %1371 = vmatpush.msra.mxu2 %v1261_v46 }
  0x76   : > { %1400 = vmatpush.msra.mxu3 %v4291_v31  ;;  %v4445_v31 = vand.u32 4294901760, %v1429_v28 }
  0x77   : > { %1375 = vmatpush.msra.mxu2 %v1267_v48 }
  0x78   : > { %1087 = vmatmul.f32.gmra.mxu2 %v4144_v21  ;;  %1402 = vmatpush.msra.mxu3 %v4297_v36  ;;  %v4451_v36 = vsub.f32 %v1429_v28, %v4445_v31 }
  0x79   : > { %1157 = vmatmul.f32.gmra.mxu0 %v4130_v14 }
  0x7a   : > { %1404 = vmatpush.msra.mxu3 %v4304_v40 }
  0x7b   : > { %1120 = vmatmul.f32.gmra.mxu3 %v4156_v29 }
  0x7c   : > { %1186 = vmatmul.f32.gmra.mxu1 %v4130_v14 }
  0x80   : > { %1223 = vmatmul.f32.vlgmr.msrb.gmra.mxu2 %v4183_v45 }
  0x81   : > { %1306 = vmatmul.f32.vlgmr.msrb.gmra.mxu0 %v4150_v26 }
  0x83   : > { %1272 = vmatmul.f32.vlgmr.msrb.gmra.mxu3 %v4140_v19 }
  0x84   : > { %1338 = vmatmul.f32.vlgmr.msrb.gmra.mxu1 %v4163_v32 }
  0x88   : > { %1231 = vmatmul.f32.gmra.mxu2 %v4176_v41 }
  0x89   : > { %1311 = vmatmul.f32.gmra.mxu0 %v4144_v21 }
  0x8b   : > { %1276 = vmatmul.f32.gmra.mxu3 %v4130_v14 }
  0x8c   : > { %1344 = vmatmul.f32.gmra.mxu1 %v4156_v29  ;;  %v1436_v29 = vld [vmem:[%s5556_s7 + $0x38] sm:$0xff] }
  0x8d   : > { %v4369_v60 = vand.u32 4294901760, %v1436_v29 }
  0x8f   : > { %1601 = vmatpush.msrb.mxu3 %v4369_v60  ;;  %1452 = vmatpush.msra.mxu0 %v4369_v60 }
  0x90   : > { %1377 = vmatmul.f32.vlgmr.msra.gmra.mxu2 %v4140_v19 }
  0x93   : > { %1406 = vmatmul.f32.vlgmr.msra.gmra.mxu3 %v4140_v19  ;;  %v4375_v19 = vsub.f32 %v1436_v29, %v4369_v60 }
  0x95   : > { %1559 = vmatpush.msrb.mxu2 %v4375_v19  ;;  %v1494_v49 = vand.u32 4294901760, %v4375_v19 }
  0x97   : > { %v1495_v52 = vsub.f32 %v4375_v19, %v1494_v49 }
  0x98   : > { %1381 = vmatmul.f32.gmra.mxu2 %v4130_v14 }
  0x9b   : > { %1410 = vmatmul.f32.gmra.mxu3 %v4130_v14  ;;  %v1435_v14 = vld [vmem:[%s5556_s7 + $0x30] sm:$0xff] }
  0x9c   : > { %v4377_v61 = vand.u32 4294901760, %v1435_v14 }
  0x9e   : > { %v4386_v0 = vsub.f32 %v1435_v14, %v4377_v61  ;;  %1603 = vmatpush.msrb.mxu3 %v4377_v61  ;;  %1454 = vmatpush.msra.mxu0 %v4377_v61 }
  0xa0   : > { %1562 = vmatpush.msrb.mxu2 %v4386_v0  ;;  %1605 = vmatpush.msrb.mxu3 %v4388_v1  ;;  %v1500_v53 = vand.u32 4294901760, %v4386_v0 }
  0xa1   : > { %1456 = vmatpush.msra.mxu0 %v4388_v1 }
  0xa2   : > { %1565 = vmatpush.msrb.mxu2 %v4397_v5  ;;  %1607 = vmatpush.msrb.mxu3 %v4399_v6 }
  0xa3   : > { %1458 = vmatpush.msra.mxu0 %v4399_v6 }
  0xa4   : > { %1568 = vmatpush.msrb.mxu2 %v4408_v12  ;;  %1609 = vmatpush.msrb.mxu3 %v4410_v13 }
  0xa5   : > { %1460 = vmatpush.msra.mxu0 %v4410_v13 }
  0xa6   : > { %1571 = vmatpush.msrb.mxu2 %v4421_v17  ;;  %1611 = vmatpush.msrb.mxu3 %v4423_v18 }
  0xa7   : > { %1462 = vmatpush.msra.mxu0 %v4423_v18 }
  0xa8   : > { %1574 = vmatpush.msrb.mxu2 %v4432_v23  ;;  %1613 = vmatpush.msrb.mxu3 %v4434_v24 }
  0xa9   : > { %1464 = vmatpush.msra.mxu0 %v4434_v24 }
  0xaa   : > { %1577 = vmatpush.msrb.mxu2 %v4443_v30  ;;  %1615 = vmatpush.msrb.mxu3 %v4445_v31 }
  0xab   : > { %1466 = vmatpush.msra.mxu0 %v4445_v31 }
  0xac   : > { %1580 = vmatpush.msrb.mxu2 %v4451_v36 }
  0xad   : > { %1640 = vmatpush.msrb.mxu0 %v1494_v49 }
  0xaf   : > { %1644 = vmatpush.msrb.mxu0 %v1500_v53 }
  0xb5   : > { %v560_v26 = vpop.f32.mrf.mxu0 }
  0xb8   : > { %v609_v55 = vpop.f32.mrf.mxu1 }
  0xb9   : > { %v610_v32 = vadd.f32 %v609_v55, %v560_v26  ;;  %v1496_v55 = vand.u32 4294901760, %v1495_v52 }
  0xbb   : > { %v568_v45 = vpop.f32.mrf.mxu2  ;;  %1497 = vmatpush.msra.mxu1 %v1496_v55 }
  0xbd   : > { %v613_v56 = vpop.f32.mrf.mxu3 }
  0xbe   : > { %v614_v41 = vadd.f32 %v613_v56, %v568_v45  ;;  %v714_v57 = vpop.f32.mrf.mxu0  ;;  %v1506_v56 = vand.u32 4294901760, %v4397_v5 }
  0xc0   : > { %v1507_v29 = vsub.f32 %v4397_v5, %v1506_v56  ;;  %1648 = vmatpush.msrb.mxu0 %v1506_v56 }
  0xc1   : > { %v743_v59 = vpop.f32.mrf.mxu1 }
  0xc2   : > { %v1508_v14 = vand.u32 4294901760, %v1507_v29 }
  0xc3   : > { %v643_v21 = vpop.f32.mrf.mxu2 }
  0xc4   : > { %v644_v58 = vadd.f32 %v643_v21, %v610_v32  ;;  %v1501_v32 = vsub.f32 %v4386_v0, %v1500_v53  ;;  %v1518_v0 = vand.u32 4294901760, %v4421_v17  ;;  %v3635_v53 = vld [vmem:[%s5554_s5] ss:$0 sm:$0xff] }
  0xc5   : > { %v675_v63 = vpop.f32.mrf.mxu3 }
  0xc6   : > { %v676_v2 = vadd.f32 %v675_v63, %v644_v58  ;;  %v718_v3 = vpop.f32.mrf.mxu0  ;;  %v1502_v21 = vand.u32 4294901760, %v1501_v32  ;;  %v1512_v58 = vand.u32 4294901760, %v4408_v12 }
  0xc8   : > { %v715_v8 = vadd.f32 %v714_v57, %v676_v2  ;;  %1503 = vmatpush.msra.mxu1 %v1502_v21  ;;  %v1513_v19 = vsub.f32 %v4408_v12, %v1512_v58  ;;  %1652 = vmatpush.msrb.mxu0 %v1512_v58 }
  0xc9   : > { %v747_v11 = vpop.f32.mrf.mxu1 }
  0xca   : > { %v4413_v15 = vadd.f32 %v743_v59, %v715_v8  ;;  %1509 = vmatpush.msra.mxu1 %v1508_v14  ;;  %1656 = vmatpush.msrb.mxu0 %v1518_v0 }
  0xcb   : > { %v648_v7 = vpop.f32.mrf.mxu2 }
  0xcc   : > { %v649_v10 = vadd.f32 %v648_v7, %v614_v41  ;;  %v1519_v7 = vsub.f32 %v4421_v17, %v1518_v0  ;;  %1660 = vmatpush.msrb.mxu0 %v1524_v4 }
  0xcd   : > { %v681_v22 = vpop.f32.mrf.mxu3 }
  0xce   : > { %v682_v25 = vadd.f32 %v681_v22, %v649_v10  ;;  %v863_v27 = vpop.f32.mrf.mxu0  ;;  %v1525_v10 = vsub.f32 %v4432_v23, %v1524_v4  ;;  %v1520_v16 = vand.u32 4294901760, %v1519_v7 }
  0xd0   : > { %v719_v33 = vadd.f32 %v718_v3, %v682_v25  ;;  %v1514_v3 = vand.u32 4294901760, %v1513_v19  ;;  %v1526_v22 = vand.u32 4294901760, %v1525_v10 }
  0xd1   : > { %v895_v35 = vpop.f32.mrf.mxu1 }
  0xd2   : > { %v4454_v37 = vadd.f32 %v747_v11, %v719_v33  ;;  %1515 = vmatpush.msra.mxu1 %v1514_v3  ;;  %v1530_v11 = vand.u32 4294901760, %v4443_v30 }
  0xd3   : > { %v780_v34 = vpop.f32.mrf.mxu2 }
  0xd4   : > { %v1531_v25 = vsub.f32 %v4443_v30, %v1530_v11  ;;  %1521 = vmatpush.msra.mxu1 %v1520_v16  ;;  %1664 = vmatpush.msrb.mxu0 %v1530_v11 }
  0xd6   : > { %v829_v38 = vpop.f32.mrf.mxu3  ;;  %v868_v39 = vpop.f32.mrf.mxu0  ;;  %1527 = vmatpush.msra.mxu1 %v1526_v22  ;;  %v1756_v22 = vsel %vm527_vm0, %v4413_v15, 0 }
  0xd7   : > { %v830_v42 = vadd.f32 %v829_v38, %v780_v34  ;;  %v1532_v34 = vand.u32 4294901760, %v1531_v25 }
  0xd9   : > { %v901_v43 = vpop.f32.mrf.mxu1  ;;  %v864_v46 = vadd.f32 %v863_v27, %v830_v42  ;;  %v1536_v27 = vand.u32 4294901760, %v4451_v36  ;;  %1533 = vmatpush.msra.mxu1 %v1532_v34 }
  0xdb   : > { %v788_v40 = vpop.f32.mrf.mxu2  ;;  %v896_v50 = vadd.f32 %v895_v35, %v864_v46  ;;  %v1537_v35 = vsub.f32 %v4451_v36, %v1536_v27  ;;  %1668 = vmatpush.msrb.mxu0 %v1536_v27 }
  0xdd   : > { %v1538_v30 = vand.u32 4294901760, %v1537_v35 }
  0xde   : > { %v833_v44 = vpop.f32.mrf.mxu3  ;;  %v4458_v48 = vpop.f32.mrf.mxu0 }
  0xdf   : > { %v834_v51 = vadd.f32 %v833_v44, %v788_v40  ;;  %1539 = vmatpush.msra.mxu1 %v1538_v30  ;;  %v4527_v30 = vand.u32 4294901760, %v1756_v22 }
  0xe1   : > { %v4463_v45 = vpop.f32.mrf.mxu1  ;;  %v869_v41 = vadd.f32 %v868_v39, %v834_v51  ;;  %1687 = vmatpush.msrb.mxu1 %v4369_v60 }
  0xe2   : > { %v1050_v58 = vadd.f32 %v4463_v45, %v4458_v48 }
  0xe3   : > { %v934_v47 = vpop.f32.mrf.mxu2  ;;  %v902_v62 = vadd.f32 %v901_v43, %v869_v41  ;;  %1689 = vmatpush.msrb.mxu1 %v4377_v61 }
  0xe4   : > { %v935_v54 = vadd.f32 %v934_v47, %v896_v50 }
  0xe5   : > { %1691 = vmatpush.msrb.mxu1 %v4388_v1 }
  0xe6   : > { %v963_v26 = vpop.f32.mrf.mxu3  ;;  %v4472_v2 = vpop.f32.mrf.mxu0 }
  0xe7   : > { %v964_v57 = vadd.f32 %v963_v26, %v935_v54  ;;  %1693 = vmatpush.msrb.mxu1 %v4399_v6 }
  0xe9   : > { %v1762_v63 = vsel %vm527_vm0, %v964_v57, 0  ;;  %v1053_v20 = vpop.f32.mrf.mxu1  ;;  %1695 = vmatpush.msrb.mxu1 %v4410_v13 }
  0xea   : > { %v4476_v8 = vand.u32 4294901760, %v1762_v63 }
  0xeb   : > { %v938_v59 = vpop.f32.mrf.mxu2  ;;  %1697 = vmatpush.msrb.mxu1 %v4423_v18  ;;  %v1054_v18 = vadd.f32 %v1053_v20, %v4472_v2  ;;  %v1416_v2 = vld [vmem:[%s5555_s6] sm:$0xff] }
  0xec   : > { %v939_v5 = vadd.f32 %v938_v59, %v902_v62  ;;  %v4484_v33 = vsub.f32 %v1762_v63, %v4476_v8 }
  0xed   : > { %1699 = vmatpush.msrb.mxu1 %v4434_v24 }
  0xee   : > { %v967_v9 = vpop.f32.mrf.mxu3  ;;  %v1154_v42 = vpop.f32.mrf.mxu0  ;;  %v1824_v43 = vand.u32 4294901760, %v4484_v33 }
  0xef   : > { %v968_v12 = vadd.f32 %v967_v9, %v939_v5  ;;  %1701 = vmatpush.msrb.mxu1 %v4445_v31 }
  0xf0   : > { %v1825_v49 = vsub.f32 %v4484_v33, %v1824_v43 }
  0xf1   : > { %v1765_v17 = vsel %vm527_vm0, %v968_v12, 0  ;;  %v1183_v46 = vpop.f32.mrf.mxu1 }
  0xf2   : > { %v4486_v23 = vand.u32 4294901760, %v1765_v17  ;;  %v1826_v51 = vand.u32 4294901760, %v1825_v49  ;;  %v1786_v49 = vsub.f32 %v1756_v22, %v4527_v30 }
  0xf3   : > { %v1083_v28 = vpop.f32.mrf.mxu2 }
  0xf4   : > { %v4490_v38 = vsub.f32 %v1765_v17, %v4486_v23  ;;  %1782 = vmatpush.xpose.msra.mxu2 %v4486_v23  ;;  %v1084_v63 = vadd.f32 %v1083_v28, %v1050_v58  ;;  %v1723_v58 = vld [vmem:[%s5558_s9] sm:$0x1] }
  0xf6   : > { %v1818_v39 = vand.u32 4294901760, %v4490_v38  ;;  %v1115_v40 = vpop.f32.mrf.mxu3  ;;  %v1158_v52 = vpop.f32.mrf.mxu0 }
  0xf7   : > { %v1116_v4 = vadd.f32 %v1115_v40, %v1084_v63  ;;  %v1417_v40 = vld [vmem:[%s5555_s6 + $0x8] sm:$0xff] }
  0xf8   : > { %1784 = vmatpush.xpose.msra.mxu2 %v4476_v8  ;;  %v1819_v36 = vsub.f32 %v4490_v38, %v1818_v39 }
  0xf9   : > { %v1187_v54 = vpop.f32.mrf.mxu1  ;;  %v1155_v48 = vadd.f32 %v1154_v42, %v1116_v4 }
  0xfa   : > { %v1820_v47 = vand.u32 4294901760, %v1819_v36 }
  0xfb   : > { %v1088_v44 = vpop.f32.mrf.mxu2  ;;  %v1184_v25 = vadd.f32 %v1183_v46, %v1155_v48 }
  0xfc   : > { %1821 = vmatpush.xpose.msra.mxu3 %v1820_v47  ;;  %v1089_v14 = vadd.f32 %v1088_v44, %v1054_v18 }
  0xfd   : > { %v4534_v42 = vand.u32 4294901760, %v1184_v25 }
  0xfe   : > { %v1121_v50 = vpop.f32.mrf.mxu3  ;;  %v1307_v6 = vpop.f32.mrf.mxu0 }
  0xff   : > { %v1122_v0 = vadd.f32 %v1121_v50, %v1089_v14 }
 0x100   : > { %1827 = vmatpush.xpose.msra.mxu3 %v1826_v51  ;;  %v1759_v51 = vsel %vm527_vm0, %v4454_v37, 0 }
 0x101   : > { %v1339_v32 = vpop.f32.mrf.mxu1  ;;  %v1159_v9 = vadd.f32 %v1158_v52, %v1122_v0  ;;  %v3171_v52 = vsub.f32 %v1184_v25, %v4534_v42  ;;  %v1793_v37 = vand.u32 4294901760, %v1759_v51 }
 0x103   : > { %v1224_v60 = vpop.f32.mrf.mxu2  ;;  %v1188_v16 = vadd.f32 %v1187_v54, %v1159_v9 }
 0x104   : > { %v1225_v1 = vadd.f32 %v3635_v53, %v1224_v60 }
 0x105   : > { %v4524_v34 = vand.u32 4294901760, %v1188_v16 }
 0x106   : > { %v1273_v61 = vpop.f32.mrf.mxu3  ;;  %v1312_v24 = vpop.f32.mrf.mxu0 }
 0x107   : > { %v1274_v55 = vadd.f32 %v1273_v61, %v1225_v1  ;;  %v4538_v46 = vsub.f32 %v1188_v16, %v4524_v34 }
 0x109   : > { %v1308_v41 = vadd.f32 %v1307_v6, %v1274_v55  ;;  %v1345_v3 = vpop.f32.mrf.mxu1 }
 0x10b   : > { %v1232_v26 = vpop.f32.mrf.mxu2  ;;  %v1340_v21 = vadd.f32 %v1339_v32, %v1308_v41 }
 0x10c   : > { %v1233_v13 = vadd.f32 %v3635_v53, %v1232_v26  ;;  %v1787_v26 = vand.u32 4294901760, %v1786_v49 }
 0x10e   : > { %v1277_v56 = vpop.f32.mrf.mxu3 }
 0x10f   : > { %v1278_v29 = vadd.f32 %v1277_v56, %v1233_v13  ;;  %v1794_v56 = vsub.f32 %v1759_v51, %v1793_v37  ;;  %v1788_v13 = vsub.f32 %v1786_v49, %v1787_v26 }
 0x111   : > { %v1313_v19 = vadd.f32 %v1312_v24, %v1278_v29  ;;  %v1724_v24 = vmul.f32 1.442695, %v1723_v58 }
 0x113   : > { %v1378_v57 = vpop.f32.mrf.mxu2  ;;  %v1346_v7 = vadd.f32 %v1345_v3, %v1313_v19 }
 0x114   : > { %v1379_v59 = vadd.f32 %v1378_v57, %v1340_v21  ;;  %v1795_v21 = vand.u32 4294901760, %v1794_v56 }
 0x116   : > { %v1407_v31 = vpop.f32.mrf.mxu3  ;;  %v1796_v29 = vsub.f32 %v1794_v56, %v1795_v21 }
 0x117   : > { %v1408_v62 = vadd.f32 %v1407_v31, %v1379_v59 }
 0x119   : > { %3639 = vtanh.f32 %v1408_v62 }
 0x11b   : > { %v1382_v5 = vpop.f32.mrf.mxu2 }
 0x11c   : > { %v1383_v10 = vadd.f32 %v1382_v5, %v1346_v7 }
 0x11e   : > { %v1411_v45 = vpop.f32.mrf.mxu3 }
 0x11f   : > { %v3640_v11 = vpop.eup %3639  ;;  %v1412_v12 = vadd.f32 %v1411_v45, %v1383_v10 }
 0x120   : > { %v1418_v20 = vadd.f32 %v3640_v11, %v1416_v2  ;;  %v1959_v2 = vlaneseq }
 0x121   : > { %3641 = vtanh.f32 %v1412_v12 }
 0x122   : > { %v1438_v27 = vsel %vm1422_vm1, %v1418_v20, 0  ;;  %v1420_v17 = vmul.f32 %v1418_v20, %v1418_v20  ;;  %3643 = vpow2.f32 %v1724_v24  ;;  %v4572_v45 = vshrl.u32 %v1959_v2, 7 }
 0x123   : > { %v4522_v28 = vand.u32 4294901760, %v1438_v27 }
 0x124   : > { %v1423_v35 = vsel %vm1422_vm1, %v1420_v17, 0.0  ;;  %v4575_v16 = vadd.s32 8, %v4572_v45  ;;  %3623 = vset.pattern.permute.xlu1 %v4572_v45 }
 0x125   : > { %1541 = vmatmul.f32.vlgmr.msra.gmra.mxu1 %v4522_v28  ;;  %1424 = vadd.xlane.f32.xlu0 %v1423_v35  ;;  %v1468_v15 = vsub.f32 %v1438_v27, %v4522_v28 }
 0x126   : > { %1883 = vmatpush.xpose.msra.mxu1 %v4486_v23  ;;  %3626 = vset.pattern.permute.xlu0 %v4575_v16 }
 0x127   : > { %v3642_v36 = vpop.eup %3641  ;;  %1583 = vmatmul.f32.vlgmr.msrb.gmra.mxu2 %v1468_v15  ;;  %v1469_v44 = vand.u32 4294901760, %v1468_v15  ;;  %3624 = vset.pattern.permute.xlu2 %v4575_v16 }
 0x128   : > { %v1419_v47 = vadd.f32 %v3642_v36, %v1417_v40  ;;  %1916 = vmatpush.xpose.msrb.mxu2 %v1818_v39  ;;  %v3166_v39 = vand.u32 4294901760, %v4538_v46  ;;  %v3644_v59 = vpop.eup %3643 }
 0x129   : > { %1619 = vmatmul.f32.vlgmr.msrb.gmra.mxu3 %v1469_v44  ;;  %v1470_v50 = vsub.f32 %v1468_v15, %v1469_v44  ;;  %v1726_v14 = vmax.f32 %v3644_v59, 0.3 }
 0x12a   : > { %1885 = vmatpush.xpose.msra.mxu1 %v4476_v8  ;;  %1945 = vmatpush.xpose.msrb.mxu3 %v4486_v23  ;;  %v1441_v60 = vsel %vm1422_vm1, %v1419_v47, 0  ;;  %v1421_v53 = vmul.f32 %v1419_v47, %v1419_v47  ;;  %v3172_v23 = vand.u32 4294901760, %v3171_v52  ;;  %v3167_v32 = vsub.f32 %v4538_v46, %v3166_v39  ;;  %v3636_v47 = vld [vmem:[%s5557_s8] ss:$0 sm:$0xff] }
 0x12b   : > { %v1471_v54 = vand.u32 4294901760, %v1470_v50  ;;  %v1475_v61 = vand.u32 4294901760, %v1441_v60  ;;  %v1727_v31 = vmin.f32 %v1726_v14, 2.0  ;;  %v4587_v14 = vand.u32 127, %v1959_v2 }
 0x12c   : > { %1920 = vmatpush.xpose.msrb.mxu2 %v1824_v43  ;;  %v1426_v1 = vsel %vm1422_vm1, %v1421_v53, 0.0  ;;  %v3173_v41 = vsub.f32 %v3171_v52, %v3172_v23  ;;  %v3168_v18 = vand.u32 4294901760, %v3167_v32 }
 0x12d   : > { %1472 = vmatmul.f32.vlgmr.msra.gmra.mxu0 %v1471_v54  ;;  %1545 = vmatmul.f32.gmra.mxu1 %v1475_v61  ;;  %v1476_v6 = vsub.f32 %v1441_v60, %v1475_v61  ;;  %v1728_v19 = vmul.f32 %v1727_v31, %v1727_v31  ;;  %vm1964_vm6 = vcmp.le.s32.totalorder %v4587_v14, %v4572_v45 }
 0x12e   : > { %1427 = vadd.xlane.f32.xlu0 %v1426_v1  ;;  %1853 = vmatpush.xpose.msra.mxu0 %v4490_v38  ;;  %v1789_v38 = vand.u32 4294901760, %v1788_v13  ;;  %vm1965_vm8 = vcmp.le.s32.totalorder %v4587_v14, %v4575_v16 }
 0x12f   : > { %1947 = vmatpush.xpose.msrb.mxu3 %v4476_v8  ;;  %1588 = vmatmul.f32.gmra.mxu2 %v1476_v6  ;;  %v1477_v55 = vand.u32 4294901760, %v1476_v6  ;;  %v3174_v8 = vand.u32 4294901760, %v3173_v41  ;;  %3645 = vrcp.f32 %v1728_v19  ;;  %vm1734_vm2 = vweird.f32 %v1728_v19 }
 0x130   : > { %v1740_v22 = vand.u32 2147483648, %v1728_v19 }
 0x131   : > { %1625 = vmatmul.f32.gmra.mxu3 %v1477_v55  ;;  %v1478_v43 = vsub.f32 %v1476_v6, %v1477_v55 }
 0x132   : > { %1856 = vmatpush.xpose.msra.mxu0 %v4484_v33  ;;  %v1797_v33 = vand.u32 4294901760, %v1796_v29 }
 0x133   : > { %v1479_v57 = vand.u32 4294901760, %v1478_v43 }
 0x135   : > { %1480 = vmatmul.f32.gmra.mxu0 %v1479_v57  ;;  %1703 = vmatmul.f32.vlgmr.msrb.gmra.mxu1 %v4522_v28  ;;  %v3646_v62 = vpop.eup %3645 }
 0x136   : > { %3169 = vmatpush.msrb.mxu1 %v3168_v18  ;;  %v1730_v0 = vmul.f32 %v3646_v62, %v1728_v19  ;;  %vm1735_vm3 = vweird.f32 %v3646_v62 }
 0x137   : > { %1790 = vmatmul.f32.vlgmr.msra.gmra.mxu2 %v1789_v38  ;;  %vm1736_vm4 = vmor %vm1734_vm2, %vm1735_vm3 }
 0x138   : > { %3175 = vmatpush.msrb.mxu1 %v3174_v8  ;;  %3201 = vmatpush.msra.mxu2 %v4538_v46  ;;  %v1731_v7 = vsub.f32 1.0, %v1730_v0 }
 0x139   : > { %1829 = vmatmul.f32.vlgmr.msra.gmra.mxu3 %v4527_v30 }
 0x13a   : > { %3204 = vmatpush.msra.mxu2 %v3171_v52  ;;  %3231 = vmatpush.msra.mxu3 %v4524_v34  ;;  %v1732_v12 = vmul.f32 %v3646_v62, %v1731_v7 }
 0x13c   : > { %3233 = vmatpush.msra.mxu3 %v4534_v42  ;;  %v1733_v17 = vadd.f32 %v3646_v62, %v1732_v12 }
 0x13d   : > { %1670 = vmatmul.f32.vlgmr.msrb.gmra.mxu0 %v4522_v28  ;;  %1707 = vmatmul.f32.gmra.mxu1 %v1475_v61  ;;  %v1738_v28 = vand.u32 2147483647, %v1728_v19 }
 0x13e   : > { %3130 = vmatpush.msrb.mxu0 %v4524_v34  ;;  %v1737_v15 = vsel %vm1736_vm4, %v3646_v62, %v1733_v17 }
 0x13f   : > { %1798 = vmatmul.f32.gmra.mxu2 %v1797_v33  ;;  %vm1739_vm5 = vcmp.eq.f32.partialorder %v1738_v28, 8.507059e+37 }
 0x140   : > { %3132 = vmatpush.msrb.mxu0 %v4534_v42 }
 0x141   : > { %1833 = vmatmul.f32.gmra.mxu3 %v1793_v37 }
 0x145   : > { %1674 = vmatmul.f32.gmra.mxu0 %v1475_v61  ;;  %1889 = vmatmul.f32.vlgmr.msra.gmra.mxu1 %v1787_v26 }
 0x146   : > { %3293 = vmatpush.msra.mxu1 %v4524_v34 }
 0x147   : > { %1922 = vmatmul.f32.vlgmr.msrb.gmra.mxu2 %v4527_v30 }
 0x148   : > { %3295 = vmatpush.msra.mxu1 %v4534_v42 }
 0x149   : > { %1949 = vmatmul.f32.vlgmr.msrb.gmra.mxu3 %v4527_v30  ;;  %v1741_v30 = vor.u32 1.1754944e-38, %v1740_v22 }
 0x14b   : > { %v1742_v46 = vsel %vm1739_vm5, %v1741_v30, %v1737_v15 }
 0x14c   : > { %v1743_v60 = vmul.f32 -0.5, %v1742_v46 }
 0x14d   : > { %1859 = vmatmul.f32.vlgmr.msra.gmra.mxu0 %v1786_v49  ;;  %1895 = vmatmul.f32.gmra.mxu1 %v1795_v21 }
 0x14e   : > { %3264 = vmatpush.msra.mxu0 %v3166_v39  ;;  %v1745_v39 = vperm.slane %v1743_v60, 0 }
 0x14f   : > { %1926 = vmatmul.f32.gmra.mxu2 %v1793_v37 }
 0x150   : > { %3268 = vmatpush.msra.mxu0 %v3172_v23 }
 0x151   : > { %1953 = vmatmul.f32.gmra.mxu3 %v1793_v37 }
 0x155   : > { %1864 = vmatmul.f32.gmra.mxu0 %v1794_v56 }
 0x198   : > { %v1425_v36 = vpop.xlane.xlu0 %1424 }
 0x199   : > { %v1715_v53 = vadd.f32 %v3636_v47, %v1425_v36 }
 0x1a1   : > { %v1428_v23 = vpop.xlane.xlu0 %1427 }
 0x1a2   : > { %v1542_v63 = vpop.f32.mrf.mxu1  ;;  %v1716_v13 = vadd.f32 %v3636_v47, %v1428_v23 }
 0x1aa   : > { %v1473_v3 = vpop.f32.mrf.mxu0  ;;  %v1584_v5 = vpop.f32.mrf.mxu2 }
 0x1ab   : > { %v1543_v4 = vadd.f32 %v1542_v63, %v1473_v3  ;;  %v1546_v48 = vpop.f32.mrf.mxu1 }
 0x1ac   : > { %v1620_v9 = vpop.f32.mrf.mxu3 }
 0x1ad   : > { %v1585_v10 = vadd.f32 %v1584_v5, %v1543_v4 }
 0x1af   : > { %v1621_v11 = vadd.f32 %v1620_v9, %v1585_v10 }
 0x1b2   : > { %v1481_v20 = vpop.f32.mrf.mxu0  ;;  %v1589_v27 = vpop.f32.mrf.mxu2 }
 0x1b3   : > { %v1547_v25 = vadd.f32 %v1546_v48, %v1481_v20  ;;  %v1704_v42 = vpop.f32.mrf.mxu1 }
 0x1b4   : > { %v1626_v34 = vpop.f32.mrf.mxu3 }
 0x1b5   : > { %v1590_v35 = vadd.f32 %v1589_v27, %v1547_v25 }
 0x1b7   : > { %v1627_v40 = vadd.f32 %v1626_v34, %v1590_v35 }
 0x1ba   : > { %v1671_v44 = vpop.f32.mrf.mxu0  ;;  %v1791_v50 = vpop.f32.mrf.mxu2 }
 0x1bb   : > { %v1672_v49 = vadd.f32 %v1671_v44, %v1621_v11  ;;  %v1708_v1 = vpop.f32.mrf.mxu1 }
 0x1bc   : > { %v1830_v51 = vpop.f32.mrf.mxu3 }
 0x1bd   : > { %v1705_v52 = vadd.f32 %v1704_v42, %v1672_v49  ;;  %v1831_v18 = vadd.f32 %v1830_v51, %v1791_v50 }
 0x1bf   : > { %v1717_v54 = vmul.f32 2.0, %v1705_v52 }
 0x1c1   : > { %v1719_v61 = vsub.f32 %v1715_v53, %v1717_v54 }
 0x1c2   : > { %v1675_v26 = vpop.f32.mrf.mxu0  ;;  %v4583_v55 = vpop.f32.mrf.mxu2 }
 0x1c3   : > { %v1721_v37 = vmax.f32 %v1719_v61, 0.0  ;;  %v1676_v6 = vadd.f32 %v1675_v26, %v1627_v40  ;;  %v1890_v33 = vpop.f32.mrf.mxu1 }
 0x1c4   : > { %v4585_v43 = vpop.f32.mrf.mxu3 }
 0x1c5   : > { %v1747_v32 = vmul.f32 %v1745_v39, %v1721_v37  ;;  %v1709_v56 = vadd.f32 %v1708_v1, %v1676_v6 }
 0x1c7   : > { %v1749_v41 = vmul.f32 1.442695, %v1747_v32  ;;  %v1718_v57 = vmul.f32 2.0, %v1709_v56 }
 0x1c9   : > { %3647 = vpow2.f32 %v1749_v41  ;;  %v1720_v38 = vsub.f32 %v1716_v13, %v1718_v57 }
 0x1ca   : > { %v1860_v21 = vpop.f32.mrf.mxu0  ;;  %v1923_v59 = vpop.f32.mrf.mxu2 }
 0x1cb   : > { %v1722_v8 = vmax.f32 %v1720_v38, 0.0  ;;  %v1861_v29 = vadd.f32 %v1860_v21, %v1831_v18 }
 0x1cc   : > { %v1950_v0 = vpop.f32.mrf.mxu3 }
 0x1cd   : > { %v1748_v58 = vmul.f32 %v1745_v39, %v1722_v8  ;;  %v1891_v24 = vadd.f32 %v1890_v33, %v1861_v29 }
 0x1cf   : > { %v3648_v31 = vpop.eup %3647  ;;  %v1751_v19 = vmul.f32 1.442695, %v1748_v58  ;;  %v1924_v62 = vadd.f32 %v1923_v59, %v1891_v24  ;;  %v1835_v24 = vadd.f32 %v4585_v43, %v4583_v55 }
 0x1d0   : > { %v4589_v63 = vmax.f32 %v3648_v31, 0.01 }
 0x1d1   : > { %3649 = vpow2.f32 %v1751_v19  ;;  %v1951_v3 = vadd.f32 %v1950_v0, %v1924_v62  ;;  %v1896_v0 = vpop.f32.mrf.mxu1 }
 0x1d2   : > { %v2187_v5 = vrot.slane %v4589_v63, 1  ;;  %v2188_v7 = vrot.slane %v4589_v63, 2  ;;  %v2189_v9 = vrot.slane %v4589_v63, 3  ;;  %v2190_v10 = vrot.slane %v4589_v63, 4  ;;  %v1865_v29 = vpop.f32.mrf.mxu0  ;;  %v1927_v55 = vpop.f32.mrf.mxu2 }
 0x1d3   : > { %v1957_v4 = vmul.f32 0.17677669, %v1951_v3  ;;  %v2191_v48 = vrot.slane %v4589_v63, 5  ;;  %v2201_v25 = vperm.slane %v4589_v63, 0  ;;  %v2192_v46 = vrot.slane %v4589_v63, 6 }
 0x1d4   : > { %v4607_v17 = vperm.slane %v2187_v5, 0  ;;  %v4609_v28 = vperm.slane %v2188_v7, 0  ;;  %v4611_v34 = vperm.slane %v2189_v9, 0  ;;  %v4613_v35 = vperm.slane %v2190_v10, 0  ;;  %v1954_v5 = vpop.f32.mrf.mxu3 }
 0x1d5   : > { %v4596_v2 = vsel %vm1964_vm6, %v1957_v4, -1e+09  ;;  %v4615_v30 = vperm.slane %v2191_v48, 0  ;;  %v2193_v50 = vrot.slane %v4589_v63, 7  ;;  %v4648_v53 = vperm.slane %v2192_v46, 0 }
 0x1d6   : > { %v1969_v11 = vsel %vm1968_vm7, %v4596_v2, -inf  ;;  %v1990_v12 = vperm.slane %v4596_v2, 1  ;;  %v1977_v20 = vperm.slane %v4596_v2, 0  ;;  %v1866_v62 = vadd.f32 %v1865_v29, %v1835_v24 }
 0x1d7   : > { %v3650_v22 = vpop.eup %3649  ;;  %1970 = vmax.xlane.f32.xlu1 %v1969_v11  ;;  %v4654_v61 = vperm.slane %v2193_v50, 0  ;;  %v2003_v4 = vperm.slane %v4596_v2, 2  ;;  %v2016_v48 = vperm.slane %v4596_v2, 3  ;;  %v2055_v46 = vperm.slane %v4596_v2, 6 }
 0x1d8   : > { %v4605_v27 = vmax.f32 %v3650_v22, 0.01  ;;  %2001 = vperm.xlu0 %3626, %v1990_v12   ;;  %1988 = vperm.xlu2 %3624, %v1977_v20   ;;  %v1897_v3 = vadd.f32 %v1896_v0, %v1866_v62  ;;  %v2235_v0 = vmul.f32 %v4607_v17, %v4589_v63 }
 0x1da   : > { %v4620_v40 = vmul.f32 %v2201_v25, %v4605_v27  ;;  %v4624_v15 = vmul.f32 %v4607_v17, %v4605_v27  ;;  %v4628_v42 = vmul.f32 %v4609_v28, %v4605_v27  ;;  %v4632_v36 = vmul.f32 %v4611_v34, %v4605_v27 }
 0x1db   : > { %v4636_v44 = vmul.f32 %v4613_v35, %v4605_v27  ;;  %v4641_v47 = vmul.f32 %v4615_v30, %v4605_v27  ;;  %v2197_v49 = vrot.slane %v4605_v27, 4  ;;  %v2209_v51 = vperm.slane %v4605_v27, 0 }
 0x1dc   : > { %v2194_v52 = vrot.slane %v4605_v27, 1  ;;  %v2195_v60 = vrot.slane %v4605_v27, 2  ;;  %v4658_v39 = vmul.f32 %v4648_v53, %v4605_v27  ;;  %v4673_v6 = vmul.f32 %v4654_v61, %v4605_v27 }
 0x1dd   : > { %v4652_v54 = vperm.slane %v2197_v49, 0  ;;  %v4663_v1 = vmul.f32 %v2209_v51, %v4589_v63  ;;  %v2196_v56 = vrot.slane %v4605_v27, 3  ;;  %v2198_v41 = vrot.slane %v4605_v27, 5 }
 0x1de   : > { %v4665_v26 = vperm.slane %v2194_v52, 0  ;;  %v4675_v23 = vperm.slane %v2195_v60, 0  ;;  %v2199_v57 = vrot.slane %v4605_v27, 6  ;;  %v2200_v38 = vrot.slane %v4605_v27, 7 }
 0x1df   : > { %v4669_v37 = vmul.f32 %v4652_v54, %v4589_v63  ;;  %v4688_v18 = vperm.slane %v2196_v56, 0  ;;  %v4691_v21 = vperm.slane %v2198_v41, 0  ;;  %v1928_v43 = vadd.f32 %v1927_v55, %v1897_v3 }
 0x1e0   : > { %3625 = vset.pattern.permute.xlu2 %v4572_v45  ;;  %3630 = vset.pattern.permute.xlu0 %v4572_v45  ;;  %v4679_v32 = vmul.f32 %v4665_v26, %v4589_v63  ;;  %v4684_v13 = vmul.f32 %v4675_v23, %v4589_v63  ;;  %v4693_v8 = vperm.slane %v2199_v57, 0  ;;  %v4699_v58 = vperm.slane %v2200_v38, 0 }
 0x1e1   : > { %v4697_v33 = vmul.f32 %v4688_v18, %v4589_v63  ;;  %v4705_v59 = vmul.f32 %v4691_v21, %v4589_v63  ;;  %v1955_v7 = vadd.f32 %v1954_v5, %v1928_v43  ;;  %v2068_v49 = vperm.slane %v4596_v2, 7 }
 0x1e2   : > { %v4709_v31 = vmul.f32 %v4693_v8, %v4589_v63  ;;  %v4713_v19 = vmul.f32 %v4699_v58, %v4589_v63 }
 0x1e3   : > { %v1958_v9 = vmul.f32 0.17677669, %v1955_v7 }
 0x1e5   : > { %v4720_v10 = vsel %vm1965_vm8, %v1958_v9, -1e+09 }
 0x1e6   : > { %v1972_v11 = vsel %vm1968_vm7, %v4720_v10, -inf  ;;  %v2133_v22 = vperm.slane %v4720_v10, 4  ;;  %v2081_v50 = vperm.slane %v4720_v10, 0  ;;  %v2094_v52 = vperm.slane %v4720_v10, 1 }
 0x1e7   : > { %v2107_v60 = vperm.slane %v4720_v10, 2  ;;  %v2120_v56 = vperm.slane %v4720_v10, 3  ;;  %v2146_v3 = vperm.slane %v4720_v10, 5 }
 0x1e8   : > { %1995 = vperm.xlu2 %3625, %v1990_v12   ;;  %v2029_v12 = vperm.slane %v4596_v2, 4 }
 0x1f0   : > { %2008 = vperm.xlu2 %3625, %v2003_v4   ;;  %1982 = vperm.xlu1 %3623, %v1977_v20   ;;  %v2042_v20 = vperm.slane %v4596_v2, 5  ;;  %v2571_v2 = vld [vmem:[%s5559_s10] sm:$0x1] }
 0x1f1   : > { %v3531_v38 = vmul.f32 -1.442695, %v2571_v2 }
 0x1f3   : > { %3651 = vpow2.f32 %v3531_v38 }
 0x1f8   : > { %3627 = vset.pattern.permute.xlu2 %v4575_v16  ;;  %3629 = vset.pattern.permute.xlu1 %v4575_v16 }
 0x1f9   : > { %v3652_v7 = vpop.eup %3651 }
 0x200   : > { %2014 = vperm.xlu2 %3627, %v2003_v4   ;;  %2027 = vperm.xlu1 %3629, %v2016_v48  }
 0x202   : > { %1973 = vmax.xlane.f32.xlu0 %v1972_v11 }
 0x208   : > { %3628 = vset.pattern.permute.xlu2 %v4572_v45  ;;  %2040 = vperm.xlu1 %3629, %v2029_v12  }
 0x210   : > { %2021 = vperm.xlu2 %3628, %v2016_v48   ;;  %2053 = vperm.xlu1 %3629, %v2042_v20   ;;  %v2237_v48 = vmul.f32 %v4609_v28, %v4589_v63 }
 0x216   : > { %2138 = vperm.xlu0 %3630, %v2133_v22  }
 0x218   : > { %2034 = vperm.xlu2 %3628, %v2029_v12   ;;  %2066 = vperm.xlu1 %3629, %v2055_v46  }
 0x220   : > { %2047 = vperm.xlu2 %3628, %v2042_v20   ;;  %2079 = vperm.xlu1 %3629, %v2068_v49  }
 0x228   : > { %2060 = vperm.xlu2 %3628, %v2055_v46   ;;  %2092 = vperm.xlu1 %3629, %v2081_v50   ;;  %v4751_v46 = vadd.f32 1.0, %v3652_v7 }
 0x22a   : > { %vm2581_vm9 = vweird.f32 %v4751_v46 }
 0x230   : > { %2073 = vperm.xlu2 %3628, %v2068_v49   ;;  %2105 = vperm.xlu1 %3629, %v2094_v52  }
 0x232   : > { %v1989_v41 = vpop.permute.xlu2 %1988 }
 0x238   : > { %2118 = vperm.xlu1 %3629, %v2107_v60   ;;  %2086 = vperm.xlu2 %3628, %v2081_v50  }
 0x240   : > { %2131 = vperm.xlu1 %3629, %v2120_v56   ;;  %2099 = vperm.xlu2 %3628, %v2094_v52  }
 0x242   : > { %v1996_v57 = vpop.permute.xlu2 %1995 }
 0x243   : > { %v2267_v4 = vmul.f32 %v2235_v0, %v1996_v57  ;;  %v2266_v57 = vmul.f32 %v4620_v40, %v1989_v41  ;;  %v2233_v40 = vmul.f32 %v2201_v25, %v4589_v63 }
 0x248   : > { %3632 = vset.pattern.permute.xlu1 %v4572_v45  ;;  %2112 = vperm.xlu2 %3628, %v2107_v60  }
 0x24a   : > { %v1971_v29 = vpop.xlane.xlu1 %1970  ;;  %v2002_v24 = vpop.permute.xlu0 %2001 }
 0x24b   : > { %v4741_v62 = vmax.f32 %v1971_v29, 0.0  ;;  %v2268_v55 = vmul.f32 %v4624_v15, %v2002_v24  ;;  %v2009_v9 = vpop.permute.xlu2 %2008  ;;  %v2159_v15 = vperm.slane %v4720_v10, 6 }
 0x24c   : > { %v2269_v20 = vmul.f32 %v2237_v48, %v2009_v9 }
 0x24d   : > { %v2300_v43 = vperm.slane %v4741_v62, 1  ;;  %v2301_v11 = vperm.slane %v4741_v62, 2  ;;  %v2299_v60 = vperm.slane %v4741_v62, 0 }
 0x24f   : > { %v2333_v45 = vsub.f32 %v2267_v4, %v2300_v43  ;;  %v2334_v5 = vsub.f32 %v2268_v55, %v2300_v43  ;;  %v2335_v49 = vsub.f32 %v2269_v20, %v2301_v11  ;;  %v2332_v4 = vsub.f32 %v2266_v57, %v2299_v60 }
 0x250   : > { %2151 = vperm.xlu1 %3632, %v2146_v3   ;;  %2125 = vperm.xlu2 %3628, %v2120_v56  }
 0x251   : > { %v2367_v12 = vmul.f32 1.442695, %v2333_v45  ;;  %v2369_v17 = vmul.f32 1.442695, %v2334_v5  ;;  %v2371_v52 = vmul.f32 1.442695, %v2335_v49 }
 0x252   : > { %v2365_v5 = vmul.f32 1.442695, %v2332_v4 }
 0x253   : > { %3653 = vpow2.f32 %v2367_v12 }
 0x254   : > { %3655 = vpow2.f32 %v2369_v17 }
 0x255   : > { %3657 = vrcp.f32 %v4751_v46 }
 0x256   : > { %3659 = vpow2.f32 %v2371_v52  ;;  %v2239_v52 = vmul.f32 %v4611_v34, %v4589_v63 }
 0x258   : > { %2164 = vperm.xlu1 %3632, %v2159_v15   ;;  %3631 = vset.pattern.permute.xlu2 %v4575_v16  ;;  %v2172_v16 = vperm.slane %v4720_v10, 7 }
 0x259   : > { %v4760_v56 = vpop.eup %3653 }
 0x25a   : > { %v2015_v28 = vpop.permute.xlu2 %2014  ;;  %v4762_v2 = vpop.eup %3655  ;;  %v2436_v29 = vsel %vm1968_vm7, %v4760_v56, 0.0 }
 0x25b   : > { %v2270_v50 = vmul.f32 %v4628_v42, %v2015_v28  ;;  %v2437_v24 = vsel %vm1968_vm7, %v4762_v2, 0.0  ;;  %v4770_v0 = vpop.eup %3657 }
 0x25c   : > { %v2438_v55 = vadd.f32 %v2437_v24, %v2436_v29  ;;  %v2577_v45 = vmul.f32 %v4770_v0, %v4751_v46  ;;  %v4781_v48 = vpop.eup %3659  ;;  %vm2582_vm10 = vweird.f32 %v4770_v0 }
 0x25d   : > { %v2336_v38 = vsub.f32 %v2270_v50, %v2301_v11  ;;  %v2445_v25 = vsel %vm1968_vm7, %v4781_v48, 0.0  ;;  %vm4820_vm11 = vmor %vm2581_vm9, %vm2582_vm10 }
 0x25e   : > { %v2439_v41 = vrot.slane %v2438_v55, 4  ;;  %v2578_v17 = vsub.f32 1.0, %v2577_v45  ;;  %v2585_v45 = vand.u32 2147483647, %v4751_v46 }
 0x25f   : > { %v2373_v42 = vmul.f32 1.442695, %v2336_v38 }
 0x260   : > { %2177 = vperm.xlu1 %3632, %v2172_v16   ;;  %2144 = vperm.xlu2 %3631, %v2133_v22   ;;  %v2440_v9 = vadd.f32 %v2439_v41, %v2438_v55  ;;  %v2579_v38 = vmul.f32 %v4770_v0, %v2578_v17  ;;  %v2241_v55 = vmul.f32 %v4613_v35, %v4589_v63  ;;  %vm4854_vm12 = vcmp.eq.f32.partialorder %v2585_v45, 8.507059e+37 }
 0x261   : > { %3661 = vpow2.f32 %v2373_v42  ;;  %v2302_v42 = vperm.slane %v4741_v62, 3 }
 0x262   : > { %v1983_v43 = vpop.permute.xlu1 %1982  ;;  %v2441_v12 = vrot.slane %v2440_v9, 2  ;;  %3663 = vpow2.f32 %v2365_v5  ;;  %v2580_v35 = vadd.f32 %v4770_v0, %v2579_v38  ;;  %v4816_v5 = vmul.f32 %v2209_v51, %v4605_v27 }
 0x263   : > { %v2265_v7 = vmul.f32 %v2233_v40, %v1983_v43  ;;  %v4808_v43 = vmul.f32 %v4648_v53, %v4589_v63  ;;  %v4826_v53 = vmul.f32 %v4654_v61, %v4589_v63 }
 0x264   : > { %v2442_v49 = vadd.f32 %v2441_v12, %v2440_v9 }
 0x265   : > { %v2331_v11 = vsub.f32 %v2265_v7, %v2299_v60 }
 0x266   : > { %v2443_v60 = vrot.slane %v2442_v49, 1 }
 0x267   : > { %v4783_v20 = vpop.eup %3661  ;;  %v2363_v22 = vmul.f32 1.442695, %v2331_v11 }
 0x268   : > { %v2446_v28 = vsel %vm1968_vm7, %v4783_v20, 0.0  ;;  %2157 = vperm.xlu2 %3631, %v2146_v3   ;;  %v4793_v4 = vadd.f32 %v2443_v60, %v2442_v49  ;;  %v4799_v3 = vmul.f32 %v4615_v30, %v4589_v63  ;;  %v4803_v34 = vpop.eup %3663  ;;  %v2587_v30 = vand.u32 2147483648, %v4751_v46 }
 0x269   : > { %v2447_v50 = vadd.f32 %v2446_v28, %v2445_v25  ;;  %3665 = vpow2.f32 %v2363_v22  ;;  %v4830_v46 = vmul.f32 %v4665_v26, %v4605_v27  ;;  %v2428_v51 = vsel %vm1968_vm7, %v4803_v34, 0.0 }
 0x26a   : > { %v2022_v57 = vpop.permute.xlu2 %2021  ;;  %3667 = vrcp.f32 %v4793_v4  ;;  %v4840_v22 = vmul.f32 %v4675_v23, %v4605_v27  ;;  %v4844_v63 = vmul.f32 %v4652_v54, %v4605_v27  ;;  %v2303_v49 = vperm.slane %v4741_v62, 4 }
 0x26b   : > { %v2448_v29 = vrot.slane %v2447_v50, 4  ;;  %v2271_v24 = vmul.f32 %v2239_v52, %v2022_v57  ;;  %v4849_v25 = vmul.f32 %v4688_v18, %v4605_v27  ;;  %v2584_v23 = vsel %vm4820_vm11, %v4770_v0, %v2580_v35 }
 0x26c   : > { %v2588_v54 = vor.u32 1.1754944e-38, %v2587_v30  ;;  %v4866_v0 = vmul.f32 %v4693_v8, %v4605_v27  ;;  %v2304_v30 = vperm.slane %v4741_v62, 5  ;;  %vm2612_vm14 = vweird.f32 %v4793_v4 }
 0x26d   : > { %v2449_v40 = vadd.f32 %v2448_v29, %v2447_v50  ;;  %v2337_v41 = vsub.f32 %v2271_v24, %v2302_v42  ;;  %v4862_v24 = vmul.f32 %v4691_v21, %v4605_v27 }
 0x26e   : > { %v2589_v21 = vsel %vm4854_vm12, %v2588_v54, %v2584_v23 }
 0x26f   : > { %v4818_v7 = vpop.eup %3665  ;;  %v2450_v9 = vrot.slane %v2449_v40, 2  ;;  %v2375_v11 = vmul.f32 1.442695, %v2337_v41 }
 0x270   : > { %v2427_v17 = vsel %vm1968_vm7, %v4818_v7, 0.0  ;;  %2170 = vperm.xlu2 %3631, %v2159_v15   ;;  %v3668_v52 = vpop.eup %3667 }
 0x271   : > { %v2451_v61 = vadd.f32 %v2450_v9, %v2449_v40  ;;  %v2429_v26 = vadd.f32 %v2428_v51, %v2427_v17  ;;  %3669 = vpow2.f32 %v2375_v11  ;;  %v2608_v18 = vmul.f32 %v3668_v52, %v4793_v4 }
 0x272   : > { %v2035_v28 = vpop.permute.xlu2 %2034  ;;  %v2028_v50 = vpop.permute.xlu1 %2027  ;;  %v4870_v40 = vmul.f32 %v4699_v58, %v4605_v27  ;;  %v2616_v11 = vand.u32 2147483647, %v4793_v4  ;;  %v2618_v27 = vand.u32 2147483648, %v4793_v4  ;;  %vm2613_vm13 = vweird.f32 %v3668_v52 }
 0x273   : > { %v2452_v60 = vrot.slane %v2451_v61, 1  ;;  %v2430_v57 = vrot.slane %v2429_v26, 4  ;;  %v2273_v38 = vmul.f32 %v2241_v55, %v2035_v28  ;;  %v2272_v29 = vmul.f32 %v4632_v36, %v2028_v50  ;;  %vm2614_vm1 = vmor %vm2612_vm14, %vm2613_vm13 }
 0x274   : > { %v2609_v9 = vsub.f32 1.0, %v2608_v18  ;;  %v2305_v17 = vperm.slane %v4741_v62, 6  ;;  %v4887_v28 = vmul.f32 0.0625, %v2589_v21  ;;  %v2306_v50 = vperm.slane %v4741_v62, 7 }
 0x275   : > { %v4872_v41 = vadd.f32 %v2452_v60, %v2451_v61  ;;  %v2431_v35 = vadd.f32 %v2430_v57, %v2429_v26  ;;  %v2339_v55 = vsub.f32 %v2273_v38, %v2303_v49  ;;  %v2338_v45 = vsub.f32 %v2272_v29, %v2302_v42  ;;  %v1974_v36 = vpop.xlane.xlu0 %1973 }
 0x276   : > { %v4882_v51 = vmax.f32 %v1974_v36, 0.0  ;;  %v2610_v42 = vmul.f32 %v3668_v52, %v2609_v9  ;;  %vm2617_vm15 = vcmp.eq.f32.partialorder %v2616_v11, 8.507059e+37  ;;  %v2619_v57 = vor.u32 1.1754944e-38, %v2618_v27 }
 0x277   : > { %3671 = vrcp.f32 %v4872_v41  ;;  %v2432_v8 = vrot.slane %v2431_v35, 2  ;;  %v2377_v12 = vmul.f32 1.442695, %v2338_v45  ;;  %v4880_v58 = vpop.eup %3669  ;;  %v2379_v26 = vmul.f32 1.442695, %v2339_v55 }
 0x278   : > { %2183 = vperm.xlu2 %3631, %v2172_v16   ;;  %v2611_v54 = vadd.f32 %v3668_v52, %v2610_v42  ;;  %v2454_v38 = vsel %vm1968_vm7, %v4880_v58, 0.0  ;;  %v2311_v18 = vperm.slane %v4882_v51, 4  ;;  %v2307_v21 = vperm.slane %v4882_v51, 0 }
 0x279   : > { %v2433_v61 = vadd.f32 %v2432_v8, %v2431_v35  ;;  %3673 = vpow2.f32 %v2377_v12  ;;  %v2631_v35 = vand.u32 2147483647, %v4872_v41  ;;  %v2308_v11 = vperm.slane %v4882_v51, 1 }
 0x27a   : > { %v2048_v23 = vpop.permute.xlu2 %2047  ;;  %v2041_v15 = vpop.permute.xlu1 %2040  ;;  %v2615_v29 = vsel %vm2614_vm1, %v3668_v52, %v2611_v54  ;;  %3675 = vpow2.f32 %v2379_v26  ;;  %v2309_v8 = vperm.slane %v4882_v51, 2  ;;  %vm2627_vm2 = vweird.f32 %v4872_v41 }
 0x27b   : > { %v2434_v60 = vrot.slane %v2433_v61, 1  ;;  %v2275_v10 = vmul.f32 %v4799_v3, %v2048_v23  ;;  %v2274_v16 = vmul.f32 %v4636_v44, %v2041_v15  ;;  %v2620_v3 = vsel %vm2617_vm15, %v2619_v57, %v2615_v29 }
 0x27c   : > { %v2621_v36 = vmul.f32 %v2620_v3, %v4887_v28  ;;  %vm4914_vm3 = vcmp.eq.f32.partialorder %v2631_v35, 8.507059e+37  ;;  %v2633_v42 = vand.u32 2147483648, %v4872_v41 }
 0x27d   : > { %v4898_v55 = vpop.eup %3671  ;;  %v4900_v4 = vadd.f32 %v2434_v60, %v2433_v61  ;;  %v2340_v45 = vsub.f32 %v2274_v16, %v2303_v49  ;;  %v2341_v44 = vsub.f32 %v2275_v10, %v2304_v30 }
 0x27e   : > { %v2623_v52 = vmul.f32 %v4898_v55, %v4872_v41  ;;  %v2849_v49 = vperm.slane %v2621_v36, 0  ;;  %vm2628_vm4 = vweird.f32 %v4898_v55 }
 0x27f   : > { %3677 = vrcp.f32 %v4900_v4  ;;  %v2381_v9 = vmul.f32 1.442695, %v2340_v45  ;;  %v4911_v12 = vpop.eup %3673  ;;  %v2383_v60 = vmul.f32 1.442695, %v2341_v44  ;;  %v2603_v3 = vand.u32 2147483648, %v4900_v4  ;;  %vm2629_vm6 = vmor %vm2627_vm2, %vm2628_vm4 }
 0x280   : > { %v2455_v61 = vsel %vm1968_vm7, %v4911_v12, 0.0  ;;  %v2624_v26 = vsub.f32 1.0, %v2623_v52  ;;  %v2882_v10 = vmul.f32 %v4760_v56, %v2849_v49  ;;  %v4924_v29 = vpop.eup %3675  ;;  %v4930_v36 = vmul.f32 %v4762_v2, %v2849_v49 }
 0x281   : > { %v2456_v54 = vadd.f32 %v2455_v61, %v2454_v38  ;;  %3679 = vpow2.f32 %v2381_v9  ;;  %vm2597_vm5 = vweird.f32 %v4900_v4  ;;  %v2463_v2 = vsel %vm1968_vm7, %v4924_v29, 0.0 }
 0x282   : > { %v2061_v16 = vpop.permute.xlu2 %2060  ;;  %v2054_v57 = vpop.permute.xlu1 %2053  ;;  %v2918_v38 = vsel %vm1968_vm7, %v2882_v10, 0.0  ;;  %v2625_v44 = vmul.f32 %v4898_v55, %v2624_v26  ;;  %3681 = vpow2.f32 %v2383_v60 }
 0x283   : > { %v2277_v35 = vmul.f32 %v4808_v43, %v2061_v16  ;;  %v2276_v45 = vmul.f32 %v4641_v47, %v2054_v57  ;;  %v2457_v52 = vrot.slane %v2456_v54, 4  ;;  %2919 = vadd.xlane.f32.xlu0 %v2918_v38  ;;  %v2634_v43 = vor.u32 1.1754944e-38, %v2633_v42 }
 0x284   : > { %v2626_v26 = vadd.f32 %v4898_v55, %v2625_v44  ;;  %v2601_v16 = vand.u32 2147483647, %v4900_v4  ;;  %v2604_v57 = vor.u32 1.1754944e-38, %v2603_v3 }
 0x285   : > { %v3678_v56 = vpop.eup %3677  ;;  %v2343_v9 = vsub.f32 %v2277_v35, %v2305_v17  ;;  %v2342_v47 = vsub.f32 %v2276_v45, %v2304_v30  ;;  %v2458_v49 = vadd.f32 %v2457_v52, %v2456_v54 }
 0x286   : > { %v2593_v61 = vmul.f32 %v3678_v56, %v4900_v4  ;;  %v2630_v52 = vsel %vm2629_vm6, %v4898_v55, %v2626_v26  ;;  %vm2598_vm8 = vweird.f32 %v3678_v56  ;;  %vm2602_vm10 = vcmp.eq.f32.partialorder %v2601_v16, 8.507059e+37 }
 0x287   : > { %v2385_v10 = vmul.f32 1.442695, %v2342_v47  ;;  %v4949_v30 = vpop.eup %3679  ;;  %v2459_v42 = vrot.slane %v2458_v49, 2  ;;  %v2387_v35 = vmul.f32 1.442695, %v2343_v9  ;;  %v2635_v3 = vsel %vm4914_vm3, %v2634_v43, %v2630_v52  ;;  %vm2599_vm9 = vmor %vm2597_vm5, %vm2598_vm8 }
 0x288   : > { %v2139_v45 = vpop.permute.xlu0 %2138  ;;  %v2594_v54 = vsub.f32 1.0, %v2593_v61  ;;  %v2464_v60 = vsel %vm1968_vm7, %v4949_v30, 0.0  ;;  %v4962_v26 = vmul.f32 %v2635_v3, %v4887_v28  ;;  %v4964_v43 = vpop.eup %3681  ;;  %v2313_v4 = vperm.slane %v4882_v51, 6 }
 0x289   : > { %v2289_v38 = vmul.f32 %v4669_v37, %v2139_v45  ;;  %v2460_v44 = vadd.f32 %v2459_v42, %v2458_v49  ;;  %v2465_v41 = vadd.f32 %v2464_v60, %v2463_v2  ;;  %3683 = vpow2.f32 %v2385_v10 }
 0x28a   : > { %v2074_v47 = vpop.permute.xlu2 %2073  ;;  %v2067_v15 = vpop.permute.xlu1 %2066  ;;  %v2595_v23 = vmul.f32 %v3678_v56, %v2594_v54  ;;  %3685 = vpow2.f32 %v2387_v35 }
 0x28b   : > { %v2355_v9 = vsub.f32 %v2289_v38, %v2311_v18  ;;  %v2279_v55 = vmul.f32 %v4826_v53, %v2074_v47  ;;  %v2278_v61 = vmul.f32 %v4658_v39, %v2067_v15  ;;  %v2461_v37 = vrot.slane %v2460_v44, 1 }
 0x28c   : > { %v2466_v45 = vrot.slane %v2465_v41, 4  ;;  %v2596_v27 = vadd.f32 %v3678_v56, %v2595_v23  ;;  %v2850_v39 = vperm.slane %v4962_v26, 0  ;;  %v2472_v38 = vsel %vm1968_vm7, %v4964_v43, 0.0 }
 0x28d   : > { %v2411_v2 = vmul.f32 1.442695, %v2355_v9  ;;  %v2345_v49 = vsub.f32 %v2279_v55, %v2306_v50  ;;  %v2344_v10 = vsub.f32 %v2278_v61, %v2305_v17  ;;  %v4974_v53 = vadd.f32 %v2461_v37, %v2460_v44 }
 0x28e   : > { %v2467_v15 = vadd.f32 %v2466_v45, %v2465_v41  ;;  %v2600_v42 = vsel %vm2599_vm9, %v3678_v56, %v2596_v27  ;;  %v2885_v16 = vmul.f32 %v4783_v20, %v2850_v39 }
 0x28f   : > { %3687 = vpow2.f32 %v2411_v2  ;;  %v2391_v23 = vmul.f32 1.442695, %v2345_v49  ;;  %v2389_v35 = vmul.f32 1.442695, %v2344_v10  ;;  %v2605_v54 = vsel %vm2602_vm10, %v2604_v57, %v2600_v42  ;;  %v4976_v52 = vpop.eup %3683 }
 0x290   : > { %3689 = vrcp.f32 %v4974_v53  ;;  %v2468_v17 = vrot.slane %v2467_v15, 2  ;;  %v2606_v60 = vmul.f32 %v2605_v54, %v4887_v28  ;;  %v2473_v56 = vsel %vm1968_vm7, %v4976_v52, 0.0  ;;  %v4989_v3 = vpop.eup %3685 }
 0x291   : > { %v2314_v57 = vperm.slane %v4882_v51, 7  ;;  %v2474_v41 = vadd.f32 %v2473_v56, %v2472_v38  ;;  %3691 = vpow2.f32 %v2389_v35  ;;  %v2646_v45 = vand.u32 2147483647, %v4974_v53 }
 0x292   : > { %v2469_v44 = vadd.f32 %v2468_v17, %v2467_v15  ;;  %v2080_v47 = vpop.permute.xlu1 %2079  ;;  %v2087_v9 = vpop.permute.xlu2 %2086  ;;  %v2848_v55 = vperm.slane %v2606_v60, 0  ;;  %3693 = vpow2.f32 %v2391_v23  ;;  %v2481_v15 = vsel %vm1968_vm7, %v4989_v3, 0.0 }
 0x293   : > { %v2280_v61 = vmul.f32 %v4673_v6, %v2080_v47  ;;  %v2281_v37 = vmul.f32 %v4663_v1, %v2087_v9  ;;  %v2475_v2 = vrot.slane %v2474_v41, 4  ;;  %v2921_v1 = vsel %vm1968_vm7, %v4930_v36, 0.0 }
 0x294   : > { %v2470_v27 = vrot.slane %v2469_v44, 1  ;;  %v2880_v20 = vmul.f32 %v4818_v7, %v2848_v55  ;;  %v2881_v49 = vmul.f32 %v4803_v34, %v2848_v55  ;;  %vm2642_vm11 = vweird.f32 %v4974_v53 }
 0x295   : > { %v4996_v10 = vpop.eup %3687  ;;  %v2346_v42 = vsub.f32 %v2280_v61, %v2306_v50  ;;  %v2347_v6 = vsub.f32 %v2281_v37, %v2307_v21  ;;  %v2476_v7 = vadd.f32 %v2475_v2, %v2474_v41  ;;  %v5011_v62 = vsel %vm1968_vm7, %v2885_v16, 0.0 }
 0x296   : > { %v3690_v23 = vpop.eup %3689  ;;  %v5006_v35 = vadd.f32 %v2470_v27, %v2469_v44  ;;  %v2912_v34 = vsel %vm1968_vm7, %v2880_v20, 0.0  ;;  %vm5017_vm12 = vcmp.eq.f32.partialorder %v2646_v45, 8.507059e+37  ;;  %v2648_v56 = vand.u32 2147483648, %v4974_v53 }
 0x297   : > { %v2393_v54 = vmul.f32 1.442695, %v2346_v42  ;;  %v2395_v17 = vmul.f32 1.442695, %v2347_v6  ;;  %2913 = vadd.xlane.f32.xlu1 %v2912_v34  ;;  %v2638_v50 = vmul.f32 %v3690_v23, %v4974_v53  ;;  %v5014_v60 = vpop.eup %3691  ;;  %v2477_v36 = vrot.slane %v2476_v7, 2 }
 0x298   : > { %3695 = vrcp.f32 %v5006_v35  ;;  %v5022_v44 = vpop.eup %3693  ;;  %v5026_v41 = vsel %vm1968_vm7, %v4996_v10, 0.0  ;;  %v2482_v16 = vsel %vm1968_vm7, %v5014_v60, 0.0  ;;  %vm2643_vm13 = vweird.f32 %v3690_v23 }
 0x299   : > { %3697 = vpow2.f32 %v2393_v54  ;;  %v2639_v47 = vsub.f32 1.0, %v2638_v50  ;;  %v2478_v9 = vadd.f32 %v2477_v36, %v2476_v7  ;;  %v2483_v55 = vadd.f32 %v2482_v16, %v2481_v15  ;;  %vm2644_vm14 = vmor %vm2642_vm11, %vm2643_vm13 }
 0x29a   : > { %v2093_v61 = vpop.permute.xlu1 %2092  ;;  %v2100_v37 = vpop.permute.xlu2 %2099  ;;  %v2884_v45 = vmul.f32 %v4781_v48, %v2850_v39  ;;  %3699 = vpow2.f32 %v2395_v17  ;;  %v2490_v6 = vsel %vm1968_vm7, %v5022_v44, 0.0  ;;  %v2915_v15 = vsel %vm1968_vm7, %v2881_v49, 0.0 }
 0x29b   : > { %v2282_v27 = vmul.f32 %v4816_v5, %v2093_v61  ;;  %v2283_v2 = vmul.f32 %v4679_v32, %v2100_v37  ;;  %v2640_v20 = vmul.f32 %v3690_v23, %v2639_v47  ;;  %v2479_v42 = vrot.slane %v2478_v9, 1 }
 0x29c   : > { %v2484_v34 = vrot.slane %v2483_v55, 4  ;;  %v2649_v39 = vor.u32 1.1754944e-38, %v2648_v56  ;;  %v2924_v17 = vsel %vm1968_vm7, %v2884_v45, 0.0  ;;  %vm2657_vm15 = vweird.f32 %v5006_v35 }
 0x29d   : > { %v2348_v7 = vsub.f32 %v2282_v27, %v2307_v21  ;;  %v2349_v26 = vsub.f32 %v2283_v2, %v2308_v11  ;;  %v2641_v48 = vadd.f32 %v3690_v23, %v2640_v20  ;;  %v5044_v5 = vadd.f32 %v2479_v42, %v2478_v9 }
 0x29e   : > { %v5042_v54 = vpop.eup %3695  ;;  %v2485_v32 = vadd.f32 %v2484_v34, %v2483_v55  ;;  %v2661_v21 = vand.u32 2147483647, %v5006_v35 }
 0x29f   : > { %v5052_v49 = vpop.eup %3697  ;;  %v2397_v50 = vmul.f32 1.442695, %v2348_v7  ;;  %v2399_v36 = vmul.f32 1.442695, %v2349_v26  ;;  %2922 = vadd.xlane.f32.xlu1 %v2921_v1  ;;  %v2645_v56 = vsel %vm2644_vm14, %v3690_v23, %v2641_v48  ;;  %v2653_v16 = vmul.f32 %v5042_v54, %v5006_v35 }
 0x2a0   : > { %3701 = vrcp.f32 %v5044_v5  ;;  %v2486_v47 = vrot.slane %v2485_v32, 2  ;;  %v2491_v53 = vsel %vm1968_vm7, %v5052_v49, 0.0  ;;  %v2650_v9 = vsel %vm5017_vm12, %v2649_v39, %v2645_v56  ;;  %v5061_v55 = vpop.eup %3699 }
 0x2a1   : > { %v2492_v61 = vadd.f32 %v2491_v53, %v2490_v6  ;;  %3703 = vpow2.f32 %v2397_v50  ;;  %2916 = vadd.xlane.f32.xlu2 %v2915_v15  ;;  %v2651_v1 = vmul.f32 %v2650_v9, %v4887_v28  ;;  %v2663_v23 = vand.u32 2147483648, %v5006_v35 }
 0x2a2   : > { %v2487_v37 = vadd.f32 %v2486_v47, %v2485_v32  ;;  %3705 = vpow2.f32 %v2399_v36  ;;  %v2106_v45 = vpop.permute.xlu1 %2105  ;;  %v2113_v27 = vpop.permute.xlu2 %2112  ;;  %v2654_v2 = vsub.f32 1.0, %v2653_v16  ;;  %vm5065_vm1 = vcmp.eq.f32.partialorder %v2661_v21, 8.507059e+37 }
 0x2a3   : > { %v2493_v38 = vrot.slane %v2492_v61, 4  ;;  %v2284_v42 = vmul.f32 %v4830_v46, %v2106_v45  ;;  %v2285_v6 = vmul.f32 %v4684_v13, %v2113_v27  ;;  %v2851_v34 = vperm.slane %v2651_v1, 0 }
 0x2a4   : > { %v2488_v15 = vrot.slane %v2487_v37, 1  ;;  %v2499_v7 = vsel %vm1968_vm7, %v5061_v55, 0.0  ;;  %v2655_v26 = vmul.f32 %v5042_v54, %v2654_v2  ;;  %vm2658_vm2 = vweird.f32 %v5042_v54 }
 0x2a5   : > { %v2494_v48 = vadd.f32 %v2493_v38, %v2492_v61  ;;  %v2350_v39 = vsub.f32 %v2284_v42, %v2308_v11  ;;  %v2351_v32 = vsub.f32 %v2285_v6, %v2309_v8  ;;  %v2886_v46 = vmul.f32 %v4880_v58, %v2851_v34  ;;  %vm5094_vm3 = vmor %vm2657_vm15, %vm2658_vm2 }
 0x2a6   : > { %v5080_v21 = vpop.eup %3701  ;;  %v5082_v13 = vadd.f32 %v2488_v15, %v2487_v37  ;;  %v2656_v50 = vadd.f32 %v5042_v54, %v2655_v26  ;;  %v2664_v36 = vor.u32 1.1754944e-38, %v2663_v23  ;;  %v2887_v56 = vmul.f32 %v4911_v12, %v2851_v34 }
 0x2a7   : > { %v5086_v16 = vpop.eup %3703  ;;  %v2495_v47 = vrot.slane %v2494_v48, 2  ;;  %v2401_v53 = vmul.f32 1.442695, %v2350_v39  ;;  %v2403_v9 = vmul.f32 1.442695, %v2351_v32  ;;  %2928 = vadd.xlane.f32.xlu1 %v5011_v62  ;;  %v2930_v11 = vsel %vm1968_vm7, %v2886_v46, 0.0 }
 0x2a8   : > { %v5098_v61 = vpop.eup %3705  ;;  %3707 = vrcp.f32 %v5082_v13  ;;  %v2500_v12 = vsel %vm1968_vm7, %v5086_v16, 0.0  ;;  %2931 = vadd.xlane.f32.xlu0 %v2930_v11  ;;  %v2660_v62 = vsel %vm5094_vm3, %v5042_v54, %v2656_v50  ;;  %vm2672_vm4 = vweird.f32 %v5044_v5 }
 0x2a9   : > { %v2676_v35 = vand.u32 2147483647, %v5044_v5  ;;  %v2496_v1 = vadd.f32 %v2495_v47, %v2494_v48  ;;  %v2501_v23 = vadd.f32 %v2500_v12, %v2499_v7  ;;  %3709 = vpow2.f32 %v2401_v53  ;;  %2925 = vadd.xlane.f32.xlu2 %v2924_v17 }
 0x2aa   : > { %v2933_v37 = vsel %vm1968_vm7, %v2887_v56, 0.0  ;;  %v2508_v45 = vsel %vm1968_vm7, %v5098_v61, 0.0  ;;  %3711 = vpow2.f32 %v2403_v9  ;;  %v2119_v27 = vpop.permute.xlu1 %2118  ;;  %v2126_v2 = vpop.permute.xlu2 %2125  ;;  %v2665_v38 = vsel %vm5065_vm1, %v2664_v36, %v2660_v62 }
 0x2ab   : > { %v2668_v54 = vmul.f32 %v5080_v21, %v5044_v5  ;;  %v2497_v42 = vrot.slane %v2496_v1, 1  ;;  %v2502_v6 = vrot.slane %v2501_v23, 4  ;;  %v2286_v34 = vmul.f32 %v4840_v22, %v2119_v27 }
 0x2ac   : > { %v2287_v17 = vmul.f32 %v4697_v33, %v2126_v2  ;;  %v2666_v15 = vmul.f32 %v2665_v38, %v4887_v28  ;;  %vm2673_vm5 = vweird.f32 %v5080_v21  ;;  %v2678_v26 = vand.u32 2147483648, %v5044_v5 }
 0x2ad   : > { %v2669_v7 = vsub.f32 1.0, %v2668_v54  ;;  %v5120_v48 = vadd.f32 %v2497_v42, %v2496_v1  ;;  %v2503_v20 = vadd.f32 %v2502_v6, %v2501_v23  ;;  %v2352_v39 = vsub.f32 %v2286_v34, %v2309_v8  ;;  %vm2674_vm8 = vmor %vm2672_vm4, %vm2673_vm5 }
 0x2ae   : > { %v5594_v32 = vperm.slane %v4882_v51, 3  ;;  %v5126_v50 = vpop.eup %3707  ;;  %v2852_v22 = vperm.slane %v2666_v15, 0  ;;  %vm5129_vm6 = vcmp.eq.f32.partialorder %v2676_v35, 8.507059e+37  ;;  %v2679_v56 = vor.u32 1.1754944e-38, %v2678_v26 }
 0x2af   : > { %v2670_v33 = vmul.f32 %v5080_v21, %v2669_v7  ;;  %v5133_v47 = vpop.eup %3709  ;;  %3713 = vrcp.f32 %v5120_v48  ;;  %v2504_v53 = vrot.slane %v2503_v20, 2  ;;  %v2405_v9 = vmul.f32 1.442695, %v2352_v39 }
 0x2b0   : > { %v2353_v46 = vsub.f32 %v2287_v17, %v5594_v32  ;;  %v5136_v11 = vpop.eup %3711  ;;  %v2509_v58 = vsel %vm1968_vm7, %v5133_v47, 0.0  ;;  %v2888_v12 = vmul.f32 %v4924_v29, %v2852_v22  ;;  %v2889_v62 = vmul.f32 %v4949_v30, %v2852_v22 }
 0x2b1   : > { %v2671_v35 = vadd.f32 %v5080_v21, %v2670_v33  ;;  %v2505_v1 = vadd.f32 %v2504_v53, %v2503_v20  ;;  %v2510_v23 = vadd.f32 %v2509_v58, %v2508_v45  ;;  %v2517_v27 = vsel %vm1968_vm7, %v5136_v11, 0.0  ;;  %2934 = vadd.xlane.f32.xlu2 %v2933_v37 }
 0x2b2   : > { %v2407_v8 = vmul.f32 1.442695, %v2353_v46  ;;  %3715 = vpow2.f32 %v2405_v9  ;;  %v2936_v2 = vsel %vm1968_vm7, %v2888_v12, 0.0  ;;  %v2939_v29 = vsel %vm1968_vm7, %v2889_v62, 0.0  ;;  %v2132_v30 = vpop.permute.xlu1 %2131 }
 0x2b3   : > { %v2675_v38 = vsel %vm2674_vm8, %v5080_v21, %v2671_v35  ;;  %vm2687_vm9 = vweird.f32 %v5082_v13  ;;  %v2506_v45 = vrot.slane %v2505_v1, 1  ;;  %v2511_v54 = vrot.slane %v2510_v23, 4  ;;  %2937 = vadd.xlane.f32.xlu1 %v2936_v2  ;;  %2940 = vadd.xlane.f32.xlu0 %v2939_v29 }
 0x2b4   : > { %3717 = vpow2.f32 %v2407_v8  ;;  %v2288_v37 = vmul.f32 %v4849_v25, %v2132_v30  ;;  %v2680_v5 = vsel %vm5129_vm6, %v2679_v56, %v2675_v38  ;;  %v2683_v6 = vmul.f32 %v5126_v50, %v5082_v13 }
 0x2b5   : > { %v2681_v42 = vmul.f32 %v2680_v5, %v4887_v28  ;;  %vm2688_vm10 = vweird.f32 %v5126_v50  ;;  %v2691_v21 = vand.u32 2147483647, %v5082_v13  ;;  %v5161_v34 = vpop.eup %3713  ;;  %v5163_v17 = vadd.f32 %v2506_v45, %v2505_v1 }
 0x2b6   : > { %v2512_v15 = vadd.f32 %v2511_v54, %v2510_v23  ;;  %v5597_v7 = vmov %v5594_v32  ;;  %v2693_v26 = vand.u32 2147483648, %v5082_v13  ;;  %v2684_v39 = vsub.f32 1.0, %v2683_v6  ;;  %vm2689_vm12 = vmor %vm2687_vm9, %vm2688_vm10 }
 0x2b7   : > { %v2354_v25 = vsub.f32 %v2288_v37, %v5597_v7  ;;  %v2853_v20 = vperm.slane %v2681_v42, 0  ;;  %vm5168_vm11 = vcmp.eq.f32.partialorder %v2691_v21, 8.507059e+37  ;;  %v2698_v46 = vmul.f32 %v5161_v34, %v5120_v48 }
 0x2b8   : > { %v5174_v22 = vpop.eup %3715  ;;  %3719 = vrcp.f32 %v5163_v17  ;;  %v2513_v33 = vrot.slane %v2512_v15, 2  ;;  %v2694_v56 = vor.u32 1.1754944e-38, %v2693_v26  ;;  %v2685_v12 = vmul.f32 %v5126_v50, %v2684_v39 }
 0x2b9   : > { %v2409_v36 = vmul.f32 1.442695, %v2354_v25  ;;  %v2518_v9 = vsel %vm1968_vm7, %v5174_v22, 0.0  ;;  %v2891_v8 = vmul.f32 %v4976_v52, %v2853_v20  ;;  %v2890_v58 = vmul.f32 %v4964_v43, %v2853_v20 }
 0x2ba   : > { %v5177_v53 = vpop.eup %3717  ;;  %v2514_v62 = vadd.f32 %v2513_v33, %v2512_v15  ;;  %v2519_v35 = vadd.f32 %v2518_v9, %v2517_v27  ;;  %v2145_v29 = vpop.permute.xlu2 %2144  ;;  %v2686_v30 = vadd.f32 %v5126_v50, %v2685_v12  ;;  %v2699_v38 = vsub.f32 1.0, %v2698_v46 }
 0x2bb   : > { %v2526_v1 = vsel %vm1968_vm7, %v5177_v53, 0.0  ;;  %3721 = vpow2.f32 %v2409_v36  ;;  %v2945_v23 = vsel %vm1968_vm7, %v2891_v8, 0.0  ;;  %v2942_v2 = vsel %vm1968_vm7, %v2890_v58, 0.0 }
 0x2bc   : > { %v2515_v45 = vrot.slane %v2514_v62, 1  ;;  %v2520_v52 = vrot.slane %v2519_v35, 4  ;;  %2946 = vadd.xlane.f32.xlu1 %v2945_v23  ;;  %2943 = vadd.xlane.f32.xlu2 %v2942_v2  ;;  %v2290_v43 = vmul.f32 %v4844_v63, %v2145_v29  ;;  %vm2702_vm13 = vweird.f32 %v5120_v48 }
 0x2bd   : > { %v2690_v27 = vsel %vm2689_vm12, %v5126_v50, %v2686_v30  ;;  %v2700_v54 = vmul.f32 %v5161_v34, %v2699_v38  ;;  %vm2703_vm14 = vweird.f32 %v5161_v34  ;;  %v2706_v37 = vand.u32 2147483647, %v5120_v48 }
 0x2be   : > { %v5199_v5 = vpop.eup %3719  ;;  %v5201_v42 = vadd.f32 %v2515_v45, %v2514_v62  ;;  %v2521_v63 = vadd.f32 %v2520_v52, %v2519_v35  ;;  %v2356_v6 = vsub.f32 %v2290_v43, %v2311_v18  ;;  %v2695_v13 = vsel %vm5168_vm11, %v2694_v56, %v2690_v27  ;;  %vm2704_vm1 = vmor %vm2702_vm13, %vm2703_vm14 }
 0x2bf   : > { %v2696_v21 = vmul.f32 %v2695_v13, %v4887_v28  ;;  %v2701_v50 = vadd.f32 %v5161_v34, %v2700_v54  ;;  %vm5209_vm15 = vcmp.eq.f32.partialorder %v2706_v37, 8.507059e+37  ;;  %v2708_v7 = vand.u32 2147483648, %v5120_v48 }
 0x2c0   : > { %3723 = vrcp.f32 %v5201_v42  ;;  %v2522_v26 = vrot.slane %v2521_v63, 2  ;;  %v2413_v20 = vmul.f32 1.442695, %v2356_v6  ;;  %v2713_v18 = vmul.f32 %v5199_v5, %v5163_v17 }
 0x2c1   : > { %v5214_v25 = vpop.eup %3721  ;;  %v2854_v32 = vperm.slane %v2696_v21, 0  ;;  %v2705_v46 = vsel %vm2704_vm1, %v5161_v34, %v2701_v50  ;;  %v2709_v33 = vor.u32 1.1754944e-38, %v2708_v7  ;;  %vm2717_vm2 = vweird.f32 %v5163_v17 }
 0x2c2   : > { %v2527_v39 = vsel %vm1968_vm7, %v5214_v25, 0.0  ;;  %v2523_v36 = vadd.f32 %v2522_v26, %v2521_v63  ;;  %3725 = vpow2.f32 %v2413_v20  ;;  %v2714_v9 = vsub.f32 1.0, %v2713_v18  ;;  %v2152_v48 = vpop.permute.xlu1 %2151  ;;  %v2158_v12 = vpop.permute.xlu2 %2157 }
 0x2c3   : > { %v2528_v56 = vadd.f32 %v2527_v39, %v2526_v1  ;;  %v2892_v8 = vmul.f32 %v4989_v3, %v2854_v32  ;;  %v2893_v58 = vmul.f32 %v5014_v60, %v2854_v32  ;;  %v2710_v62 = vsel %vm5209_vm15, %v2709_v33, %v2705_v46 }
 0x2c4   : > { %v2524_v35 = vrot.slane %v2523_v36, 1  ;;  %v2291_v34 = vmul.f32 %v4705_v59, %v2152_v48  ;;  %v2292_v2 = vmul.f32 %v4862_v24, %v2158_v12  ;;  %v2711_v3 = vmul.f32 %v2710_v62, %v4887_v28 }
 0x2c5   : > { %v2529_v23 = vrot.slane %v2528_v56, 4  ;;  %v2948_v1 = vsel %vm1968_vm7, %v2892_v8, 0.0  ;;  %v2951_v29 = vsel %vm1968_vm7, %v2893_v58, 0.0  ;;  %v2715_v60 = vmul.f32 %v5199_v5, %v2714_v9 }
 0x2c6   : > { %v5237_v30 = vpop.eup %3723  ;;  %v5239_v38 = vadd.f32 %v2524_v35, %v2523_v36  ;;  %2949 = vadd.xlane.f32.xlu0 %v2948_v1  ;;  %2952 = vadd.xlane.f32.xlu2 %v2951_v29  ;;  %v5602_v52 = vperm.slane %v4882_v51, 5  ;;  %vm2718_vm3 = vweird.f32 %v5199_v5  ;;  %v2855_v27 = vperm.slane %v2711_v3, 0 }
 0x2c7   : > { %v2530_v45 = vadd.f32 %v2529_v23, %v2528_v56  ;;  %v2716_v54 = vadd.f32 %v5199_v5, %v2715_v60  ;;  %v2721_v37 = vand.u32 2147483647, %v5163_v17  ;;  %v2723_v21 = vand.u32 2147483648, %v5163_v17  ;;  %vm5258_vm4 = vmor %vm2717_vm2, %vm2718_vm3 }
 0x2c8   : > { %v2357_v59 = vsub.f32 %v2291_v34, %v5602_v52  ;;  %v5603_v24 = vmov %v5602_v52  ;;  %v5248_v63 = vpop.eup %3725  ;;  %3727 = vrcp.f32 %v5239_v38  ;;  %v2894_v7 = vmul.f32 %v5022_v44, %v2855_v27 }
 0x2c9   : > { %v2358_v43 = vsub.f32 %v2292_v2, %v5603_v24  ;;  %v2531_v6 = vrot.slane %v2530_v45, 2  ;;  %v2536_v50 = vsel %vm1968_vm7, %v5248_v63, 0.0  ;;  %v2895_v26 = vmul.f32 %v5052_v49, %v2855_v27 }
 0x2ca   : > { %v2415_v13 = vmul.f32 1.442695, %v2357_v59  ;;  %v2537_v39 = vadd.f32 %v2536_v50, %v5026_v41  ;;  %v2720_v32 = vsel %vm5258_vm4, %v5199_v5, %v2716_v54  ;;  %v2954_v46 = vsel %vm1968_vm7, %v2894_v7, 0.0  ;;  %v2165_v49 = vpop.permute.xlu1 %2164  ;;  %v2171_v33 = vpop.permute.xlu2 %2170 }
 0x2cb   : > { %v2417_v15 = vmul.f32 1.442695, %v2358_v43  ;;  %v2532_v18 = vadd.f32 %v2531_v6, %v2530_v45  ;;  %v2957_v44 = vsel %vm1968_vm7, %v2895_v26, 0.0  ;;  %vm5268_vm5 = vcmp.eq.f32.partialorder %v2721_v37, 8.507059e+37  ;;  %2955 = vadd.xlane.f32.xlu1 %v2954_v46 }
 0x2cc   : > { %3729 = vpow2.f32 %v2415_v13  ;;  %v2538_v56 = vrot.slane %v2537_v39, 4  ;;  %v2293_v41 = vmul.f32 %v4709_v31, %v2165_v49  ;;  %v2294_v9 = vmul.f32 %v4866_v0, %v2171_v33 }
 0x2cd   : > { %3731 = vpow2.f32 %v2417_v15  ;;  %v2533_v36 = vrot.slane %v2532_v18, 1  ;;  %v2724_v8 = vor.u32 1.1754944e-38, %v2723_v21  ;;  %v2728_v5 = vmul.f32 %v5237_v30, %v5201_v42 }
 0x2ce   : > { %vm2732_vm6 = vweird.f32 %v5201_v42  ;;  %vm2733_vm8 = vweird.f32 %v5237_v30  ;;  %v5278_v58 = vpop.eup %3727  ;;  %v2539_v12 = vadd.f32 %v2538_v56, %v2537_v39  ;;  %2958 = vadd.xlane.f32.xlu0 %v2957_v44  ;;  %v2359_v62 = vsub.f32 %v2293_v41, %v2313_v4 }
 0x2cf   : > { %v5280_v48 = vadd.f32 %v2533_v36, %v2532_v18  ;;  %v2360_v31 = vsub.f32 %v2294_v9, %v2313_v4  ;;  %v2725_v0 = vsel %vm5268_vm5, %v2724_v8, %v2720_v32  ;;  %v2729_v35 = vsub.f32 1.0, %v2728_v5  ;;  %vm2734_vm10 = vmor %vm2732_vm6, %vm2733_vm8 }
 0x2d0   : > { %v2736_v23 = vand.u32 2147483647, %v5201_v42  ;;  %v2738_v34 = vand.u32 2147483648, %v5201_v42  ;;  %v2540_v1 = vrot.slane %v2539_v12, 2  ;;  %v2419_v29 = vmul.f32 1.442695, %v2359_v62 }
 0x2d1   : > { %3733 = vrcp.f32 %v5280_v48  ;;  %v2421_v3 = vmul.f32 1.442695, %v2360_v31  ;;  %v2726_v45 = vmul.f32 %v2725_v0, %v4887_v28  ;;  %v2730_v52 = vmul.f32 %v5237_v30, %v2729_v35 }
 0x2d2   : > { %v5290_v2 = vpop.eup %3729  ;;  %vm5299_vm9 = vcmp.eq.f32.partialorder %v2736_v23, 8.507059e+37  ;;  %v2541_v24 = vadd.f32 %v2540_v1, %v2539_v12  ;;  %3735 = vpow2.f32 %v2419_v29  ;;  %v2739_v27 = vor.u32 1.1754944e-38, %v2738_v34  ;;  %v2178_v6 = vpop.permute.xlu1 %2177 }
 0x2d3   : > { %v5293_v60 = vpop.eup %3731  ;;  %v2544_v4 = vsel %vm1968_vm7, %v5290_v2, 0.0  ;;  %3737 = vpow2.f32 %v2421_v3  ;;  %v2856_v37 = vperm.slane %v2726_v45, 0  ;;  %v2184_v13 = vpop.permute.xlu2 %2183  ;;  %v2731_v21 = vadd.f32 %v5237_v30, %v2730_v52 }
 0x2d4   : > { %v2545_v43 = vsel %vm1968_vm7, %v5293_v60, 0.0  ;;  %v2542_v50 = vrot.slane %v2541_v24, 1  ;;  %v2295_v15 = vmul.f32 %v4713_v19, %v2178_v6  ;;  %v2296_v7 = vmul.f32 %v4870_v40, %v2184_v13 }
 0x2d5   : > { %v2546_v54 = vadd.f32 %v2545_v43, %v2544_v4  ;;  %v2743_v26 = vmul.f32 %v5278_v58, %v5239_v38  ;;  %v2897_v18 = vmul.f32 %v5086_v16, %v2856_v37  ;;  %v2896_v39 = vmul.f32 %v5061_v55, %v2856_v37 }
 0x2d6   : > { %v2735_v32 = vsel %vm2734_vm10, %v5237_v30, %v2731_v21  ;;  %v5319_v19 = vadd.f32 %v2542_v50, %v2541_v24  ;;  %v2361_v40 = vsub.f32 %v2295_v15, %v2314_v57  ;;  %v2362_v42 = vsub.f32 %v2296_v7, %v2314_v57 }
 0x2d7   : > { %v2547_v20 = vrot.slane %v2546_v54, 4  ;;  %v5317_v46 = vpop.eup %3733  ;;  %v2740_v44 = vsel %vm5299_vm9, %v2739_v27, %v2735_v32  ;;  %v2963_v16 = vsel %vm1968_vm7, %v2897_v18, 0.0  ;;  %v2960_v55 = vsel %vm1968_vm7, %v2896_v39, 0.0 }
 0x2d8   : > { %v2741_v30 = vmul.f32 %v2740_v44, %v4887_v28  ;;  %v5330_v33 = vpop.eup %3735  ;;  %3739 = vrcp.f32 %v5319_v19  ;;  %2964 = vadd.xlane.f32.xlu1 %v2963_v16  ;;  %2961 = vadd.xlane.f32.xlu2 %v2960_v55  ;;  %v2423_v17 = vmul.f32 1.442695, %v2361_v40  ;;  %v2425_v36 = vmul.f32 1.442695, %v2362_v42 }
 0x2d9   : > { %v2548_v49 = vadd.f32 %v2547_v20, %v2546_v54  ;;  %v2744_v51 = vsub.f32 1.0, %v2743_v26  ;;  %v5333_v57 = vpop.eup %3737  ;;  %v2553_v41 = vsel %vm1968_vm7, %v5330_v33, 0.0  ;;  %vm2747_vm11 = vweird.f32 %v5239_v38 }
 0x2da   : > { %v2857_v9 = vperm.slane %v2741_v30, 0  ;;  %v2554_v8 = vsel %vm1968_vm7, %v5333_v57, 0.0  ;;  %3741 = vpow2.f32 %v2423_v17  ;;  %vm2748_vm12 = vweird.f32 %v5278_v58 }
 0x2db   : > { %v2549_v56 = vrot.slane %v2548_v49, 2  ;;  %v2745_v5 = vmul.f32 %v5278_v58, %v2744_v51  ;;  %v2555_v62 = vadd.f32 %v2554_v8, %v2553_v41  ;;  %3743 = vpow2.f32 %v2425_v36  ;;  %vm2749_vm13 = vmor %vm2747_vm11, %vm2748_vm12 }
 0x2dc   : > { %v2898_v31 = vmul.f32 %v5098_v61, %v2857_v9  ;;  %v2899_v0 = vmul.f32 %v5133_v47, %v2857_v9  ;;  %v2751_v23 = vand.u32 2147483647, %v5239_v38  ;;  %v2753_v34 = vand.u32 2147483648, %v5239_v38 }
 0x2dd   : > { %v2550_v12 = vadd.f32 %v2549_v56, %v2548_v49  ;;  %v2746_v35 = vadd.f32 %v5278_v58, %v2745_v5  ;;  %v2556_v29 = vrot.slane %v2555_v62, 4  ;;  %v2758_v4 = vmul.f32 %v5317_v46, %v5280_v48 }
 0x2de   : > { %v2966_v3 = vsel %vm1968_vm7, %v2898_v31, 0.0  ;;  %v5352_v45 = vpop.eup %3739  ;;  %v2969_v61 = vsel %vm1968_vm7, %v2899_v0, 0.0  ;;  %v2754_v52 = vor.u32 1.1754944e-38, %v2753_v34  ;;  %vm2752_vm14 = vcmp.eq.f32.partialorder %v2751_v23, 8.507059e+37 }
 0x2df   : > { %v2551_v1 = vrot.slane %v2550_v12, 1  ;;  %2967 = vadd.xlane.f32.xlu0 %v2966_v3  ;;  %v2750_v47 = vsel %vm2749_vm13, %v5278_v58, %v2746_v35  ;;  %v2557_v24 = vadd.f32 %v2556_v29, %v2555_v62  ;;  %v2759_v43 = vsub.f32 1.0, %v2758_v4 }
 0x2e0   : > { %v5358_v27 = vpop.eup %3741  ;;  %2970 = vadd.xlane.f32.xlu2 %v2969_v61  ;;  %v2755_v38 = vsel %vm2752_vm14, %v2754_v52, %v2750_v47  ;;  %v2766_v54 = vand.u32 2147483647, %v5280_v48  ;;  %v2768_v37 = vand.u32 2147483648, %v5280_v48  ;;  %vm2763_vm15 = vweird.f32 %v5317_v46 }
 0x2e1   : > { %v5356_v59 = vadd.f32 %v2551_v1, %v2550_v12  ;;  %v5362_v6 = vpop.eup %3743  ;;  %v2558_v13 = vrot.slane %v2557_v24, 2  ;;  %v2562_v58 = vsel %vm1968_vm7, %v5358_v27, 0.0  ;;  %v2756_v21 = vmul.f32 %v2755_v38, %v4887_v28 }
 0x2e2   : > { %v2563_v50 = vsel %vm1968_vm7, %v5362_v6, 0.0  ;;  %v2760_v15 = vmul.f32 %v5317_v46, %v2759_v43  ;;  %v2773_v18 = vmul.f32 %v5352_v45, %v5319_v19  ;;  %vm2762_vm1 = vweird.f32 %v5280_v48 }
 0x2e3   : > { %3745 = vrcp.f32 %v5356_v59  ;;  %v2559_v7 = vadd.f32 %v2558_v13, %v2557_v24  ;;  %v2564_v26 = vadd.f32 %v2563_v50, %v2562_v58  ;;  %v2858_v20 = vperm.slane %v2756_v21, 0  ;;  %vm2764_vm3 = vmor %vm2762_vm1, %vm2763_vm15 }
 0x2e4   : > { %v2761_v39 = vadd.f32 %v5317_v46, %v2760_v15  ;;  %vm5376_vm2 = vcmp.eq.f32.partialorder %v2766_v54, 8.507059e+37  ;;  %v2769_v40 = vor.u32 1.1754944e-38, %v2768_v37  ;;  %v2774_v30 = vsub.f32 1.0, %v2773_v18 }
 0x2e5   : > { %v2560_v42 = vrot.slane %v2559_v7, 1  ;;  %v2565_v44 = vrot.slane %v2564_v26, 4  ;;  %v2901_v49 = vmul.f32 %v5174_v22, %v2858_v20  ;;  %v2900_v16 = vmul.f32 %v5136_v11, %v2858_v20 }
 0x2e6   : > { %v2765_v55 = vsel %vm2764_vm3, %v5317_v46, %v2761_v39  ;;  %v2781_v17 = vand.u32 2147483647, %v5319_v19  ;;  %v2783_v36 = vand.u32 2147483648, %v5319_v19  ;;  %v2775_v22 = vmul.f32 %v5352_v45, %v2774_v30 }
 0x2e7   : > { %v5385_v51 = vadd.f32 %v2560_v42, %v2559_v7  ;;  %v2566_v56 = vadd.f32 %v2565_v44, %v2564_v26  ;;  %v2975_v41 = vsel %vm1968_vm7, %v2901_v49, 0.0  ;;  %v2972_v9 = vsel %vm1968_vm7, %v2900_v16, 0.0 }
 0x2e8   : > { %2976 = vadd.xlane.f32.xlu0 %v2975_v41  ;;  %2973 = vadd.xlane.f32.xlu1 %v2972_v9  ;;  %v2770_v11 = vsel %vm5376_vm2, %v2769_v40, %v2765_v55  ;;  %vm2778_vm4 = vweird.f32 %v5352_v45  ;;  %v2776_v12 = vadd.f32 %v5352_v45, %v2775_v22  ;;  %vm2777_vm5 = vweird.f32 %v5319_v19 }
 0x2e9   : > { %v3746_v48 = vpop.eup %3745  ;;  %3747 = vrcp.f32 %v5385_v51  ;;  %v2567_v8 = vrot.slane %v2566_v56, 2  ;;  %v2771_v5 = vmul.f32 %v2770_v11, %v4887_v28  ;;  %vm2782_vm6 = vcmp.eq.f32.partialorder %v2781_v17, 8.507059e+37  ;;  %vm2779_vm8 = vmor %vm2777_vm5, %vm2778_vm4 }
 0x2ea   : > { %v2788_v46 = vmul.f32 %v3746_v48, %v5356_v59  ;;  %v2784_v35 = vor.u32 1.1754944e-38, %v2783_v36  ;;  %v2798_v23 = vand.u32 2147483648, %v5356_v59  ;;  %v2780_v34 = vsel %vm2779_vm8, %v5352_v45, %v2776_v12 }
 0x2eb   : > { %v2568_v31 = vadd.f32 %v2567_v8, %v2566_v56  ;;  %v2859_v0 = vperm.slane %v2771_v5, 0  ;;  %vm2793_vm9 = vweird.f32 %v3746_v48  ;;  %v2796_v29 = vand.u32 2147483647, %v5356_v59 }
 0x2ec   : > { %v2789_v62 = vsub.f32 1.0, %v2788_v46  ;;  %v2785_v19 = vsel %vm2782_vm6, %v2784_v35, %v2780_v34  ;;  %vm2792_vm10 = vweird.f32 %v5356_v59  ;;  %v2799_v54 = vor.u32 1.1754944e-38, %v2798_v23 }
 0x2ed   : > { %v2569_v3 = vrot.slane %v2568_v31, 1  ;;  %v2903_v4 = vmul.f32 %v5214_v25, %v2859_v0  ;;  %v2902_v61 = vmul.f32 %v5177_v53, %v2859_v0  ;;  %v2786_v47 = vmul.f32 %v2785_v19, %v4887_v28  ;;  %vm2794_vm11 = vmor %vm2792_vm10, %vm2793_vm9 }
 0x2ee   : > { %v2790_v1 = vmul.f32 %v3746_v48, %v2789_v62  ;;  %vm2797_vm12 = vcmp.eq.f32.partialorder %v2796_v29, 8.507059e+37  ;;  %v2811_v15 = vand.u32 2147483647, %v5385_v51  ;;  %v2813_v7 = vand.u32 2147483648, %v5385_v51 }
 0x2ef   : > { %v3748_v24 = vpop.eup %3747  ;;  %v2570_v43 = vadd.f32 %v2569_v3, %v2568_v31  ;;  %v2981_v38 = vsel %vm1968_vm7, %v2903_v4, 0.0  ;;  %v2978_v45 = vsel %vm1968_vm7, %v2902_v61, 0.0  ;;  %v2860_v37 = vperm.slane %v2786_v47, 0 }
 0x2f0   : > { %v2791_v52 = vadd.f32 %v3746_v48, %v2790_v1  ;;  %2982 = vadd.xlane.f32.xlu1 %v2981_v38  ;;  %2979 = vadd.xlane.f32.xlu2 %v2978_v45  ;;  %v2803_v53 = vmul.f32 %v3748_v24, %v5385_v51  ;;  %vm2808_vm13 = vweird.f32 %v3748_v24  ;;  %vm2807_vm14 = vweird.f32 %v5385_v51 }
 0x2f1   : > { %3749 = vrcp.f32 %v2570_v43  ;;  %v2905_v58 = vmul.f32 %v5248_v63, %v2860_v37  ;;  %v2904_v59 = vmul.f32 %v4996_v10, %v2860_v37  ;;  %vm2809_vm15 = vmor %vm2807_vm14, %vm2808_vm13  ;;  %v2814_v42 = vor.u32 1.1754944e-38, %v2813_v7 }
 0x2f2   : > { %v2795_v25 = vsel %vm2794_vm11, %v3746_v48, %v2791_v52  ;;  %v2804_v50 = vsub.f32 1.0, %v2803_v53  ;;  %vm2812_vm1 = vcmp.eq.f32.partialorder %v2811_v15, 8.507059e+37  ;;  %v2826_v51 = vand.u32 2147483647, %v2570_v43 }
 0x2f3   : > { %v2800_v13 = vsel %vm2797_vm12, %v2799_v54, %v2795_v25  ;;  %v2984_v26 = vsel %vm1968_vm7, %v2904_v59, 0.0  ;;  %v2987_v39 = vsel %vm1968_vm7, %v2905_v58, 0.0  ;;  %vm2822_vm3 = vweird.f32 %v2570_v43 }
 0x2f4   : > { %v2801_v21 = vmul.f32 %v2800_v13, %v4887_v28  ;;  %v2805_v18 = vmul.f32 %v3748_v24, %v2804_v50  ;;  %2985 = vadd.xlane.f32.xlu0 %v2984_v26  ;;  %vm2827_vm5 = vcmp.eq.f32.partialorder %v2826_v51, 8.507059e+37  ;;  %vm3043_vm6 = vcmask 130112  }
 0x2f5   : > { %vm3090_vm8 = vcmask 1041409   ;;  %vm3092_vm9 = vcmask 1042434   ;;  %vm3094_vm10 = vcmask 1043459   ;;  %vm3096_vm11 = vcmask 1044484  }
 0x2f6   : > { %v2861_v20 = vperm.slane %v2801_v21, 0  ;;  %v2806_v10 = vadd.f32 %v3748_v24, %v2805_v18  ;;  %v2920_v29 = vpop.xlane.xlu0 %2919  ;;  %vm3098_vm12 = vcmask 1045509   ;;  %vm3100_vm13 = vcmask 1046534  }
 0x2f7   : > { %v3750_v40 = vpop.eup %3749  ;;  %v3045_v25 = vperm.slane %v2920_v29, %v4587_v14  ;;  %vm3102_vm14 = vcmask 1047559  }
 0x2f8   : > { %v2906_v32 = vmul.f32 %v5290_v2, %v2861_v20  ;;  %v2907_v63 = vmul.f32 %v5293_v60, %v2861_v20  ;;  %2988 = vadd.xlane.f32.xlu2 %v2987_v39  ;;  %v2810_v49 = vsel %vm2809_vm15, %v3748_v24, %v2806_v10  ;;  %v2818_v16 = vmul.f32 %v3750_v40, %v2570_v43 }
 0x2f9   : > { %v2815_v55 = vsel %vm2812_vm1, %v2814_v42, %v2810_v49  ;;  %v2828_v60 = vand.u32 2147483648, %v2570_v43  ;;  %vm2823_vm2 = vweird.f32 %v3750_v40 }
 0x2fa   : > { %v2990_v44 = vsel %vm1968_vm7, %v2906_v32, 0.0  ;;  %v2993_v30 = vsel %vm1968_vm7, %v2907_v63, 0.0  ;;  %v2816_v2 = vmul.f32 %v2815_v55, %v4887_v28  ;;  %v2819_v17 = vsub.f32 1.0, %v2818_v16  ;;  %vm2824_vm4 = vmor %vm2822_vm3, %vm2823_vm2 }
 0x2fb   : > { %2991 = vadd.xlane.f32.xlu1 %v2990_v44  ;;  %v2829_v11 = vor.u32 1.1754944e-38, %v2828_v60 }
 0x2fc   : > { %v2862_v36 = vperm.slane %v2816_v2, 0  ;;  %v2820_v48 = vmul.f32 %v3750_v40, %v2819_v17  ;;  %2994 = vadd.xlane.f32.xlu0 %v2993_v30 }
 0x2fe   : > { %v2909_v56 = vmul.f32 %v5333_v57, %v2862_v36  ;;  %v2908_v41 = vmul.f32 %v5330_v33, %v2862_v36  ;;  %v2821_v9 = vadd.f32 %v3750_v40, %v2820_v48 }
 0x300   : > { %v2999_v22 = vsel %vm1968_vm7, %v2909_v56, 0.0  ;;  %v2996_v46 = vsel %vm1968_vm7, %v2908_v41, 0.0  ;;  %v2825_v8 = vsel %vm2824_vm4, %v3750_v40, %v2821_v9 }
 0x301   : > { %2997 = vadd.xlane.f32.xlu2 %v2996_v46  ;;  %v2830_v5 = vsel %vm2827_vm5, %v2829_v11, %v2825_v8 }
 0x302   : > { %v2831_v12 = vmul.f32 %v2830_v5, %v4887_v28 }
 0x303   : > { %3000 = vadd.xlane.f32.xlu1 %v2999_v22 }
 0x304   : > { %v2863_v62 = vperm.slane %v2831_v12, 0 }
 0x306   : > { %v2911_v57 = vmul.f32 %v5362_v6, %v2863_v62  ;;  %v2910_v33 = vmul.f32 %v5358_v27, %v2863_v62  ;;  %v5431_v6 = vadd.s32 4294967288, %v4587_v14 }
 0x308   : > { %v3005_v31 = vsel %vm1968_vm7, %v2911_v57, 0.0  ;;  %v3002_v0 = vsel %vm1968_vm7, %v2910_v33, 0.0 }
 0x309   : > { %3006 = vadd.xlane.f32.xlu2 %v3005_v31  ;;  %3003 = vadd.xlane.f32.xlu0 %v3002_v0 }
 0x30a   : > { %v2914_v35 = vpop.xlane.xlu1 %2913 }
 0x30b   : > { %v3040_v43 = vperm.slane %v2914_v35, %v4587_v14 }
 0x312   : > { %v2923_v34 = vpop.xlane.xlu1 %2922 }
 0x313   : > { %v3046_v38 = vperm.slane %v2923_v34, %v5431_v6 }
 0x314   : > { %v2917_v23 = vpop.xlane.xlu2 %2916 }
 0x315   : > { %v3042_v27 = vperm.slane %v2917_v23, %v5431_v6  ;;  %v3047_v21 = vsel %vm3043_vm6, %v3046_v38, %v3045_v25 }
 0x317   : > { %v3044_v53 = vsel %vm3043_vm6, %v3042_v27, %v3040_v43 }
 0x318   : > { %v3091_v7 = vsel %vm3090_vm8, %v3047_v21, %v3044_v53 }
 0x31a   : > { %v2929_v3 = vpop.xlane.xlu1 %2928 }
 0x31b   : > { %v2932_v61 = vpop.xlane.xlu0 %2931  ;;  %v3049_v54 = vperm.slane %v2929_v3, %v5431_v6 }
 0x31c   : > { %v2926_v1 = vpop.xlane.xlu2 %2925  ;;  %v3051_v13 = vperm.slane %v2932_v61, %v4587_v14 }
 0x31d   : > { %v3048_v52 = vperm.slane %v2926_v1, %v4587_v14 }
 0x31f   : > { %v3050_v59 = vsel %vm3043_vm6, %v3049_v54, %v3048_v52 }
 0x320   : > { %v3093_v39 = vsel %vm3092_vm9, %v3050_v59, %v3091_v7 }
 0x324   : > { %v2935_v4 = vpop.xlane.xlu2 %2934 }
 0x325   : > { %v3052_v45 = vperm.slane %v2935_v4, %v5431_v6 }
 0x326   : > { %v2938_v28 = vpop.xlane.xlu1 %2937  ;;  %v2941_v47 = vpop.xlane.xlu0 %2940 }
 0x327   : > { %v3053_v50 = vsel %vm3043_vm6, %v3052_v45, %v3051_v13  ;;  %v3054_v26 = vperm.slane %v2938_v28, %v4587_v14  ;;  %v3055_v20 = vperm.slane %v2941_v47, %v5431_v6 }
 0x328   : > { %v3095_v63 = vsel %vm3094_vm10, %v3053_v50, %v3093_v39 }
 0x329   : > { %v3056_v49 = vsel %vm3043_vm6, %v3055_v20, %v3054_v26 }
 0x32a   : > { %v3097_v30 = vsel %vm3096_vm11, %v3056_v49, %v3095_v63 }
 0x32f   : > { %v2944_v19 = vpop.xlane.xlu2 %2943  ;;  %v2947_v24 = vpop.xlane.xlu1 %2946 }
 0x330   : > { %v3057_v15 = vperm.slane %v2944_v19, %v4587_v14  ;;  %v3058_v32 = vperm.slane %v2947_v24, %v5431_v6  ;;  %v3305_v24 = vld [vmem:[#allocation2] sm:$0x1] }
 0x331   : > { %v3532_v45 = vmul.f32 -1.442695, %v3305_v24 }
 0x332   : > { %v3059_v42 = vsel %vm3043_vm6, %v3058_v32, %v3057_v15 }
 0x333   : > { %v3099_v17 = vsel %vm3098_vm12, %v3059_v42, %v3097_v30  ;;  %3751 = vpow2.f32 %v3532_v45  ;;  %v3930_v42 = vmov 0  }
 0x334   : > { %3633 = vset.pattern.permute.xlu1 %v3930_v42  ;;  %3634 = vset.pattern.permute.xlu0 %v3930_v42 }
 0x339   : > { %v2950_v37 = vpop.xlane.xlu0 %2949  ;;  %v2953_v58 = vpop.xlane.xlu2 %2952 }
 0x33a   : > { %v3061_v18 = vperm.slane %v2953_v58, %v5431_v6  ;;  %v3060_v10 = vperm.slane %v2950_v37, %v4587_v14 }
 0x33c   : > { %v3062_v16 = vsel %vm3043_vm6, %v3061_v18, %v3060_v10 }
 0x33d   : > { %v3101_v60 = vsel %vm3100_vm13, %v3062_v16, %v3099_v17 }
 0x33e   : > { %v2956_v40 = vpop.xlane.xlu1 %2955 }
 0x33f   : > { %v3063_v44 = vperm.slane %v2956_v40, %v4587_v14 }
 0x341   : > { %v2959_v55 = vpop.xlane.xlu0 %2958 }
 0x342   : > { %v3064_v2 = vperm.slane %v2959_v55, %v5431_v6 }
 0x344   : > { %v3065_v36 = vsel %vm3043_vm6, %v3064_v2, %v3063_v44  ;;  %v3752_v44 = vpop.eup %3751 }
 0x345   : > { %v3103_v48 = vsel %vm3102_vm14, %v3065_v36, %v3101_v60  ;;  %v3309_v30 = vadd.f32 1.0, %v3752_v44 }
 0x346   : > { %v3111_v51 = vsel %vm1968_vm7, %v3103_v48, 0 }
 0x347   : > { %v5465_v56 = vand.u32 4294901760, %v3111_v51  ;;  %3753 = vrcp.f32 %v3309_v30  ;;  %vm3315_vm15 = vweird.f32 %v3309_v30 }
 0x349   : > { %3177 = vmatmul.f32.vlgmr.msrb.gmra.mxu1 %v5465_v56  ;;  %v3134_v41 = vsub.f32 %v3111_v51, %v5465_v56 }
 0x34b   : > { %3207 = vmatmul.f32.vlgmr.msra.gmra.mxu2 %v3134_v41  ;;  %v3135_v9 = vand.u32 4294901760, %v3134_v41  ;;  %v2962_v46 = vpop.xlane.xlu2 %2961  ;;  %v2965_v8 = vpop.xlane.xlu1 %2964 }
 0x34c   : > { %v3067_v28 = vperm.slane %v2965_v8, %v5431_v6  ;;  %v3066_v19 = vperm.slane %v2962_v46, %v4587_v14 }
 0x34d   : > { %3237 = vmatmul.f32.vlgmr.msra.gmra.mxu3 %v3135_v9  ;;  %v3136_v11 = vsub.f32 %v3134_v41, %v3135_v9  ;;  %v3754_v36 = vpop.eup %3753  ;;  %v3321_v41 = vand.u32 2147483648, %v3309_v30 }
 0x34e   : > { %v3068_v59 = vsel %vm3043_vm6, %v3067_v28, %v3066_v19  ;;  %v3311_v51 = vmul.f32 %v3754_v36, %v3309_v30  ;;  %vm3316_vm1 = vweird.f32 %v3754_v36 }
 0x34f   : > { %v3137_v22 = vand.u32 4294901760, %v3136_v11  ;;  %v3322_v8 = vor.u32 1.1754944e-38, %v3321_v41 }
 0x350   : > { %v3312_v11 = vsub.f32 1.0, %v3311_v51 }
 0x351   : > { %3138 = vmatmul.f32.vlgmr.msrb.gmra.mxu0 %v3137_v22  ;;  %v3319_v22 = vand.u32 2147483647, %v3309_v30 }
 0x352   : > { %v2968_v5 = vpop.xlane.xlu0 %2967  ;;  %v3313_v46 = vmul.f32 %v3754_v36, %v3312_v11 }
 0x353   : > { %v2971_v12 = vpop.xlane.xlu2 %2970  ;;  %v3069_v1 = vperm.slane %v2968_v5, %v4587_v14  ;;  %vm3320_vm2 = vcmp.eq.f32.partialorder %v3319_v22, 8.507059e+37 }
 0x354   : > { %v3070_v34 = vperm.slane %v2971_v12, %v5431_v6  ;;  %v3314_v5 = vadd.f32 %v3754_v36, %v3313_v46 }
 0x356   : > { %v3071_v54 = vsel %vm3043_vm6, %v3070_v34, %v3069_v1 }
 0x357   : > { %v3104_v50 = vsel %vm3090_vm8, %v3071_v54, %v3068_v59 }
 0x35b   : > { %v2974_v62 = vpop.xlane.xlu1 %2973  ;;  %v2977_v57 = vpop.xlane.xlu0 %2976 }
 0x35c   : > { %v3072_v29 = vperm.slane %v2974_v62, %v4587_v14  ;;  %v3073_v3 = vperm.slane %v2977_v57, %v5431_v6 }
 0x35e   : > { %v3074_v53 = vsel %vm3043_vm6, %v3073_v3, %v3072_v29 }
 0x35f   : > { %v3105_v7 = vsel %vm3092_vm9, %v3074_v53, %v3104_v50 }
 0x363   : > { %v2980_v33 = vpop.xlane.xlu2 %2979  ;;  %v2983_v31 = vpop.xlane.xlu1 %2982 }
 0x364   : > { %v3076_v47 = vperm.slane %v2983_v31, %v5431_v6  ;;  %v3075_v27 = vperm.slane %v2980_v33, %v4587_v14 }
 0x366   : > { %v3077_v21 = vsel %vm3043_vm6, %v3076_v47, %v3075_v27 }
 0x367   : > { %v2986_v0 = vpop.xlane.xlu0 %2985  ;;  %v3106_v20 = vsel %vm3094_vm10, %v3077_v21, %v3105_v7  ;;  %v3762_v7 = vld [vmem:[%s4102_s20 + $0x8] sm:$0xff] }
 0x368   : > { %v3078_v38 = vperm.slane %v2986_v0, %v4587_v14 }
 0x36b   : > { %v2989_v35 = vpop.xlane.xlu2 %2988 }
 0x36c   : > { %v3079_v43 = vperm.slane %v2989_v35, %v5431_v6 }
 0x36e   : > { %v2992_v23 = vpop.xlane.xlu1 %2991  ;;  %v3080_v15 = vsel %vm3043_vm6, %v3079_v43, %v3078_v38  ;;  %v3761_v38 = vld [vmem:[%s4102_s20] sm:$0xff]  ;;  %s511_s20 = sand.u32 1, %s3915_s16  }
 0x36f   : > { %v2995_v4 = vpop.xlane.xlu0 %2994  ;;  %v3081_v37 = vperm.slane %v2992_v23, %v4587_v14  ;;  %v3107_v63 = vsel %vm3096_vm11, %v3080_v15, %v3106_v20  ;;  %s3528_s15 = sshll.u32 %s511_s20, 4  ;;  %s3410_s11 = scalar_lea.sflag [#allocation5], %s511_s20 }
 0x370   : > { %v3082_v25 = vperm.slane %v2995_v4, %v5431_v6  ;;  %s513_s23 = scalar_lea.vmem [#allocation9], %s3528_s15 }
 0x371   : > { %s3422_s21 = sshll.u32 %s513_s23, 4  ;;  %s3423_s21 = int_to_ptr.vmem [resolvable:$true] %s3422_s21 }
 0x372   : > { %v3083_v26 = vsel %vm3043_vm6, %v3082_v25, %v3081_v37 }
 0x373   : > { %v3108_v49 = vsel %vm3098_vm12, %v3083_v26, %v3107_v63 }
 0x374   : > { %v2998_v61 = vpop.xlane.xlu2 %2997 }
 0x375   : > { %v3084_v58 = vperm.slane %v2998_v61, %v4587_v14 }
 0x376   : > { %v3001_v52 = vpop.xlane.xlu1 %3000 }
 0x377   : > { %v3085_v13 = vperm.slane %v3001_v52, %v5431_v6 }
 0x379   : > { %v3086_v18 = vsel %vm3043_vm6, %v3085_v13, %v3084_v58 }
 0x37a   : > { %v3109_v16 = vsel %vm3100_vm13, %v3086_v18, %v3108_v49 }
 0x37c   : > { %v3007_v39 = vpop.xlane.xlu2 %3006  ;;  %v3004_v32 = vpop.xlane.xlu0 %3003 }
 0x37d   : > { %v3088_v10 = vperm.slane %v3007_v39, %v5431_v6  ;;  %v3087_v40 = vperm.slane %v3004_v32, %v4587_v14  ;;  %v3931_v32 = vmov 32.0  }
 0x37e   : > { %3755 = vrcp.f32 %v3931_v32 }
 0x37f   : > { %v3089_v55 = vsel %vm3043_vm6, %v3088_v10, %v3087_v40 }
 0x380   : > { %v3110_v2 = vsel %vm3102_vm14, %v3089_v55, %v3109_v16 }
 0x381   : > { %v3113_v17 = vsel %vm1968_vm7, %v3110_v2, 0  ;;  %vm3317_vm7 = vmor %vm3315_vm15, %vm3316_vm1 }
 0x382   : > { %v3141_v60 = vand.u32 4294901760, %v3113_v17  ;;  %v3318_v12 = vsel %vm3317_vm7, %v3754_v36, %v3314_v5 }
 0x383   : > { %v3323_v62 = vsel %vm3320_vm2, %v3322_v8, %v3318_v12 }
 0x384   : > { %3181 = vmatmul.f32.gmra.mxu1 %v3141_v60  ;;  %v3142_v6 = vsub.f32 %v3113_v17, %v3141_v60  ;;  %v3326_v57 = vperm.slane %v3323_v62, 0  ;;  %v3333_v33 = vsub.f32 1.0, %v3323_v62  ;;  %v3756_v63 = vpop.eup %3755 }
 0x385   : > { %v3351_v10 = vmul.f32 32.0, %v3756_v63  ;;  %vm3355_vm3 = vweird.f32 %v3756_v63 }
 0x386   : > { %3212 = vmatmul.f32.gmra.mxu2 %v3142_v6  ;;  %v3143_v14 = vand.u32 4294901760, %v3142_v6  ;;  %v3335_v31 = vperm.slane %v3333_v33, 0  ;;  %3328 = vperm.xlu1 %3633, %v3326_v57  }
 0x387   : > { %v3352_v40 = vsub.f32 1.0, %v3351_v10 }
 0x388   : > { %3243 = vmatmul.f32.gmra.mxu3 %v3143_v14  ;;  %v3144_v48 = vsub.f32 %v3142_v6, %v3143_v14  ;;  %3337 = vperm.xlu0 %3634, %v3335_v31  }
 0x389   : > { %v3353_v42 = vmul.f32 %v3756_v63, %v3352_v40 }
 0x38a   : > { %v3145_v9 = vand.u32 4294901760, %v3144_v48 }
 0x38b   : > { %v3354_v44 = vadd.f32 %v3756_v63, %v3353_v42 }
 0x38c   : > { %3146 = vmatmul.f32.gmra.mxu0 %v3145_v9  ;;  %3297 = vmatmul.f32.vlgmr.msra.gmra.mxu1 %v5465_v56 }
 0x38d   : > { %v3356_v49 = vsel %vm3355_vm3, %v3756_v63, %v3354_v44 }
 0x394   : > { %3270 = vmatmul.f32.vlgmr.msra.gmra.mxu0 %v5465_v56  ;;  %3301 = vmatmul.f32.gmra.mxu1 %v3141_v60 }
 0x39c   : > { %3274 = vmatmul.f32.gmra.mxu0 %v3141_v60 }
 0x3c6   : > { %v3178_v0 = vpop.f32.mrf.mxu1 }
 0x3ce   : > { %v3139_v35 = vpop.f32.mrf.mxu0  ;;  %v3208_v29 = vpop.f32.mrf.mxu2 }
 0x3cf   : > { %v3179_v34 = vadd.f32 %v3178_v0, %v3139_v35  ;;  %v3637_v35 = vld [vmem:[%s5561_s12] ss:$0 sm:$0xff] }
 0x3d0   : > { %v3238_v4 = vpop.f32.mrf.mxu3 }
 0x3d1   : > { %v3209_v3 = vadd.f32 %v3208_v29, %v3179_v34 }
 0x3d3   : > { %v3239_v61 = vadd.f32 %v3238_v4, %v3209_v3 }
 0x3f8   : > { %v3329_v19 = vpop.permute.xlu1 %3328 }
 0x3f9   : > { %v3331_v45 = vmul.f32 %v3761_v38, %v3329_v19  ;;  %v3332_v26 = vmul.f32 %v3762_v7, %v3329_v19 }
 0x3fa   : > { %v3338_v24 = vpop.permute.xlu0 %3337 }
 0x401   : > { %v3182_v23 = vpop.f32.mrf.mxu1 }
 0x409   : > { %v3147_v1 = vpop.f32.mrf.mxu0  ;;  %v3298_v47 = vpop.f32.mrf.mxu1 }
 0x40a   : > { %v3183_v28 = vadd.f32 %v3182_v23, %v3147_v1  ;;  %v3213_v52 = vpop.f32.mrf.mxu2  ;;  %v3638_v1 = vld [vmem:[%s5562_s13] ss:$0 sm:$0xff] }
 0x40b   : > { %v3244_v25 = vpop.f32.mrf.mxu3 }
 0x40c   : > { %v3214_v43 = vadd.f32 %v3213_v52, %v3183_v28 }
 0x40e   : > { %v3245_v53 = vadd.f32 %v3244_v25, %v3214_v43 }
 0x411   : > { %v3271_v27 = vpop.f32.mrf.mxu0  ;;  %v3302_v50 = vpop.f32.mrf.mxu1 }
 0x412   : > { %v3272_v56 = vadd.f32 %v3271_v27, %v3239_v61 }
 0x414   : > { %v3299_v54 = vadd.f32 %v3298_v47, %v3272_v56 }
 0x416   : > { %v3340_v37 = vmul.f32 %v3338_v24, %v3299_v54 }
 0x418   : > { %v3342_v13 = vadd.f32 %v3340_v37, %v3331_v45 }
 0x419   : > { %v3275_v58 = vpop.f32.mrf.mxu0 }
 0x41a   : > { %v3276_v59 = vadd.f32 %v3275_v58, %v3245_v53  ;;  %v3344_v21 = vsel %vm527_vm0, %v3342_v13, 0.0 }
 0x41b   : > { %3345 = vadd.xlane.f32.xlu2 %v3344_v21 }
 0x41c   : > { %v3303_v15 = vadd.f32 %v3302_v50, %v3276_v59 }
 0x41e   : > { %v3341_v20 = vmul.f32 %v3338_v24, %v3303_v15 }
 0x420   : > { %v3343_v18 = vadd.f32 %v3341_v20, %v3332_v26 }
 0x422   : > { %v3347_v39 = vsel %vm527_vm0, %v3343_v18, 0.0 }
 0x423   : > { %3348 = vadd.xlane.f32.xlu2 %v3347_v39 }
 0x48e   : > { %v3346_v16 = vpop.xlane.xlu2 %3345 }
 0x48f   : > { %v3357_v55 = vmul.f32 %v3356_v49, %v3346_v16 }
 0x491   : > { %v3359_v30 = vsub.f32 %v3342_v13, %v3357_v55 }
 0x493   : > { %v3361_v2 = vmul.f32 %v3359_v30, %v3359_v30 }
 0x495   : > { %v3363_v17 = vsel %vm527_vm0, %v3361_v2, 0.0 }
 0x496   : > { %3364 = vadd.xlane.f32.xlu2 %v3363_v17  ;;  %v3349_v60 = vpop.xlane.xlu2 %3348 }
 0x497   : > { %v3358_v6 = vmul.f32 %v3356_v49, %v3349_v60 }
 0x499   : > { %v3360_v14 = vsub.f32 %v3343_v18, %v3358_v6 }
 0x49b   : > { %v3362_v36 = vmul.f32 %v3360_v14, %v3360_v14 }
 0x49d   : > { %v3366_v48 = vsel %vm527_vm0, %v3362_v36, 0.0 }
 0x49e   : > { %3367 = vadd.xlane.f32.xlu1 %v3366_v48 }
 0x509   : > { %v3365_v51 = vpop.xlane.xlu2 %3364 }
 0x50a   : > { %v3369_v41 = vmul.f32 %v3365_v51, %v3356_v49 }
 0x50c   : > { %v3371_v9 = vadd.f32 1e-05, %v3369_v41 }
 0x50e   : > { %3757 = vrsqrt.f32 %v3371_v9  ;;  %vm3379_vm5 = vweird.f32 %v3371_v9 }
 0x511   : > { %v3368_v11 = vpop.xlane.xlu1 %3367 }
 0x512   : > { %v3370_v22 = vmul.f32 %v3368_v11, %v3356_v49 }
 0x514   : > { %v3758_v46 = vpop.eup %3757  ;;  %v3372_v8 = vadd.f32 1e-05, %v3370_v22 }
 0x515   : > { %v3374_v5 = vmul.f32 %v3758_v46, %v3371_v9  ;;  %vm3380_vm4 = vweird.f32 %v3758_v46 }
 0x516   : > { %3759 = vrsqrt.f32 %v3372_v8  ;;  %vm3381_vm6 = vmor %vm3379_vm5, %vm3380_vm4  ;;  %vm3389_vm9 = vweird.f32 %v3372_v8 }
 0x517   : > { %v3375_v12 = vmul.f32 %v3758_v46, %v3374_v5 }
 0x519   : > { %v3376_v62 = vmul.f32 0.5, %v3375_v12 }
 0x51b   : > { %v3377_v57 = vsub.f32 1.5, %v3376_v62 }
 0x51c   : > { %v3760_v33 = vpop.eup %3759 }
 0x51d   : > { %v3378_v31 = vmul.f32 %v3758_v46, %v3377_v57  ;;  %v3384_v0 = vmul.f32 %v3760_v33, %v3372_v8  ;;  %vm3390_vm8 = vweird.f32 %v3760_v33 }
 0x51e   : > { %vm3391_vm10 = vmor %vm3389_vm9, %vm3390_vm8 }
 0x51f   : > { %v3382_v23 = vsel %vm3381_vm6, %v3758_v46, %v3378_v31  ;;  %v3385_v34 = vmul.f32 %v3760_v33, %v3384_v0 }
 0x520   : > { %v3393_v29 = vmul.f32 %v3382_v23, %v3359_v30 }
 0x521   : > { %v3386_v3 = vmul.f32 0.5, %v3385_v34 }
 0x522   : > { %v3399_v4 = vmul.f32 %v3637_v35, %v3393_v29 }
 0x523   : > { %v3387_v61 = vsub.f32 1.5, %v3386_v3 }
 0x524   : > { %v3405_v28 = vadd.f32 %v3638_v1, %v3399_v4 }
 0x525   : > { %v3388_v19 = vmul.f32 %v3760_v33, %v3387_v61 }
 0x526   : > { %3407 = vst.msk [vmem:[%s513_s23] sm:$0xff] %vm527_vm0, %v3405_v28 }
 0x527   : > { %v3392_v47 = vsel %vm3391_vm10, %v3760_v33, %v3388_v19 }
 0x528   : > { %v3394_v27 = vmul.f32 %v3392_v47, %v3360_v14 }
 0x52a   : > { %v3400_v56 = vmul.f32 %v3637_v35, %v3394_v27 }
 0x52c   : > { %v3406_v52 = vadd.f32 %v3638_v1, %v3400_v56 }
 0x52e   : > { %3408 = vst.msk [vmem:[%s513_s23 + $0x8] sm:$0xff] %vm527_vm0, %v3406_v52 }
 0x52f   : > { %3880 = shalt.err (!%p3877_p8)
}
 0x530   : > { %s3932_s20 = smov 128   ;;  %s3933_s17 = smov 8  }
 0x531   : > { %3559 = dma.vmem_to_hbm [thread:$0]  (%p4050_p5), %s3423_s21, 256, %s3425_s22, %s3410_s11, %s3932_s20, %s3932_s20, %s3933_s17  }
 0x532 PF: > { %s5612_s23 = sld [smem:[#allocation13_spill]]  ;;  %p3581_p9 = scmp.ge.s32.totalorder %s3923_s18, 2 }
 0x534   : > { %p3572_p10 = pnand %p3581_p9, %p4054_p6 }
 0x536   : > { %p3573_p11 = pneg %p3572_p10 }
 0x538   : > { %s3439_s26 = sand.u32 1, %s5612_s23  }
 0x539   : > { %s3440_s29 = scalar_lea.sflag [#allocation5], %s3439_s26 }
 0x53a   : > { %3906 = dma.done.wait (%p3573_p11), %s3440_s29, 256  }
 0x53b   : > { %3908 = vsyncadd (%p3573_p11), %s3440_s29, 4294967040  ;;  %s5614_s18 = sld [smem:[#allocation15_spill]]  ;;  %s5617_s15 = smov %s3915_s16 }
 0x53c   : > { %s5615_s27 = sld [smem:[#allocation14_spill]] }
 0x53d   : > { %s5616_s17 = sld [smem:[#allocation16_spill]] }
 0x541   : > { %p28_p12 = scmp.ge.s32.totalorder %s5614_s18, 4  }
 0x542   : > { %s5618_s16 = smov %s5615_s27 }
 0x543   :  { %30 = sbr.rel (!%p28_p12) target bundleno = 8 (0x8), region = 124 }
 0x548   :  { %3446 = vsyncpa [#allocation4], 1 }
 0x549   :  { %3448 = vsyncpa [#allocation4 + $0x1], 1 }
 0x54a   :  { %3449 = vsyncpa [#allocation7], 1 }
 0x54b   :  { %3450 = vsyncpa [#allocation5], 1 }
 0x54c   :  { %3452 = vsyncpa [#allocation5 + $0x1], 1 }

</bundles_post_ra>
